<compile_context>
chip_gen: v5e
topology: v5e:2x2
jax: 0.10.0
libtpu: 0.0.40
codegen_flags: <defaults>
</compile_context>

<pallas_src>
import jax
import jax.numpy as jnp
from jax.experimental import pallas as pl
from jax.experimental.pallas import tpu as pltpu


# ----------------------------------------------------------------------------
# Shared LSTM gate math (used inside Pallas kernels and in the pure-JAX ref).
# ----------------------------------------------------------------------------
def _lstm_gates(gates, c_prev, H):
    i_g = jax.nn.sigmoid(gates[:, 0:H])
    f_g = jax.nn.sigmoid(gates[:, H:2 * H])
    g_g = jnp.tanh(gates[:, 2 * H:3 * H])
    o_g = jax.nn.sigmoid(gates[:, 3 * H:4 * H])
    c_new = f_g * c_prev + i_g * g_g
    h_new = o_g * jnp.tanh(c_new)
    return h_new, c_new


_VMEM_SPEC = pl.BlockSpec(memory_space=pltpu.MemorySpace.VMEM)


# ----------------------------------------------------------------------------
# Pallas kernel 1: bidirectional LSTM recurrence for one layer.
# Inputs are the precomputed input-gate activations (x @ W_ih + b) for both
# directions; the kernel only does h_prev @ W_hh + gates_in per step.
# ----------------------------------------------------------------------------
def _bilstm_rec_kernel(gin_f_ref, gin_b_ref, whh_f_ref, whh_b_ref,
                       out_f_ref, out_b_ref,
                       hf_ref, cf_ref, hb_ref, cb_ref):
    T, B, G = gin_f_ref.shape
    H = G // 4
    whh_f = whh_f_ref[...]
    whh_b = whh_b_ref[...]

    hf = jnp.zeros((B, H), jnp.float32)
    cf = jnp.zeros((B, H), jnp.float32)
    hb = jnp.zeros((B, H), jnp.float32)
    cb = jnp.zeros((B, H), jnp.float32)

    for t in range(T):                         # static, fully unrolled (T=12)
        # forward direction, time t
        gates_f = gin_f_ref[t] + jnp.dot(hf, whh_f,
                                         preferred_element_type=jnp.float32)
        hf, cf = _lstm_gates(gates_f, cf, H)
        out_f_ref[t] = hf
        # backward direction, time T-1-t
        tb = T - 1 - t
        gates_b = gin_b_ref[tb] + jnp.dot(hb, whh_b,
                                          preferred_element_type=jnp.float32)
        hb, cb = _lstm_gates(gates_b, cb, H)
        out_b_ref[tb] = hb

    hf_ref[...] = hf
    cf_ref[...] = cf
    hb_ref[...] = hb
    cb_ref[...] = cb


def bilstm_layer_pallas(x_seq, pf, pb):
    """One bidirectional LSTM layer. x_seq: (T, B, In)."""
    T, B, In = x_seq.shape
    H = pf['whhT'].shape[0]

    # Hoisted input projection for both directions: one (T*B, In) x (In, 8H).
    x_flat = x_seq.reshape(T * B, In)
    w_cat = jnp.concatenate([pf['wihT'], pb['wihT']], axis=1)     # (In, 8H)
    b_cat = jnp.concatenate([pf['b'], pb['b']], axis=1)           # (1, 8H)
    g = (x_flat @ w_cat + b_cat).reshape(T, B, 8 * H)
    gin_f = g[..., :4 * H]
    gin_b = g[..., 4 * H:]

    out_f, out_b, hf, cf, hb, cb = pl.pallas_call(
        _bilstm_rec_kernel,
        out_shape=(jax.ShapeDtypeStruct((T, B, H), jnp.float32),
                   jax.ShapeDtypeStruct((T, B, H), jnp.float32),
                   jax.ShapeDtypeStruct((B, H), jnp.float32),
                   jax.ShapeDtypeStruct((B, H), jnp.float32),
                   jax.ShapeDtypeStruct((B, H), jnp.float32),
                   jax.ShapeDtypeStruct((B, H), jnp.float32)),
        in_specs=[_VMEM_SPEC] * 4,
        out_specs=(_VMEM_SPEC,) * 6,
    )(gin_f, gin_b, pf['whhT'], pb['whhT'])
    return out_f, out_b, hf, cf, hb, cb


# ----------------------------------------------------------------------------
# Pallas kernel 2: the ENTIRE attention-decoder loop (all target_length steps)
# in a single kernel.  Weights + encoder outputs live in VMEM once; x/h/c are
# carried as values across the unrolled step loop.
# ----------------------------------------------------------------------------
def _attn_decoder_kernel(h_ref, c_ref, enc_ref,
                         xw_ref, xb_ref, attn_wh_ref, comb_wh_ref,
                         wih0_ref, wih_rest_ref, whh_ref, lstm_b_ref,
                         out_w_ref, out_b_ref,
                         preds_ref):
    TL, B, O = preds_ref.shape
    L, _, H2 = h_ref.shape
    T = enc_ref.shape[0]
    ATT = attn_wh_ref.shape[1]            # == 12 == encoder input length

    # Load everything once (VMEM-resident for the whole decode).
    xw = xw_ref[...]                      # (O, ATT + O)  = [attn_wx | comb_wx]
    xb = xb_ref[...]                      # (1, ATT + O)  = [attn_b  | comb_b ]
    attn_wh = attn_wh_ref[...]            # (2H, ATT)
    comb_wh = comb_wh_ref[...]            # (2H, O)
    out_w = out_w_ref[...]                # (2H, O)
    out_b = out_b_ref[...]                # (1, O)
    wihs = [wih0_ref[...]] + [wih_rest_ref[l] for l in range(L - 1)]
    whhs = [whh_ref[l] for l in range(L)]
    lstm_bs = [lstm_b_ref[l] for l in range(L)]
    encs = [enc_ref[tt] for tt in range(T)]          # each (B, 2H)

    hs = [h_ref[l] for l in range(L)]
    cs = [c_ref[l] for l in range(L)]
    x = jnp.zeros((B, O), jnp.float32)

    for t in range(TL):                   # static, fully unrolled decode loop
        # fused x-projection: attention-logit part and attn_combine part
        x_proj = jnp.dot(x, xw, preferred_element_type=jnp.float32) + xb
        logits = x_proj[:, :ATT] + jnp.dot(hs[0], attn_wh,
                                           preferred_element_type=jnp.float32)
        m = jnp.max(logits, axis=1, keepdims=True)
        e = jnp.exp(logits - m)
        attn_w = e * pl.reciprocal(jnp.sum(e, axis=1, keepdims=True), approx=True)

        # context = sum_t attn_w[:, t] * enc[t]   (pure VPU multiply-accumulate)
        ctx = jnp.zeros((B, H2), jnp.float32)
        for tt in range(T):
            ctx = ctx + attn_w[:, tt:tt + 1] * encs[tt]

        comb = x_proj[:, ATT:] + jnp.dot(ctx, comb_wh,
                                         preferred_element_type=jnp.float32)
        inp = jnp.maximum(comb, 0.0)       # ReLU

        # multi-layer LSTM cell (sequence length 1)
        for l in range(L):
            gates = (jnp.dot(inp, wihs[l], preferred_element_type=jnp.float32)
                     + jnp.dot(hs[l], whhs[l], preferred_element_type=jnp.float32)
                     + lstm_bs[l])
            h_new, c_new = _lstm_gates(gates, cs[l], H2)
            hs[l] = h_new
            cs[l] = c_new
            inp = h_new

        x = jnp.dot(inp, out_w, preferred_element_type=jnp.float32) + out_b
        preds_ref[t] = x


def attn_decoder_pallas(h, c, enc_tbh, p, target_length):
    L, B, H2 = h.shape
    O = p['out_w'].shape[1]
    assert enc_tbh.shape[0] == p['attn_wh'].shape[1], \
        "attention produces 12 weights -> encoder length must be 12"
    xw_cat = jnp.concatenate([p['attn_wx'], p['comb_wx']], axis=1)   # (O, 12+O)
    xb_cat = jnp.concatenate([p['attn_b'], p['comb_b']], axis=1)     # (1, 12+O)
    preds = pl.pallas_call(
        _attn_decoder_kernel,
        out_shape=jax.ShapeDtypeStruct((target_length, B, O), jnp.float32),
        in_specs=[_VMEM_SPEC] * 13,
        out_specs=_VMEM_SPEC,
    )(h, c, enc_tbh, xw_cat, xb_cat, p['attn_wh'], p['comb_wh'],
      p['wih0'], p['wih_rest'], p['whh'], p['lstm_b'], p['out_w'], p['out_b'])
    return preds


# ----------------------------------------------------------------------------
# Pure-JAX reference (same math, no Pallas) for correctness checking.
# ----------------------------------------------------------------------------
def _ref_lstm_cell(x, h, c, wihT, whhT, b):
    gates = x @ wihT + h @ whhT + b
    return _lstm_gates(gates, c, h.shape[-1])


def lstm_dir_ref(x_seq, wihT, whhT, b, reverse):
    T, B, _ = x_seq.shape
    H = whhT.shape[0]
    h = jnp.zeros((B, H), jnp.float32)
    c = jnp.zeros((B, H), jnp.float32)
    outs = [None] * T
    order = range(T - 1, -1, -1) if reverse else range(T)
    for s in order:
        h, c = _ref_lstm_cell(x_seq[s], h, c, wihT, whhT, b)
        outs[s] = h
    return jnp.stack(outs, 0), h, c


def attn_decoder_ref(h, c, enc_bth, p, target_length):
    L, B, _ = h.shape
    O = p['out_w'].shape[1]
    hs = [h[l] for l in range(L)]
    cs = [c[l] for l in range(L)]
    x = jnp.zeros((B, O), jnp.float32)
    outs = []
    for _ in range(target_length):
        logits = x @ p['attn_wx'] + hs[0] @ p['attn_wh'] + p['attn_b']
        attn_w = jax.nn.softmax(logits, axis=1)
        ctx = jnp.einsum('bt,bth->bh', attn_w, enc_bth)
        inp = jax.nn.relu(x @ p['comb_wx'] + ctx @ p['comb_wh'] + p['comb_b'])
        for l in range(L):
            wih = p['wih0'] if l == 0 else p['wih_rest'][l - 1]
            hn, cn = _ref_lstm_cell(inp, hs[l], cs[l], wih, p['whh'][l],
                                    p['lstm_b'][l])
            hs[l] = hn
            cs[l] = cn
            inp = hn
        x = inp @ p['out_w'] + p['out_b']
        outs.append(x)
    return jnp.stack(outs, 0)


# ----------------------------------------------------------------------------
# Full Seq2Seq_Attn forward (mirrors the PyTorch module exactly).
# ----------------------------------------------------------------------------
def seq2seq_forward(params, source, target_length, use_pallas=True):
    B, C, T, W = source.shape
    assert T == 12, "attention head produces 12 weights -> input_length must be 12"

    # source.permute(2,0,1,3).reshape(T, B, -1)
    x_seq = jnp.transpose(source, (2, 0, 1, 3)).reshape(T, B, C * W)

    # ---- encoder (bidirectional, multi-layer) ----
    h_list, c_list = [], []
    for layer in params['enc']:
        if use_pallas:
            out_f, out_b, hf, cf, hb, cb = bilstm_layer_pallas(
                x_seq, layer[0], layer[1])
        else:
            out_f, hf, cf = lstm_dir_ref(x_seq, layer[0]['wihT'],
                                         layer[0]['whhT'], layer[0]['b'], False)
            out_b, hb, cb = lstm_dir_ref(x_seq, layer[1]['wihT'],
                                         layer[1]['whhT'], layer[1]['b'], True)
        x_seq = jnp.concatenate([out_f, out_b], axis=2)
        h_list += [hf, hb]
        c_list += [cf, cb]
    enc_out = x_seq                                    # (T, B, 2*hidden)
    h_n = jnp.stack(h_list, 0)                         # torch layout (2L, B, H)
    c_n = jnp.stack(c_list, 0)

    L = len(params['enc'])
    h = jnp.concatenate([h_n[0:L], h_n[-L:]], axis=2)  # (L, B, 2*hidden)
    c = jnp.concatenate([c_n[0:L], c_n[-L:]], axis=2)

    # ---- decoder ----
    if use_pallas:
        preds = attn_decoder_pallas(h, c, enc_out, params, target_length)
    else:
        preds = attn_decoder_ref(h, c, jnp.transpose(enc_out, (1, 0, 2)),
                                 params, target_length)

    outputs = jnp.transpose(preds, (1, 0, 2))          # (B, target_length, O)
    outputs = outputs.reshape(B, target_length, 3, -1)
    outputs = jnp.transpose(outputs, (0, 2, 1, 3))     # (B, 3, target_length, O//3)
    return outputs


# ----------------------------------------------------------------------------
# Deterministic parameter init (synthetic; shapes match the nn.Module).
# ----------------------------------------------------------------------------
def init_params(key, input_dim, hidden_dim, output_dim, num_layers):
    H = hidden_dim
    H2 = 2 * hidden_dim
    O = output_dim
    keys = iter(jax.random.split(key, 256))

    def nxt(shape, scale=0.1):
        return jax.random.normal(next(keys), shape, jnp.float32) * scale

    enc = []
    for l in range(num_layers):
        in_l = input_dim if l == 0 else 2 * H
        layer = []
        for _d in range(2):                            # forward / backward
            layer.append(dict(wihT=nxt((in_l, 4 * H)),
                              whhT=nxt((H, 4 * H)),
                              b=nxt((1, 4 * H))))      # combined b_ih + b_hh
        enc.append(layer)

    if num_layers > 1:
        wih_rest = nxt((num_layers - 1, H2, 4 * H2))
    else:
        wih_rest = jnp.zeros((1, H2, 4 * H2), jnp.float32)  # unused placeholder

    return dict(
        enc=enc,
        # attn: Linear(2H + O, 12), split into x-part and h-part
        attn_wx=nxt((O, 12)), attn_wh=nxt((H2, 12)), attn_b=nxt((1, 12)),
        # attn_combine: Linear(2H + O, O)
        comb_wx=nxt((O, O)), comb_wh=nxt((H2, O)), comb_b=nxt((1, O)),
        # decoder LSTM (input O -> hidden 2H, num_layers)
        wih0=nxt((O, 4 * H2)), wih_rest=wih_rest,
        whh=nxt((num_layers, H2, 4 * H2)), lstm_b=nxt((num_layers, 1, 4 * H2)),
        # out: Linear(2H, O)
        out_w=nxt((H2, O)), out_b=nxt((1, O)),
    )


if __name__ == "__main__":
    B, C, T, W = 2, 4, 12, 4          # input_length must be 12 (attn -> 12 weights)
    hidden_dim = 16
    output_dim = 6                    # must be divisible by 3 (final reshape)
    num_layers = 1
    target_length = 5
    input_dim = C * W

    key = jax.random.PRNGKey(0)
    k_src, k_par = jax.random.split(key)
    source = jax.random.normal(k_src, (B, C, T, W), jnp.float32)
    params = init_params(k_par, input_dim, hidden_dim, output_dim, num_layers)

    fwd = jax.jit(lambda p, s: seq2seq_forward(p, s, target_length, use_pallas=True))
    out = jax.block_until_ready(fwd(params, source))

    ref = jax.block_until_ready(
        seq2seq_forward(params, source, target_length, use_pallas=False))

    assert out.shape == (B, 3, target_length, output_dim // 3), out.shape
    err = float(jnp.max(jnp.abs(out - ref)))
    assert jnp.allclose(out, ref, rtol=5e-3, atol=5e-3), (
        "mismatch vs reference, max abs err = %e" % err)

    print("KERNEL_OK")
</pallas_src>

<mosaic_0001>
module attributes {stable_mosaic.version = 11 : i64} {
  func.func @_bilstm_rec_kernel(%arg0: memref<12x2x64xf32, #tpu.memory_space<vmem>>, %arg1: memref<12x2x64xf32, #tpu.memory_space<vmem>>, %arg2: memref<16x64xf32, #tpu.memory_space<vmem>>, %arg3: memref<16x64xf32, #tpu.memory_space<vmem>>, %arg4: memref<12x2x16xf32, #tpu.memory_space<vmem>>, %arg5: memref<12x2x16xf32, #tpu.memory_space<vmem>>, %arg6: memref<2x16xf32, #tpu.memory_space<vmem>>, %arg7: memref<2x16xf32, #tpu.memory_space<vmem>>, %arg8: memref<2x16xf32, #tpu.memory_space<vmem>>, %arg9: memref<2x16xf32, #tpu.memory_space<vmem>>) attributes {dimension_semantics = [], scalar_prefetch = 0 : i64, scratch_operands = 0 : i64, tpu.core_type = #tpu.core_type<tc>} {
    %c0 = arith.constant 0 : index
    %c0_0 = arith.constant 0 : index
    %0 = vector.load %arg2[%c0, %c0_0] : memref<16x64xf32, #tpu.memory_space<vmem>>, vector<16x64xf32>
    %c0_1 = arith.constant 0 : index
    %c0_2 = arith.constant 0 : index
    %1 = vector.load %arg3[%c0_1, %c0_2] : memref<16x64xf32, #tpu.memory_space<vmem>>, vector<16x64xf32>
    %cst = arith.constant 0.000000e+00 : f32
    %2 = vector.broadcast %cst : f32 to vector<2x16xf32>
    %cst_3 = arith.constant 0.000000e+00 : f32
    %3 = vector.broadcast %cst_3 : f32 to vector<2x16xf32>
    %cst_4 = arith.constant 0.000000e+00 : f32
    %4 = vector.broadcast %cst_4 : f32 to vector<2x16xf32>
    %cst_5 = arith.constant 0.000000e+00 : f32
    %5 = vector.broadcast %cst_5 : f32 to vector<2x16xf32>
    %c0_6 = arith.constant 0 : index
    %c0_7 = arith.constant 0 : index
    %c0_8 = arith.constant 0 : index
    %6 = vector.load %arg0[%c0_6, %c0_7, %c0_8] : memref<12x2x64xf32, #tpu.memory_space<vmem>>, vector<1x2x64xf32>
    %7 = vector.shape_cast %6 : vector<1x2x64xf32> to vector<2x64xf32>
    %cst_9 = arith.constant dense<0.000000e+00> : vector<2x64xf32>
    %8 = tpu.matmul %2, %0, %cst_9 {dimension_numbers = #tpu.dot_dimension_numbers<[1], [0], [0], [1], [0, 0, 1, 1], [], []>} : vector<2x16xf32>, vector<16x64xf32>, vector<2x64xf32> -> vector<2x64xf32>
    %9 = arith.addf %7, %8 : vector<2x64xf32>
    %10 = vector.extract_strided_slice %9 {offsets = [0, 0], sizes = [2, 16], strides = [1, 1]} : vector<2x64xf32> to vector<2x16xf32>
    %11 = arith.negf %10 : vector<2x16xf32>
    %12 = math.exp %11 : vector<2x16xf32>
    %cst_10 = arith.constant 1.000000e+00 : f32
    %13 = vector.broadcast %cst_10 : f32 to vector<2x16xf32>
    %14 = arith.addf %13, %12 : vector<2x16xf32>
    %15 = arith.divf %13, %14 : vector<2x16xf32>
    %16 = vector.extract_strided_slice %9 {offsets = [0, 16], sizes = [2, 16], strides = [1, 1]} : vector<2x64xf32> to vector<2x16xf32>
    %17 = arith.negf %16 : vector<2x16xf32>
    %18 = math.exp %17 : vector<2x16xf32>
    %cst_11 = arith.constant 1.000000e+00 : f32
    %19 = vector.broadcast %cst_11 : f32 to vector<2x16xf32>
    %20 = arith.addf %19, %18 : vector<2x16xf32>
    %21 = arith.divf %19, %20 : vector<2x16xf32>
    %22 = vector.extract_strided_slice %9 {offsets = [0, 32], sizes = [2, 16], strides = [1, 1]} : vector<2x64xf32> to vector<2x16xf32>
    %23 = math.tanh %22 : vector<2x16xf32>
    %24 = vector.extract_strided_slice %9 {offsets = [0, 48], sizes = [2, 16], strides = [1, 1]} : vector<2x64xf32> to vector<2x16xf32>
    %25 = arith.negf %24 : vector<2x16xf32>
    %26 = math.exp %25 : vector<2x16xf32>
    %cst_12 = arith.constant 1.000000e+00 : f32
    %27 = vector.broadcast %cst_12 : f32 to vector<2x16xf32>
    %28 = arith.addf %27, %26 : vector<2x16xf32>
    %29 = arith.divf %27, %28 : vector<2x16xf32>
    %30 = arith.mulf %21, %3 : vector<2x16xf32>
    %31 = arith.mulf %15, %23 : vector<2x16xf32>
    %32 = arith.addf %30, %31 : vector<2x16xf32>
    %33 = math.tanh %32 : vector<2x16xf32>
    %34 = arith.mulf %29, %33 : vector<2x16xf32>
    %c0_13 = arith.constant 0 : index
    %c0_14 = arith.constant 0 : index
    %c0_15 = arith.constant 0 : index
    %35 = vector.load %arg4[%c0_13, %c0_14, %c0_15] : memref<12x2x16xf32, #tpu.memory_space<vmem>>, vector<1x2x16xf32>
    %36 = vector.shape_cast %35 : vector<1x2x16xf32> to vector<2x16xf32>
    %37 = vector.shape_cast %34 : vector<2x16xf32> to vector<1x2x16xf32>
    tpu.vector_store %arg4[%c0_13, %c0_14, %c0_15], %37 {strides = array<i32>} : memref<12x2x16xf32, #tpu.memory_space<vmem>>, vector<1x2x16xf32>,
    %c11 = arith.constant 11 : index
    %c0_16 = arith.constant 0 : index
    %c0_17 = arith.constant 0 : index
    %38 = vector.load %arg1[%c11, %c0_16, %c0_17] : memref<12x2x64xf32, #tpu.memory_space<vmem>>, vector<1x2x64xf32>
    %39 = vector.shape_cast %38 : vector<1x2x64xf32> to vector<2x64xf32>
    %cst_18 = arith.constant dense<0.000000e+00> : vector<2x64xf32>
    %40 = tpu.matmul %4, %1, %cst_18 {dimension_numbers = #tpu.dot_dimension_numbers<[1], [0], [0], [1], [0, 0, 1, 1], [], []>} : vector<2x16xf32>, vector<16x64xf32>, vector<2x64xf32> -> vector<2x64xf32>
    %41 = arith.addf %39, %40 : vector<2x64xf32>
    %42 = vector.extract_strided_slice %41 {offsets = [0, 0], sizes = [2, 16], strides = [1, 1]} : vector<2x64xf32> to vector<2x16xf32>
    %43 = arith.negf %42 : vector<2x16xf32>
    %44 = math.exp %43 : vector<2x16xf32>
    %cst_19 = arith.constant 1.000000e+00 : f32
    %45 = vector.broadcast %cst_19 : f32 to vector<2x16xf32>
    %46 = arith.addf %45, %44 : vector<2x16xf32>
    %47 = arith.divf %45, %46 : vector<2x16xf32>
    %48 = vector.extract_strided_slice %41 {offsets = [0, 16], sizes = [2, 16], strides = [1, 1]} : vector<2x64xf32> to vector<2x16xf32>
    %49 = arith.negf %48 : vector<2x16xf32>
    %50 = math.exp %49 : vector<2x16xf32>
    %cst_20 = arith.constant 1.000000e+00 : f32
    %51 = vector.broadcast %cst_20 : f32 to vector<2x16xf32>
    %52 = arith.addf %51, %50 : vector<2x16xf32>
    %53 = arith.divf %51, %52 : vector<2x16xf32>
    %54 = vector.extract_strided_slice %41 {offsets = [0, 32], sizes = [2, 16], strides = [1, 1]} : vector<2x64xf32> to vector<2x16xf32>
    %55 = math.tanh %54 : vector<2x16xf32>
    %56 = vector.extract_strided_slice %41 {offsets = [0, 48], sizes = [2, 16], strides = [1, 1]} : vector<2x64xf32> to vector<2x16xf32>
    %57 = arith.negf %56 : vector<2x16xf32>
    %58 = math.exp %57 : vector<2x16xf32>
    %cst_21 = arith.constant 1.000000e+00 : f32
    %59 = vector.broadcast %cst_21 : f32 to vector<2x16xf32>
    %60 = arith.addf %59, %58 : vector<2x16xf32>
    %61 = arith.divf %59, %60 : vector<2x16xf32>
    %62 = arith.mulf %53, %5 : vector<2x16xf32>
    %63 = arith.mulf %47, %55 : vector<2x16xf32>
    %64 = arith.addf %62, %63 : vector<2x16xf32>
    %65 = math.tanh %64 : vector<2x16xf32>
    %66 = arith.mulf %61, %65 : vector<2x16xf32>
    %c11_22 = arith.constant 11 : index
    %c0_23 = arith.constant 0 : index
    %c0_24 = arith.constant 0 : index
    %67 = vector.load %arg5[%c11_22, %c0_23, %c0_24] : memref<12x2x16xf32, #tpu.memory_space<vmem>>, vector<1x2x16xf32>
    %68 = vector.shape_cast %67 : vector<1x2x16xf32> to vector<2x16xf32>
    %69 = vector.shape_cast %66 : vector<2x16xf32> to vector<1x2x16xf32>
    tpu.vector_store %arg5[%c11_22, %c0_23, %c0_24], %69 {strides = array<i32>} : memref<12x2x16xf32, #tpu.memory_space<vmem>>, vector<1x2x16xf32>,
    %c1 = arith.constant 1 : index
    %c0_25 = arith.constant 0 : index
    %c0_26 = arith.constant 0 : index
    %70 = vector.load %arg0[%c1, %c0_25, %c0_26] : memref<12x2x64xf32, #tpu.memory_space<vmem>>, vector<1x2x64xf32>
    %71 = vector.shape_cast %70 : vector<1x2x64xf32> to vector<2x64xf32>
    %cst_27 = arith.constant dense<0.000000e+00> : vector<2x64xf32>
    %72 = tpu.matmul %34, %0, %cst_27 {dimension_numbers = #tpu.dot_dimension_numbers<[1], [0], [0], [1], [0, 0, 1, 1], [], []>} : vector<2x16xf32>, vector<16x64xf32>, vector<2x64xf32> -> vector<2x64xf32>
    %73 = arith.addf %71, %72 : vector<2x64xf32>
    %74 = vector.extract_strided_slice %73 {offsets = [0, 0], sizes = [2, 16], strides = [1, 1]} : vector<2x64xf32> to vector<2x16xf32>
    %75 = arith.negf %74 : vector<2x16xf32>
    %76 = math.exp %75 : vector<2x16xf32>
    %cst_28 = arith.constant 1.000000e+00 : f32
    %77 = vector.broadcast %cst_28 : f32 to vector<2x16xf32>
    %78 = arith.addf %77, %76 : vector<2x16xf32>
    %79 = arith.divf %77, %78 : vector<2x16xf32>
    %80 = vector.extract_strided_slice %73 {offsets = [0, 16], sizes = [2, 16], strides = [1, 1]} : vector<2x64xf32> to vector<2x16xf32>
    %81 = arith.negf %80 : vector<2x16xf32>
    %82 = math.exp %81 : vector<2x16xf32>
    %cst_29 = arith.constant 1.000000e+00 : f32
    %83 = vector.broadcast %cst_29 : f32 to vector<2x16xf32>
    %84 = arith.addf %83, %82 : vector<2x16xf32>
    %85 = arith.divf %83, %84 : vector<2x16xf32>
    %86 = vector.extract_strided_slice %73 {offsets = [0, 32], sizes = [2, 16], strides = [1, 1]} : vector<2x64xf32> to vector<2x16xf32>
    %87 = math.tanh %86 : vector<2x16xf32>
    %88 = vector.extract_strided_slice %73 {offsets = [0, 48], sizes = [2, 16], strides = [1, 1]} : vector<2x64xf32> to vector<2x16xf32>
    %89 = arith.negf %88 : vector<2x16xf32>
    %90 = math.exp %89 : vector<2x16xf32>
    %cst_30 = arith.constant 1.000000e+00 : f32
    %91 = vector.broadcast %cst_30 : f32 to vector<2x16xf32>
    %92 = arith.addf %91, %90 : vector<2x16xf32>
    %93 = arith.divf %91, %92 : vector<2x16xf32>
    %94 = arith.mulf %85, %32 : vector<2x16xf32>
    %95 = arith.mulf %79, %87 : vector<2x16xf32>
    %96 = arith.addf %94, %95 : vector<2x16xf32>
    %97 = math.tanh %96 : vector<2x16xf32>
    %98 = arith.mulf %93, %97 : vector<2x16xf32>
    %c1_31 = arith.constant 1 : index
    %c0_32 = arith.constant 0 : index
    %c0_33 = arith.constant 0 : index
    %99 = vector.load %arg4[%c1_31, %c0_32, %c0_33] : memref<12x2x16xf32, #tpu.memory_space<vmem>>, vector<1x2x16xf32>
    %100 = vector.shape_cast %99 : vector<1x2x16xf32> to vector<2x16xf32>
    %101 = vector.shape_cast %98 : vector<2x16xf32> to vector<1x2x16xf32>
    tpu.vector_store %arg4[%c1_31, %c0_32, %c0_33], %101 {strides = array<i32>} : memref<12x2x16xf32, #tpu.memory_space<vmem>>, vector<1x2x16xf32>,
    %c10 = arith.constant 10 : index
    %c0_34 = arith.constant 0 : index
    %c0_35 = arith.constant 0 : index
    %102 = vector.load %arg1[%c10, %c0_34, %c0_35] : memref<12x2x64xf32, #tpu.memory_space<vmem>>, vector<1x2x64xf32>
    %103 = vector.shape_cast %102 : vector<1x2x64xf32> to vector<2x64xf32>
    %cst_36 = arith.constant dense<0.000000e+00> : vector<2x64xf32>
    %104 = tpu.matmul %66, %1, %cst_36 {dimension_numbers = #tpu.dot_dimension_numbers<[1], [0], [0], [1], [0, 0, 1, 1], [], []>} : vector<2x16xf32>, vector<16x64xf32>, vector<2x64xf32> -> vector<2x64xf32>
    %105 = arith.addf %103, %104 : vector<2x64xf32>
    %106 = vector.extract_strided_slice %105 {offsets = [0, 0], sizes = [2, 16], strides = [1, 1]} : vector<2x64xf32> to vector<2x16xf32>
    %107 = arith.negf %106 : vector<2x16xf32>
    %108 = math.exp %107 : vector<2x16xf32>
    %cst_37 = arith.constant 1.000000e+00 : f32
    %109 = vector.broadcast %cst_37 : f32 to vector<2x16xf32>
    %110 = arith.addf %109, %108 : vector<2x16xf32>
    %111 = arith.divf %109, %110 : vector<2x16xf32>
    %112 = vector.extract_strided_slice %105 {offsets = [0, 16], sizes = [2, 16], strides = [1, 1]} : vector<2x64xf32> to vector<2x16xf32>
    %113 = arith.negf %112 : vector<2x16xf32>
    %114 = math.exp %113 : vector<2x16xf32>
    %cst_38 = arith.constant 1.000000e+00 : f32
    %115 = vector.broadcast %cst_38 : f32 to vector<2x16xf32>
    %116 = arith.addf %115, %114 : vector<2x16xf32>
    %117 = arith.divf %115, %116 : vector<2x16xf32>
    %118 = vector.extract_strided_slice %105 {offsets = [0, 32], sizes = [2, 16], strides = [1, 1]} : vector<2x64xf32> to vector<2x16xf32>
    %119 = math.tanh %118 : vector<2x16xf32>
    %120 = vector.extract_strided_slice %105 {offsets = [0, 48], sizes = [2, 16], strides = [1, 1]} : vector<2x64xf32> to vector<2x16xf32>
    %121 = arith.negf %120 : vector<2x16xf32>
    %122 = math.exp %121 : vector<2x16xf32>
    %cst_39 = arith.constant 1.000000e+00 : f32
    %123 = vector.broadcast %cst_39 : f32 to vector<2x16xf32>
    %124 = arith.addf %123, %122 : vector<2x16xf32>
    %125 = arith.divf %123, %124 : vector<2x16xf32>
    %126 = arith.mulf %117, %64 : vector<2x16xf32>
    %127 = arith.mulf %111, %119 : vector<2x16xf32>
    %128 = arith.addf %126, %127 : vector<2x16xf32>
    %129 = math.tanh %128 : vector<2x16xf32>
    %130 = arith.mulf %125, %129 : vector<2x16xf32>
    %c10_40 = arith.constant 10 : index
    %c0_41 = arith.constant 0 : index
    %c0_42 = arith.constant 0 : index
    %131 = vector.load %arg5[%c10_40, %c0_41, %c0_42] : memref<12x2x16xf32, #tpu.memory_space<vmem>>, vector<1x2x16xf32>
    %132 = vector.shape_cast %131 : vector<1x2x16xf32> to vector<2x16xf32>
    %133 = vector.shape_cast %130 : vector<2x16xf32> to vector<1x2x16xf32>
    tpu.vector_store %arg5[%c10_40, %c0_41, %c0_42], %133 {strides = array<i32>} : memref<12x2x16xf32, #tpu.memory_space<vmem>>, vector<1x2x16xf32>,
    %c2 = arith.constant 2 : index
    %c0_43 = arith.constant 0 : index
    %c0_44 = arith.constant 0 : index
    %134 = vector.load %arg0[%c2, %c0_43, %c0_44] : memref<12x2x64xf32, #tpu.memory_space<vmem>>, vector<1x2x64xf32>
    %135 = vector.shape_cast %134 : vector<1x2x64xf32> to vector<2x64xf32>
    %cst_45 = arith.constant dense<0.000000e+00> : vector<2x64xf32>
    %136 = tpu.matmul %98, %0, %cst_45 {dimension_numbers = #tpu.dot_dimension_numbers<[1], [0], [0], [1], [0, 0, 1, 1], [], []>} : vector<2x16xf32>, vector<16x64xf32>, vector<2x64xf32> -> vector<2x64xf32>
    %137 = arith.addf %135, %136 : vector<2x64xf32>
    %138 = vector.extract_strided_slice %137 {offsets = [0, 0], sizes = [2, 16], strides = [1, 1]} : vector<2x64xf32> to vector<2x16xf32>
    %139 = arith.negf %138 : vector<2x16xf32>
    %140 = math.exp %139 : vector<2x16xf32>
    %cst_46 = arith.constant 1.000000e+00 : f32
    %141 = vector.broadcast %cst_46 : f32 to vector<2x16xf32>
    %142 = arith.addf %141, %140 : vector<2x16xf32>
    %143 = arith.divf %141, %142 : vector<2x16xf32>
    %144 = vector.extract_strided_slice %137 {offsets = [0, 16], sizes = [2, 16], strides = [1, 1]} : vector<2x64xf32> to vector<2x16xf32>
    %145 = arith.negf %144 : vector<2x16xf32>
    %146 = math.exp %145 : vector<2x16xf32>
    %cst_47 = arith.constant 1.000000e+00 : f32
    %147 = vector.broadcast %cst_47 : f32 to vector<2x16xf32>
    %148 = arith.addf %147, %146 : vector<2x16xf32>
    %149 = arith.divf %147, %148 : vector<2x16xf32>
    %150 = vector.extract_strided_slice %137 {offsets = [0, 32], sizes = [2, 16], strides = [1, 1]} : vector<2x64xf32> to vector<2x16xf32>
    %151 = math.tanh %150 : vector<2x16xf32>
    %152 = vector.extract_strided_slice %137 {offsets = [0, 48], sizes = [2, 16], strides = [1, 1]} : vector<2x64xf32> to vector<2x16xf32>
    %153 = arith.negf %152 : vector<2x16xf32>
    %154 = math.exp %153 : vector<2x16xf32>
    %cst_48 = arith.constant 1.000000e+00 : f32
    %155 = vector.broadcast %cst_48 : f32 to vector<2x16xf32>
    %156 = arith.addf %155, %154 : vector<2x16xf32>
    %157 = arith.divf %155, %156 : vector<2x16xf32>
    %158 = arith.mulf %149, %96 : vector<2x16xf32>
    %159 = arith.mulf %143, %151 : vector<2x16xf32>
    %160 = arith.addf %158, %159 : vector<2x16xf32>
    %161 = math.tanh %160 : vector<2x16xf32>
    %162 = arith.mulf %157, %161 : vector<2x16xf32>
    %c2_49 = arith.constant 2 : index
    %c0_50 = arith.constant 0 : index
    %c0_51 = arith.constant 0 : index
    %163 = vector.load %arg4[%c2_49, %c0_50, %c0_51] : memref<12x2x16xf32, #tpu.memory_space<vmem>>, vector<1x2x16xf32>
    %164 = vector.shape_cast %163 : vector<1x2x16xf32> to vector<2x16xf32>
    %165 = vector.shape_cast %162 : vector<2x16xf32> to vector<1x2x16xf32>
    tpu.vector_store %arg4[%c2_49, %c0_50, %c0_51], %165 {strides = array<i32>} : memref<12x2x16xf32, #tpu.memory_space<vmem>>, vector<1x2x16xf32>,
    %c9 = arith.constant 9 : index
    %c0_52 = arith.constant 0 : index
    %c0_53 = arith.constant 0 : index
    %166 = vector.load %arg1[%c9, %c0_52, %c0_53] : memref<12x2x64xf32, #tpu.memory_space<vmem>>, vector<1x2x64xf32>
    %167 = vector.shape_cast %166 : vector<1x2x64xf32> to vector<2x64xf32>
    %cst_54 = arith.constant dense<0.000000e+00> : vector<2x64xf32>
    %168 = tpu.matmul %130, %1, %cst_54 {dimension_numbers = #tpu.dot_dimension_numbers<[1], [0], [0], [1], [0, 0, 1, 1], [], []>} : vector<2x16xf32>, vector<16x64xf32>, vector<2x64xf32> -> vector<2x64xf32>
    %169 = arith.addf %167, %168 : vector<2x64xf32>
    %170 = vector.extract_strided_slice %169 {offsets = [0, 0], sizes = [2, 16], strides = [1, 1]} : vector<2x64xf32> to vector<2x16xf32>
    %171 = arith.negf %170 : vector<2x16xf32>
    %172 = math.exp %171 : vector<2x16xf32>
    %cst_55 = arith.constant 1.000000e+00 : f32
    %173 = vector.broadcast %cst_55 : f32 to vector<2x16xf32>
    %174 = arith.addf %173, %172 : vector<2x16xf32>
    %175 = arith.divf %173, %174 : vector<2x16xf32>
    %176 = vector.extract_strided_slice %169 {offsets = [0, 16], sizes = [2, 16], strides = [1, 1]} : vector<2x64xf32> to vector<2x16xf32>
    %177 = arith.negf %176 : vector<2x16xf32>
    %178 = math.exp %177 : vector<2x16xf32>
    %cst_56 = arith.constant 1.000000e+00 : f32
    %179 = vector.broadcast %cst_56 : f32 to vector<2x16xf32>
    %180 = arith.addf %179, %178 : vector<2x16xf32>
    %181 = arith.divf %179, %180 : vector<2x16xf32>
    %182 = vector.extract_strided_slice %169 {offsets = [0, 32], sizes = [2, 16], strides = [1, 1]} : vector<2x64xf32> to vector<2x16xf32>
    %183 = math.tanh %182 : vector<2x16xf32>
    %184 = vector.extract_strided_slice %169 {offsets = [0, 48], sizes = [2, 16], strides = [1, 1]} : vector<2x64xf32> to vector<2x16xf32>
    %185 = arith.negf %184 : vector<2x16xf32>
    %186 = math.exp %185 : vector<2x16xf32>
    %cst_57 = arith.constant 1.000000e+00 : f32
    %187 = vector.broadcast %cst_57 : f32 to vector<2x16xf32>
    %188 = arith.addf %187, %186 : vector<2x16xf32>
    %189 = arith.divf %187, %188 : vector<2x16xf32>
    %190 = arith.mulf %181, %128 : vector<2x16xf32>
    %191 = arith.mulf %175, %183 : vector<2x16xf32>
    %192 = arith.addf %190, %191 : vector<2x16xf32>
    %193 = math.tanh %192 : vector<2x16xf32>
    %194 = arith.mulf %189, %193 : vector<2x16xf32>
    %c9_58 = arith.constant 9 : index
    %c0_59 = arith.constant 0 : index
    %c0_60 = arith.constant 0 : index
    %195 = vector.load %arg5[%c9_58, %c0_59, %c0_60] : memref<12x2x16xf32, #tpu.memory_space<vmem>>, vector<1x2x16xf32>
    %196 = vector.shape_cast %195 : vector<1x2x16xf32> to vector<2x16xf32>
    %197 = vector.shape_cast %194 : vector<2x16xf32> to vector<1x2x16xf32>
    tpu.vector_store %arg5[%c9_58, %c0_59, %c0_60], %197 {strides = array<i32>} : memref<12x2x16xf32, #tpu.memory_space<vmem>>, vector<1x2x16xf32>,
    %c3 = arith.constant 3 : index
    %c0_61 = arith.constant 0 : index
    %c0_62 = arith.constant 0 : index
    %198 = vector.load %arg0[%c3, %c0_61, %c0_62] : memref<12x2x64xf32, #tpu.memory_space<vmem>>, vector<1x2x64xf32>
    %199 = vector.shape_cast %198 : vector<1x2x64xf32> to vector<2x64xf32>
    %cst_63 = arith.constant dense<0.000000e+00> : vector<2x64xf32>
    %200 = tpu.matmul %162, %0, %cst_63 {dimension_numbers = #tpu.dot_dimension_numbers<[1], [0], [0], [1], [0, 0, 1, 1], [], []>} : vector<2x16xf32>, vector<16x64xf32>, vector<2x64xf32> -> vector<2x64xf32>
    %201 = arith.addf %199, %200 : vector<2x64xf32>
    %202 = vector.extract_strided_slice %201 {offsets = [0, 0], sizes = [2, 16], strides = [1, 1]} : vector<2x64xf32> to vector<2x16xf32>
    %203 = arith.negf %202 : vector<2x16xf32>
    %204 = math.exp %203 : vector<2x16xf32>
    %cst_64 = arith.constant 1.000000e+00 : f32
    %205 = vector.broadcast %cst_64 : f32 to vector<2x16xf32>
    %206 = arith.addf %205, %204 : vector<2x16xf32>
    %207 = arith.divf %205, %206 : vector<2x16xf32>
    %208 = vector.extract_strided_slice %201 {offsets = [0, 16], sizes = [2, 16], strides = [1, 1]} : vector<2x64xf32> to vector<2x16xf32>
    %209 = arith.negf %208 : vector<2x16xf32>
    %210 = math.exp %209 : vector<2x16xf32>
    %cst_65 = arith.constant 1.000000e+00 : f32
    %211 = vector.broadcast %cst_65 : f32 to vector<2x16xf32>
    %212 = arith.addf %211, %210 : vector<2x16xf32>
    %213 = arith.divf %211, %212 : vector<2x16xf32>
    %214 = vector.extract_strided_slice %201 {offsets = [0, 32], sizes = [2, 16], strides = [1, 1]} : vector<2x64xf32> to vector<2x16xf32>
    %215 = math.tanh %214 : vector<2x16xf32>
    %216 = vector.extract_strided_slice %201 {offsets = [0, 48], sizes = [2, 16], strides = [1, 1]} : vector<2x64xf32> to vector<2x16xf32>
    %217 = arith.negf %216 : vector<2x16xf32>
    %218 = math.exp %217 : vector<2x16xf32>
    %cst_66 = arith.constant 1.000000e+00 : f32
    %219 = vector.broadcast %cst_66 : f32 to vector<2x16xf32>
    %220 = arith.addf %219, %218 : vector<2x16xf32>
    %221 = arith.divf %219, %220 : vector<2x16xf32>
    %222 = arith.mulf %213, %160 : vector<2x16xf32>
    %223 = arith.mulf %207, %215 : vector<2x16xf32>
    %224 = arith.addf %222, %223 : vector<2x16xf32>
    %225 = math.tanh %224 : vector<2x16xf32>
    %226 = arith.mulf %221, %225 : vector<2x16xf32>
    %c3_67 = arith.constant 3 : index
    %c0_68 = arith.constant 0 : index
    %c0_69 = arith.constant 0 : index
    %227 = vector.load %arg4[%c3_67, %c0_68, %c0_69] : memref<12x2x16xf32, #tpu.memory_space<vmem>>, vector<1x2x16xf32>
    %228 = vector.shape_cast %227 : vector<1x2x16xf32> to vector<2x16xf32>
    %229 = vector.shape_cast %226 : vector<2x16xf32> to vector<1x2x16xf32>
    tpu.vector_store %arg4[%c3_67, %c0_68, %c0_69], %229 {strides = array<i32>} : memref<12x2x16xf32, #tpu.memory_space<vmem>>, vector<1x2x16xf32>,
    %c8 = arith.constant 8 : index
    %c0_70 = arith.constant 0 : index
    %c0_71 = arith.constant 0 : index
    %230 = vector.load %arg1[%c8, %c0_70, %c0_71] : memref<12x2x64xf32, #tpu.memory_space<vmem>>, vector<1x2x64xf32>
    %231 = vector.shape_cast %230 : vector<1x2x64xf32> to vector<2x64xf32>
    %cst_72 = arith.constant dense<0.000000e+00> : vector<2x64xf32>
    %232 = tpu.matmul %194, %1, %cst_72 {dimension_numbers = #tpu.dot_dimension_numbers<[1], [0], [0], [1], [0, 0, 1, 1], [], []>} : vector<2x16xf32>, vector<16x64xf32>, vector<2x64xf32> -> vector<2x64xf32>
    %233 = arith.addf %231, %232 : vector<2x64xf32>
    %234 = vector.extract_strided_slice %233 {offsets = [0, 0], sizes = [2, 16], strides = [1, 1]} : vector<2x64xf32> to vector<2x16xf32>
    %235 = arith.negf %234 : vector<2x16xf32>
    %236 = math.exp %235 : vector<2x16xf32>
    %cst_73 = arith.constant 1.000000e+00 : f32
    %237 = vector.broadcast %cst_73 : f32 to vector<2x16xf32>
    %238 = arith.addf %237, %236 : vector<2x16xf32>
    %239 = arith.divf %237, %238 : vector<2x16xf32>
    %240 = vector.extract_strided_slice %233 {offsets = [0, 16], sizes = [2, 16], strides = [1, 1]} : vector<2x64xf32> to vector<2x16xf32>
    %241 = arith.negf %240 : vector<2x16xf32>
    %242 = math.exp %241 : vector<2x16xf32>
    %cst_74 = arith.constant 1.000000e+00 : f32
    %243 = vector.broadcast %cst_74 : f32 to vector<2x16xf32>
    %244 = arith.addf %243, %242 : vector<2x16xf32>
    %245 = arith.divf %243, %244 : vector<2x16xf32>
    %246 = vector.extract_strided_slice %233 {offsets = [0, 32], sizes = [2, 16], strides = [1, 1]} : vector<2x64xf32> to vector<2x16xf32>
    %247 = math.tanh %246 : vector<2x16xf32>
    %248 = vector.extract_strided_slice %233 {offsets = [0, 48], sizes = [2, 16], strides = [1, 1]} : vector<2x64xf32> to vector<2x16xf32>
    %249 = arith.negf %248 : vector<2x16xf32>
    %250 = math.exp %249 : vector<2x16xf32>
    %cst_75 = arith.constant 1.000000e+00 : f32
    %251 = vector.broadcast %cst_75 : f32 to vector<2x16xf32>
    %252 = arith.addf %251, %250 : vector<2x16xf32>
    %253 = arith.divf %251, %252 : vector<2x16xf32>
    %254 = arith.mulf %245, %192 : vector<2x16xf32>
    %255 = arith.mulf %239, %247 : vector<2x16xf32>
    %256 = arith.addf %254, %255 : vector<2x16xf32>
    %257 = math.tanh %256 : vector<2x16xf32>
    %258 = arith.mulf %253, %257 : vector<2x16xf32>
    %c8_76 = arith.constant 8 : index
    %c0_77 = arith.constant 0 : index
    %c0_78 = arith.constant 0 : index
    %259 = vector.load %arg5[%c8_76, %c0_77, %c0_78] : memref<12x2x16xf32, #tpu.memory_space<vmem>>, vector<1x2x16xf32>
    %260 = vector.shape_cast %259 : vector<1x2x16xf32> to vector<2x16xf32>
    %261 = vector.shape_cast %258 : vector<2x16xf32> to vector<1x2x16xf32>
    tpu.vector_store %arg5[%c8_76, %c0_77, %c0_78], %261 {strides = array<i32>} : memref<12x2x16xf32, #tpu.memory_space<vmem>>, vector<1x2x16xf32>,
    %c4 = arith.constant 4 : index
    %c0_79 = arith.constant 0 : index
    %c0_80 = arith.constant 0 : index
    %262 = vector.load %arg0[%c4, %c0_79, %c0_80] : memref<12x2x64xf32, #tpu.memory_space<vmem>>, vector<1x2x64xf32>
    %263 = vector.shape_cast %262 : vector<1x2x64xf32> to vector<2x64xf32>
    %cst_81 = arith.constant dense<0.000000e+00> : vector<2x64xf32>
    %264 = tpu.matmul %226, %0, %cst_81 {dimension_numbers = #tpu.dot_dimension_numbers<[1], [0], [0], [1], [0, 0, 1, 1], [], []>} : vector<2x16xf32>, vector<16x64xf32>, vector<2x64xf32> -> vector<2x64xf32>
    %265 = arith.addf %263, %264 : vector<2x64xf32>
    %266 = vector.extract_strided_slice %265 {offsets = [0, 0], sizes = [2, 16], strides = [1, 1]} : vector<2x64xf32> to vector<2x16xf32>
    %267 = arith.negf %266 : vector<2x16xf32>
    %268 = math.exp %267 : vector<2x16xf32>
    %cst_82 = arith.constant 1.000000e+00 : f32
    %269 = vector.broadcast %cst_82 : f32 to vector<2x16xf32>
    %270 = arith.addf %269, %268 : vector<2x16xf32>
    %271 = arith.divf %269, %270 : vector<2x16xf32>
    %272 = vector.extract_strided_slice %265 {offsets = [0, 16], sizes = [2, 16], strides = [1, 1]} : vector<2x64xf32> to vector<2x16xf32>
    %273 = arith.negf %272 : vector<2x16xf32>
    %274 = math.exp %273 : vector<2x16xf32>
    %cst_83 = arith.constant 1.000000e+00 : f32
    %275 = vector.broadcast %cst_83 : f32 to vector<2x16xf32>
    %276 = arith.addf %275, %274 : vector<2x16xf32>
    %277 = arith.divf %275, %276 : vector<2x16xf32>
    %278 = vector.extract_strided_slice %265 {offsets = [0, 32], sizes = [2, 16], strides = [1, 1]} : vector<2x64xf32> to vector<2x16xf32>
    %279 = math.tanh %278 : vector<2x16xf32>
    %280 = vector.extract_strided_slice %265 {offsets = [0, 48], sizes = [2, 16], strides = [1, 1]} : vector<2x64xf32> to vector<2x16xf32>
    %281 = arith.negf %280 : vector<2x16xf32>
    %282 = math.exp %281 : vector<2x16xf32>
    %cst_84 = arith.constant 1.000000e+00 : f32
    %283 = vector.broadcast %cst_84 : f32 to vector<2x16xf32>
    %284 = arith.addf %283, %282 : vector<2x16xf32>
    %285 = arith.divf %283, %284 : vector<2x16xf32>
    %286 = arith.mulf %277, %224 : vector<2x16xf32>
    %287 = arith.mulf %271, %279 : vector<2x16xf32>
    %288 = arith.addf %286, %287 : vector<2x16xf32>
    %289 = math.tanh %288 : vector<2x16xf32>
    %290 = arith.mulf %285, %289 : vector<2x16xf32>
    %c4_85 = arith.constant 4 : index
    %c0_86 = arith.constant 0 : index
    %c0_87 = arith.constant 0 : index
    %291 = vector.load %arg4[%c4_85, %c0_86, %c0_87] : memref<12x2x16xf32, #tpu.memory_space<vmem>>, vector<1x2x16xf32>
    %292 = vector.shape_cast %291 : vector<1x2x16xf32> to vector<2x16xf32>
    %293 = vector.shape_cast %290 : vector<2x16xf32> to vector<1x2x16xf32>
    tpu.vector_store %arg4[%c4_85, %c0_86, %c0_87], %293 {strides = array<i32>} : memref<12x2x16xf32, #tpu.memory_space<vmem>>, vector<1x2x16xf32>,
    %c7 = arith.constant 7 : index
    %c0_88 = arith.constant 0 : index
    %c0_89 = arith.constant 0 : index
    %294 = vector.load %arg1[%c7, %c0_88, %c0_89] : memref<12x2x64xf32, #tpu.memory_space<vmem>>, vector<1x2x64xf32>
    %295 = vector.shape_cast %294 : vector<1x2x64xf32> to vector<2x64xf32>
    %cst_90 = arith.constant dense<0.000000e+00> : vector<2x64xf32>
    %296 = tpu.matmul %258, %1, %cst_90 {dimension_numbers = #tpu.dot_dimension_numbers<[1], [0], [0], [1], [0, 0, 1, 1], [], []>} : vector<2x16xf32>, vector<16x64xf32>, vector<2x64xf32> -> vector<2x64xf32>
    %297 = arith.addf %295, %296 : vector<2x64xf32>
    %298 = vector.extract_strided_slice %297 {offsets = [0, 0], sizes = [2, 16], strides = [1, 1]} : vector<2x64xf32> to vector<2x16xf32>
    %299 = arith.negf %298 : vector<2x16xf32>
    %300 = math.exp %299 : vector<2x16xf32>
    %cst_91 = arith.constant 1.000000e+00 : f32
    %301 = vector.broadcast %cst_91 : f32 to vector<2x16xf32>
    %302 = arith.addf %301, %300 : vector<2x16xf32>
    %303 = arith.divf %301, %302 : vector<2x16xf32>
    %304 = vector.extract_strided_slice %297 {offsets = [0, 16], sizes = [2, 16], strides = [1, 1]} : vector<2x64xf32> to vector<2x16xf32>
    %305 = arith.negf %304 : vector<2x16xf32>
    %306 = math.exp %305 : vector<2x16xf32>
    %cst_92 = arith.constant 1.000000e+00 : f32
    %307 = vector.broadcast %cst_92 : f32 to vector<2x16xf32>
    %308 = arith.addf %307, %306 : vector<2x16xf32>
    %309 = arith.divf %307, %308 : vector<2x16xf32>
    %310 = vector.extract_strided_slice %297 {offsets = [0, 32], sizes = [2, 16], strides = [1, 1]} : vector<2x64xf32> to vector<2x16xf32>
    %311 = math.tanh %310 : vector<2x16xf32>
    %312 = vector.extract_strided_slice %297 {offsets = [0, 48], sizes = [2, 16], strides = [1, 1]} : vector<2x64xf32> to vector<2x16xf32>
    %313 = arith.negf %312 : vector<2x16xf32>
    %314 = math.exp %313 : vector<2x16xf32>
    %cst_93 = arith.constant 1.000000e+00 : f32
    %315 = vector.broadcast %cst_93 : f32 to vector<2x16xf32>
    %316 = arith.addf %315, %314 : vector<2x16xf32>
    %317 = arith.divf %315, %316 : vector<2x16xf32>
    %318 = arith.mulf %309, %256 : vector<2x16xf32>
    %319 = arith.mulf %303, %311 : vector<2x16xf32>
    %320 = arith.addf %318, %319 : vector<2x16xf32>
    %321 = math.tanh %320 : vector<2x16xf32>
    %322 = arith.mulf %317, %321 : vector<2x16xf32>
    %c7_94 = arith.constant 7 : index
    %c0_95 = arith.constant 0 : index
    %c0_96 = arith.constant 0 : index
    %323 = vector.load %arg5[%c7_94, %c0_95, %c0_96] : memref<12x2x16xf32, #tpu.memory_space<vmem>>, vector<1x2x16xf32>
    %324 = vector.shape_cast %323 : vector<1x2x16xf32> to vector<2x16xf32>
    %325 = vector.shape_cast %322 : vector<2x16xf32> to vector<1x2x16xf32>
    tpu.vector_store %arg5[%c7_94, %c0_95, %c0_96], %325 {strides = array<i32>} : memref<12x2x16xf32, #tpu.memory_space<vmem>>, vector<1x2x16xf32>,
    %c5 = arith.constant 5 : index
    %c0_97 = arith.constant 0 : index
    %c0_98 = arith.constant 0 : index
    %326 = vector.load %arg0[%c5, %c0_97, %c0_98] : memref<12x2x64xf32, #tpu.memory_space<vmem>>, vector<1x2x64xf32>
    %327 = vector.shape_cast %326 : vector<1x2x64xf32> to vector<2x64xf32>
    %cst_99 = arith.constant dense<0.000000e+00> : vector<2x64xf32>
    %328 = tpu.matmul %290, %0, %cst_99 {dimension_numbers = #tpu.dot_dimension_numbers<[1], [0], [0], [1], [0, 0, 1, 1], [], []>} : vector<2x16xf32>, vector<16x64xf32>, vector<2x64xf32> -> vector<2x64xf32>
    %329 = arith.addf %327, %328 : vector<2x64xf32>
    %330 = vector.extract_strided_slice %329 {offsets = [0, 0], sizes = [2, 16], strides = [1, 1]} : vector<2x64xf32> to vector<2x16xf32>
    %331 = arith.negf %330 : vector<2x16xf32>
    %332 = math.exp %331 : vector<2x16xf32>
    %cst_100 = arith.constant 1.000000e+00 : f32
    %333 = vector.broadcast %cst_100 : f32 to vector<2x16xf32>
    %334 = arith.addf %333, %332 : vector<2x16xf32>
    %335 = arith.divf %333, %334 : vector<2x16xf32>
    %336 = vector.extract_strided_slice %329 {offsets = [0, 16], sizes = [2, 16], strides = [1, 1]} : vector<2x64xf32> to vector<2x16xf32>
    %337 = arith.negf %336 : vector<2x16xf32>
    %338 = math.exp %337 : vector<2x16xf32>
    %cst_101 = arith.constant 1.000000e+00 : f32
    %339 = vector.broadcast %cst_101 : f32 to vector<2x16xf32>
    %340 = arith.addf %339, %338 : vector<2x16xf32>
    %341 = arith.divf %339, %340 : vector<2x16xf32>
    %342 = vector.extract_strided_slice %329 {offsets = [0, 32], sizes = [2, 16], strides = [1, 1]} : vector<2x64xf32> to vector<2x16xf32>
    %343 = math.tanh %342 : vector<2x16xf32>
    %344 = vector.extract_strided_slice %329 {offsets = [0, 48], sizes = [2, 16], strides = [1, 1]} : vector<2x64xf32> to vector<2x16xf32>
    %345 = arith.negf %344 : vector<2x16xf32>
    %346 = math.exp %345 : vector<2x16xf32>
    %cst_102 = arith.constant 1.000000e+00 : f32
    %347 = vector.broadcast %cst_102 : f32 to vector<2x16xf32>
    %348 = arith.addf %347, %346 : vector<2x16xf32>
    %349 = arith.divf %347, %348 : vector<2x16xf32>
    %350 = arith.mulf %341, %288 : vector<2x16xf32>
    %351 = arith.mulf %335, %343 : vector<2x16xf32>
    %352 = arith.addf %350, %351 : vector<2x16xf32>
    %353 = math.tanh %352 : vector<2x16xf32>
    %354 = arith.mulf %349, %353 : vector<2x16xf32>
    %c5_103 = arith.constant 5 : index
    %c0_104 = arith.constant 0 : index
    %c0_105 = arith.constant 0 : index
    %355 = vector.load %arg4[%c5_103, %c0_104, %c0_105] : memref<12x2x16xf32, #tpu.memory_space<vmem>>, vector<1x2x16xf32>
    %356 = vector.shape_cast %355 : vector<1x2x16xf32> to vector<2x16xf32>
    %357 = vector.shape_cast %354 : vector<2x16xf32> to vector<1x2x16xf32>
    tpu.vector_store %arg4[%c5_103, %c0_104, %c0_105], %357 {strides = array<i32>} : memref<12x2x16xf32, #tpu.memory_space<vmem>>, vector<1x2x16xf32>,
    %c6 = arith.constant 6 : index
    %c0_106 = arith.constant 0 : index
    %c0_107 = arith.constant 0 : index
    %358 = vector.load %arg1[%c6, %c0_106, %c0_107] : memref<12x2x64xf32, #tpu.memory_space<vmem>>, vector<1x2x64xf32>
    %359 = vector.shape_cast %358 : vector<1x2x64xf32> to vector<2x64xf32>
    %cst_108 = arith.constant dense<0.000000e+00> : vector<2x64xf32>
    %360 = tpu.matmul %322, %1, %cst_108 {dimension_numbers = #tpu.dot_dimension_numbers<[1], [0], [0], [1], [0, 0, 1, 1], [], []>} : vector<2x16xf32>, vector<16x64xf32>, vector<2x64xf32> -> vector<2x64xf32>
    %361 = arith.addf %359, %360 : vector<2x64xf32>
    %362 = vector.extract_strided_slice %361 {offsets = [0, 0], sizes = [2, 16], strides = [1, 1]} : vector<2x64xf32> to vector<2x16xf32>
    %363 = arith.negf %362 : vector<2x16xf32>
    %364 = math.exp %363 : vector<2x16xf32>
    %cst_109 = arith.constant 1.000000e+00 : f32
    %365 = vector.broadcast %cst_109 : f32 to vector<2x16xf32>
    %366 = arith.addf %365, %364 : vector<2x16xf32>
    %367 = arith.divf %365, %366 : vector<2x16xf32>
    %368 = vector.extract_strided_slice %361 {offsets = [0, 16], sizes = [2, 16], strides = [1, 1]} : vector<2x64xf32> to vector<2x16xf32>
    %369 = arith.negf %368 : vector<2x16xf32>
    %370 = math.exp %369 : vector<2x16xf32>
    %cst_110 = arith.constant 1.000000e+00 : f32
    %371 = vector.broadcast %cst_110 : f32 to vector<2x16xf32>
    %372 = arith.addf %371, %370 : vector<2x16xf32>
    %373 = arith.divf %371, %372 : vector<2x16xf32>
    %374 = vector.extract_strided_slice %361 {offsets = [0, 32], sizes = [2, 16], strides = [1, 1]} : vector<2x64xf32> to vector<2x16xf32>
    %375 = math.tanh %374 : vector<2x16xf32>
    %376 = vector.extract_strided_slice %361 {offsets = [0, 48], sizes = [2, 16], strides = [1, 1]} : vector<2x64xf32> to vector<2x16xf32>
    %377 = arith.negf %376 : vector<2x16xf32>
    %378 = math.exp %377 : vector<2x16xf32>
    %cst_111 = arith.constant 1.000000e+00 : f32
    %379 = vector.broadcast %cst_111 : f32 to vector<2x16xf32>
    %380 = arith.addf %379, %378 : vector<2x16xf32>
    %381 = arith.divf %379, %380 : vector<2x16xf32>
    %382 = arith.mulf %373, %320 : vector<2x16xf32>
    %383 = arith.mulf %367, %375 : vector<2x16xf32>
    %384 = arith.addf %382, %383 : vector<2x16xf32>
    %385 = math.tanh %384 : vector<2x16xf32>
    %386 = arith.mulf %381, %385 : vector<2x16xf32>
    %c6_112 = arith.constant 6 : index
    %c0_113 = arith.constant 0 : index
    %c0_114 = arith.constant 0 : index
    %387 = vector.load %arg5[%c6_112, %c0_113, %c0_114] : memref<12x2x16xf32, #tpu.memory_space<vmem>>, vector<1x2x16xf32>
    %388 = vector.shape_cast %387 : vector<1x2x16xf32> to vector<2x16xf32>
    %389 = vector.shape_cast %386 : vector<2x16xf32> to vector<1x2x16xf32>
    tpu.vector_store %arg5[%c6_112, %c0_113, %c0_114], %389 {strides = array<i32>} : memref<12x2x16xf32, #tpu.memory_space<vmem>>, vector<1x2x16xf32>,
    %c6_115 = arith.constant 6 : index
    %c0_116 = arith.constant 0 : index
    %c0_117 = arith.constant 0 : index
    %390 = vector.load %arg0[%c6_115, %c0_116, %c0_117] : memref<12x2x64xf32, #tpu.memory_space<vmem>>, vector<1x2x64xf32>
    %391 = vector.shape_cast %390 : vector<1x2x64xf32> to vector<2x64xf32>
    %cst_118 = arith.constant dense<0.000000e+00> : vector<2x64xf32>
    %392 = tpu.matmul %354, %0, %cst_118 {dimension_numbers = #tpu.dot_dimension_numbers<[1], [0], [0], [1], [0, 0, 1, 1], [], []>} : vector<2x16xf32>, vector<16x64xf32>, vector<2x64xf32> -> vector<2x64xf32>
    %393 = arith.addf %391, %392 : vector<2x64xf32>
    %394 = vector.extract_strided_slice %393 {offsets = [0, 0], sizes = [2, 16], strides = [1, 1]} : vector<2x64xf32> to vector<2x16xf32>
    %395 = arith.negf %394 : vector<2x16xf32>
    %396 = math.exp %395 : vector<2x16xf32>
    %cst_119 = arith.constant 1.000000e+00 : f32
    %397 = vector.broadcast %cst_119 : f32 to vector<2x16xf32>
    %398 = arith.addf %397, %396 : vector<2x16xf32>
    %399 = arith.divf %397, %398 : vector<2x16xf32>
    %400 = vector.extract_strided_slice %393 {offsets = [0, 16], sizes = [2, 16], strides = [1, 1]} : vector<2x64xf32> to vector<2x16xf32>
    %401 = arith.negf %400 : vector<2x16xf32>
    %402 = math.exp %401 : vector<2x16xf32>
    %cst_120 = arith.constant 1.000000e+00 : f32
    %403 = vector.broadcast %cst_120 : f32 to vector<2x16xf32>
    %404 = arith.addf %403, %402 : vector<2x16xf32>
    %405 = arith.divf %403, %404 : vector<2x16xf32>
    %406 = vector.extract_strided_slice %393 {offsets = [0, 32], sizes = [2, 16], strides = [1, 1]} : vector<2x64xf32> to vector<2x16xf32>
    %407 = math.tanh %406 : vector<2x16xf32>
    %408 = vector.extract_strided_slice %393 {offsets = [0, 48], sizes = [2, 16], strides = [1, 1]} : vector<2x64xf32> to vector<2x16xf32>
    %409 = arith.negf %408 : vector<2x16xf32>
    %410 = math.exp %409 : vector<2x16xf32>
    %cst_121 = arith.constant 1.000000e+00 : f32
    %411 = vector.broadcast %cst_121 : f32 to vector<2x16xf32>
    %412 = arith.addf %411, %410 : vector<2x16xf32>
    %413 = arith.divf %411, %412 : vector<2x16xf32>
    %414 = arith.mulf %405, %352 : vector<2x16xf32>
    %415 = arith.mulf %399, %407 : vector<2x16xf32>
    %416 = arith.addf %414, %415 : vector<2x16xf32>
    %417 = math.tanh %416 : vector<2x16xf32>
    %418 = arith.mulf %413, %417 : vector<2x16xf32>
    %c6_122 = arith.constant 6 : index
    %c0_123 = arith.constant 0 : index
    %c0_124 = arith.constant 0 : index
    %419 = vector.load %arg4[%c6_122, %c0_123, %c0_124] : memref<12x2x16xf32, #tpu.memory_space<vmem>>, vector<1x2x16xf32>
    %420 = vector.shape_cast %419 : vector<1x2x16xf32> to vector<2x16xf32>
    %421 = vector.shape_cast %418 : vector<2x16xf32> to vector<1x2x16xf32>
    tpu.vector_store %arg4[%c6_122, %c0_123, %c0_124], %421 {strides = array<i32>} : memref<12x2x16xf32, #tpu.memory_space<vmem>>, vector<1x2x16xf32>,
    %c5_125 = arith.constant 5 : index
    %c0_126 = arith.constant 0 : index
    %c0_127 = arith.constant 0 : index
    %422 = vector.load %arg1[%c5_125, %c0_126, %c0_127] : memref<12x2x64xf32, #tpu.memory_space<vmem>>, vector<1x2x64xf32>
    %423 = vector.shape_cast %422 : vector<1x2x64xf32> to vector<2x64xf32>
    %cst_128 = arith.constant dense<0.000000e+00> : vector<2x64xf32>
    %424 = tpu.matmul %386, %1, %cst_128 {dimension_numbers = #tpu.dot_dimension_numbers<[1], [0], [0], [1], [0, 0, 1, 1], [], []>} : vector<2x16xf32>, vector<16x64xf32>, vector<2x64xf32> -> vector<2x64xf32>
    %425 = arith.addf %423, %424 : vector<2x64xf32>
    %426 = vector.extract_strided_slice %425 {offsets = [0, 0], sizes = [2, 16], strides = [1, 1]} : vector<2x64xf32> to vector<2x16xf32>
    %427 = arith.negf %426 : vector<2x16xf32>
    %428 = math.exp %427 : vector<2x16xf32>
    %cst_129 = arith.constant 1.000000e+00 : f32
    %429 = vector.broadcast %cst_129 : f32 to vector<2x16xf32>
    %430 = arith.addf %429, %428 : vector<2x16xf32>
    %431 = arith.divf %429, %430 : vector<2x16xf32>
    %432 = vector.extract_strided_slice %425 {offsets = [0, 16], sizes = [2, 16], strides = [1, 1]} : vector<2x64xf32> to vector<2x16xf32>
    %433 = arith.negf %432 : vector<2x16xf32>
    %434 = math.exp %433 : vector<2x16xf32>
    %cst_130 = arith.constant 1.000000e+00 : f32
    %435 = vector.broadcast %cst_130 : f32 to vector<2x16xf32>
    %436 = arith.addf %435, %434 : vector<2x16xf32>
    %437 = arith.divf %435, %436 : vector<2x16xf32>
    %438 = vector.extract_strided_slice %425 {offsets = [0, 32], sizes = [2, 16], strides = [1, 1]} : vector<2x64xf32> to vector<2x16xf32>
    %439 = math.tanh %438 : vector<2x16xf32>
    %440 = vector.extract_strided_slice %425 {offsets = [0, 48], sizes = [2, 16], strides = [1, 1]} : vector<2x64xf32> to vector<2x16xf32>
    %441 = arith.negf %440 : vector<2x16xf32>
    %442 = math.exp %441 : vector<2x16xf32>
    %cst_131 = arith.constant 1.000000e+00 : f32
    %443 = vector.broadcast %cst_131 : f32 to vector<2x16xf32>
    %444 = arith.addf %443, %442 : vector<2x16xf32>
    %445 = arith.divf %443, %444 : vector<2x16xf32>
    %446 = arith.mulf %437, %384 : vector<2x16xf32>
    %447 = arith.mulf %431, %439 : vector<2x16xf32>
    %448 = arith.addf %446, %447 : vector<2x16xf32>
    %449 = math.tanh %448 : vector<2x16xf32>
    %450 = arith.mulf %445, %449 : vector<2x16xf32>
    %c5_132 = arith.constant 5 : index
    %c0_133 = arith.constant 0 : index
    %c0_134 = arith.constant 0 : index
    %451 = vector.load %arg5[%c5_132, %c0_133, %c0_134] : memref<12x2x16xf32, #tpu.memory_space<vmem>>, vector<1x2x16xf32>
    %452 = vector.shape_cast %451 : vector<1x2x16xf32> to vector<2x16xf32>
    %453 = vector.shape_cast %450 : vector<2x16xf32> to vector<1x2x16xf32>
    tpu.vector_store %arg5[%c5_132, %c0_133, %c0_134], %453 {strides = array<i32>} : memref<12x2x16xf32, #tpu.memory_space<vmem>>, vector<1x2x16xf32>,
    %c7_135 = arith.constant 7 : index
    %c0_136 = arith.constant 0 : index
    %c0_137 = arith.constant 0 : index
    %454 = vector.load %arg0[%c7_135, %c0_136, %c0_137] : memref<12x2x64xf32, #tpu.memory_space<vmem>>, vector<1x2x64xf32>
    %455 = vector.shape_cast %454 : vector<1x2x64xf32> to vector<2x64xf32>
    %cst_138 = arith.constant dense<0.000000e+00> : vector<2x64xf32>
    %456 = tpu.matmul %418, %0, %cst_138 {dimension_numbers = #tpu.dot_dimension_numbers<[1], [0], [0], [1], [0, 0, 1, 1], [], []>} : vector<2x16xf32>, vector<16x64xf32>, vector<2x64xf32> -> vector<2x64xf32>
    %457 = arith.addf %455, %456 : vector<2x64xf32>
    %458 = vector.extract_strided_slice %457 {offsets = [0, 0], sizes = [2, 16], strides = [1, 1]} : vector<2x64xf32> to vector<2x16xf32>
    %459 = arith.negf %458 : vector<2x16xf32>
    %460 = math.exp %459 : vector<2x16xf32>
    %cst_139 = arith.constant 1.000000e+00 : f32
    %461 = vector.broadcast %cst_139 : f32 to vector<2x16xf32>
    %462 = arith.addf %461, %460 : vector<2x16xf32>
    %463 = arith.divf %461, %462 : vector<2x16xf32>
    %464 = vector.extract_strided_slice %457 {offsets = [0, 16], sizes = [2, 16], strides = [1, 1]} : vector<2x64xf32> to vector<2x16xf32>
    %465 = arith.negf %464 : vector<2x16xf32>
    %466 = math.exp %465 : vector<2x16xf32>
    %cst_140 = arith.constant 1.000000e+00 : f32
    %467 = vector.broadcast %cst_140 : f32 to vector<2x16xf32>
    %468 = arith.addf %467, %466 : vector<2x16xf32>
    %469 = arith.divf %467, %468 : vector<2x16xf32>
    %470 = vector.extract_strided_slice %457 {offsets = [0, 32], sizes = [2, 16], strides = [1, 1]} : vector<2x64xf32> to vector<2x16xf32>
    %471 = math.tanh %470 : vector<2x16xf32>
    %472 = vector.extract_strided_slice %457 {offsets = [0, 48], sizes = [2, 16], strides = [1, 1]} : vector<2x64xf32> to vector<2x16xf32>
    %473 = arith.negf %472 : vector<2x16xf32>
    %474 = math.exp %473 : vector<2x16xf32>
    %cst_141 = arith.constant 1.000000e+00 : f32
    %475 = vector.broadcast %cst_141 : f32 to vector<2x16xf32>
    %476 = arith.addf %475, %474 : vector<2x16xf32>
    %477 = arith.divf %475, %476 : vector<2x16xf32>
    %478 = arith.mulf %469, %416 : vector<2x16xf32>
    %479 = arith.mulf %463, %471 : vector<2x16xf32>
    %480 = arith.addf %478, %479 : vector<2x16xf32>
    %481 = math.tanh %480 : vector<2x16xf32>
    %482 = arith.mulf %477, %481 : vector<2x16xf32>
    %c7_142 = arith.constant 7 : index
    %c0_143 = arith.constant 0 : index
    %c0_144 = arith.constant 0 : index
    %483 = vector.load %arg4[%c7_142, %c0_143, %c0_144] : memref<12x2x16xf32, #tpu.memory_space<vmem>>, vector<1x2x16xf32>
    %484 = vector.shape_cast %483 : vector<1x2x16xf32> to vector<2x16xf32>
    %485 = vector.shape_cast %482 : vector<2x16xf32> to vector<1x2x16xf32>
    tpu.vector_store %arg4[%c7_142, %c0_143, %c0_144], %485 {strides = array<i32>} : memref<12x2x16xf32, #tpu.memory_space<vmem>>, vector<1x2x16xf32>,
    %c4_145 = arith.constant 4 : index
    %c0_146 = arith.constant 0 : index
    %c0_147 = arith.constant 0 : index
    %486 = vector.load %arg1[%c4_145, %c0_146, %c0_147] : memref<12x2x64xf32, #tpu.memory_space<vmem>>, vector<1x2x64xf32>
    %487 = vector.shape_cast %486 : vector<1x2x64xf32> to vector<2x64xf32>
    %cst_148 = arith.constant dense<0.000000e+00> : vector<2x64xf32>
    %488 = tpu.matmul %450, %1, %cst_148 {dimension_numbers = #tpu.dot_dimension_numbers<[1], [0], [0], [1], [0, 0, 1, 1], [], []>} : vector<2x16xf32>, vector<16x64xf32>, vector<2x64xf32> -> vector<2x64xf32>
    %489 = arith.addf %487, %488 : vector<2x64xf32>
    %490 = vector.extract_strided_slice %489 {offsets = [0, 0], sizes = [2, 16], strides = [1, 1]} : vector<2x64xf32> to vector<2x16xf32>
    %491 = arith.negf %490 : vector<2x16xf32>
    %492 = math.exp %491 : vector<2x16xf32>
    %cst_149 = arith.constant 1.000000e+00 : f32
    %493 = vector.broadcast %cst_149 : f32 to vector<2x16xf32>
    %494 = arith.addf %493, %492 : vector<2x16xf32>
    %495 = arith.divf %493, %494 : vector<2x16xf32>
    %496 = vector.extract_strided_slice %489 {offsets = [0, 16], sizes = [2, 16], strides = [1, 1]} : vector<2x64xf32> to vector<2x16xf32>
    %497 = arith.negf %496 : vector<2x16xf32>
    %498 = math.exp %497 : vector<2x16xf32>
    %cst_150 = arith.constant 1.000000e+00 : f32
    %499 = vector.broadcast %cst_150 : f32 to vector<2x16xf32>
    %500 = arith.addf %499, %498 : vector<2x16xf32>
    %501 = arith.divf %499, %500 : vector<2x16xf32>
    %502 = vector.extract_strided_slice %489 {offsets = [0, 32], sizes = [2, 16], strides = [1, 1]} : vector<2x64xf32> to vector<2x16xf32>
    %503 = math.tanh %502 : vector<2x16xf32>
    %504 = vector.extract_strided_slice %489 {offsets = [0, 48], sizes = [2, 16], strides = [1, 1]} : vector<2x64xf32> to vector<2x16xf32>
    %505 = arith.negf %504 : vector<2x16xf32>
    %506 = math.exp %505 : vector<2x16xf32>
    %cst_151 = arith.constant 1.000000e+00 : f32
    %507 = vector.broadcast %cst_151 : f32 to vector<2x16xf32>
    %508 = arith.addf %507, %506 : vector<2x16xf32>
    %509 = arith.divf %507, %508 : vector<2x16xf32>
    %510 = arith.mulf %501, %448 : vector<2x16xf32>
    %511 = arith.mulf %495, %503 : vector<2x16xf32>
    %512 = arith.addf %510, %511 : vector<2x16xf32>
    %513 = math.tanh %512 : vector<2x16xf32>
    %514 = arith.mulf %509, %513 : vector<2x16xf32>
    %c4_152 = arith.constant 4 : index
    %c0_153 = arith.constant 0 : index
    %c0_154 = arith.constant 0 : index
    %515 = vector.load %arg5[%c4_152, %c0_153, %c0_154] : memref<12x2x16xf32, #tpu.memory_space<vmem>>, vector<1x2x16xf32>
    %516 = vector.shape_cast %515 : vector<1x2x16xf32> to vector<2x16xf32>
    %517 = vector.shape_cast %514 : vector<2x16xf32> to vector<1x2x16xf32>
    tpu.vector_store %arg5[%c4_152, %c0_153, %c0_154], %517 {strides = array<i32>} : memref<12x2x16xf32, #tpu.memory_space<vmem>>, vector<1x2x16xf32>,
    %c8_155 = arith.constant 8 : index
    %c0_156 = arith.constant 0 : index
    %c0_157 = arith.constant 0 : index
    %518 = vector.load %arg0[%c8_155, %c0_156, %c0_157] : memref<12x2x64xf32, #tpu.memory_space<vmem>>, vector<1x2x64xf32>
    %519 = vector.shape_cast %518 : vector<1x2x64xf32> to vector<2x64xf32>
    %cst_158 = arith.constant dense<0.000000e+00> : vector<2x64xf32>
    %520 = tpu.matmul %482, %0, %cst_158 {dimension_numbers = #tpu.dot_dimension_numbers<[1], [0], [0], [1], [0, 0, 1, 1], [], []>} : vector<2x16xf32>, vector<16x64xf32>, vector<2x64xf32> -> vector<2x64xf32>
    %521 = arith.addf %519, %520 : vector<2x64xf32>
    %522 = vector.extract_strided_slice %521 {offsets = [0, 0], sizes = [2, 16], strides = [1, 1]} : vector<2x64xf32> to vector<2x16xf32>
    %523 = arith.negf %522 : vector<2x16xf32>
    %524 = math.exp %523 : vector<2x16xf32>
    %cst_159 = arith.constant 1.000000e+00 : f32
    %525 = vector.broadcast %cst_159 : f32 to vector<2x16xf32>
    %526 = arith.addf %525, %524 : vector<2x16xf32>
    %527 = arith.divf %525, %526 : vector<2x16xf32>
    %528 = vector.extract_strided_slice %521 {offsets = [0, 16], sizes = [2, 16], strides = [1, 1]} : vector<2x64xf32> to vector<2x16xf32>
    %529 = arith.negf %528 : vector<2x16xf32>
    %530 = math.exp %529 : vector<2x16xf32>
    %cst_160 = arith.constant 1.000000e+00 : f32
    %531 = vector.broadcast %cst_160 : f32 to vector<2x16xf32>
    %532 = arith.addf %531, %530 : vector<2x16xf32>
    %533 = arith.divf %531, %532 : vector<2x16xf32>
    %534 = vector.extract_strided_slice %521 {offsets = [0, 32], sizes = [2, 16], strides = [1, 1]} : vector<2x64xf32> to vector<2x16xf32>
    %535 = math.tanh %534 : vector<2x16xf32>
    %536 = vector.extract_strided_slice %521 {offsets = [0, 48], sizes = [2, 16], strides = [1, 1]} : vector<2x64xf32> to vector<2x16xf32>
    %537 = arith.negf %536 : vector<2x16xf32>
    %538 = math.exp %537 : vector<2x16xf32>
    %cst_161 = arith.constant 1.000000e+00 : f32
    %539 = vector.broadcast %cst_161 : f32 to vector<2x16xf32>
    %540 = arith.addf %539, %538 : vector<2x16xf32>
    %541 = arith.divf %539, %540 : vector<2x16xf32>
    %542 = arith.mulf %533, %480 : vector<2x16xf32>
    %543 = arith.mulf %527, %535 : vector<2x16xf32>
    %544 = arith.addf %542, %543 : vector<2x16xf32>
    %545 = math.tanh %544 : vector<2x16xf32>
    %546 = arith.mulf %541, %545 : vector<2x16xf32>
    %c8_162 = arith.constant 8 : index
    %c0_163 = arith.constant 0 : index
    %c0_164 = arith.constant 0 : index
    %547 = vector.load %arg4[%c8_162, %c0_163, %c0_164] : memref<12x2x16xf32, #tpu.memory_space<vmem>>, vector<1x2x16xf32>
    %548 = vector.shape_cast %547 : vector<1x2x16xf32> to vector<2x16xf32>
    %549 = vector.shape_cast %546 : vector<2x16xf32> to vector<1x2x16xf32>
    tpu.vector_store %arg4[%c8_162, %c0_163, %c0_164], %549 {strides = array<i32>} : memref<12x2x16xf32, #tpu.memory_space<vmem>>, vector<1x2x16xf32>,
    %c3_165 = arith.constant 3 : index
    %c0_166 = arith.constant 0 : index
    %c0_167 = arith.constant 0 : index
    %550 = vector.load %arg1[%c3_165, %c0_166, %c0_167] : memref<12x2x64xf32, #tpu.memory_space<vmem>>, vector<1x2x64xf32>
    %551 = vector.shape_cast %550 : vector<1x2x64xf32> to vector<2x64xf32>
    %cst_168 = arith.constant dense<0.000000e+00> : vector<2x64xf32>
    %552 = tpu.matmul %514, %1, %cst_168 {dimension_numbers = #tpu.dot_dimension_numbers<[1], [0], [0], [1], [0, 0, 1, 1], [], []>} : vector<2x16xf32>, vector<16x64xf32>, vector<2x64xf32> -> vector<2x64xf32>
    %553 = arith.addf %551, %552 : vector<2x64xf32>
    %554 = vector.extract_strided_slice %553 {offsets = [0, 0], sizes = [2, 16], strides = [1, 1]} : vector<2x64xf32> to vector<2x16xf32>
    %555 = arith.negf %554 : vector<2x16xf32>
    %556 = math.exp %555 : vector<2x16xf32>
    %cst_169 = arith.constant 1.000000e+00 : f32
    %557 = vector.broadcast %cst_169 : f32 to vector<2x16xf32>
    %558 = arith.addf %557, %556 : vector<2x16xf32>
    %559 = arith.divf %557, %558 : vector<2x16xf32>
    %560 = vector.extract_strided_slice %553 {offsets = [0, 16], sizes = [2, 16], strides = [1, 1]} : vector<2x64xf32> to vector<2x16xf32>
    %561 = arith.negf %560 : vector<2x16xf32>
    %562 = math.exp %561 : vector<2x16xf32>
    %cst_170 = arith.constant 1.000000e+00 : f32
    %563 = vector.broadcast %cst_170 : f32 to vector<2x16xf32>
    %564 = arith.addf %563, %562 : vector<2x16xf32>
    %565 = arith.divf %563, %564 : vector<2x16xf32>
    %566 = vector.extract_strided_slice %553 {offsets = [0, 32], sizes = [2, 16], strides = [1, 1]} : vector<2x64xf32> to vector<2x16xf32>
    %567 = math.tanh %566 : vector<2x16xf32>
    %568 = vector.extract_strided_slice %553 {offsets = [0, 48], sizes = [2, 16], strides = [1, 1]} : vector<2x64xf32> to vector<2x16xf32>
    %569 = arith.negf %568 : vector<2x16xf32>
    %570 = math.exp %569 : vector<2x16xf32>
    %cst_171 = arith.constant 1.000000e+00 : f32
    %571 = vector.broadcast %cst_171 : f32 to vector<2x16xf32>
    %572 = arith.addf %571, %570 : vector<2x16xf32>
    %573 = arith.divf %571, %572 : vector<2x16xf32>
    %574 = arith.mulf %565, %512 : vector<2x16xf32>
    %575 = arith.mulf %559, %567 : vector<2x16xf32>
    %576 = arith.addf %574, %575 : vector<2x16xf32>
    %577 = math.tanh %576 : vector<2x16xf32>
    %578 = arith.mulf %573, %577 : vector<2x16xf32>
    %c3_172 = arith.constant 3 : index
    %c0_173 = arith.constant 0 : index
    %c0_174 = arith.constant 0 : index
    %579 = vector.load %arg5[%c3_172, %c0_173, %c0_174] : memref<12x2x16xf32, #tpu.memory_space<vmem>>, vector<1x2x16xf32>
    %580 = vector.shape_cast %579 : vector<1x2x16xf32> to vector<2x16xf32>
    %581 = vector.shape_cast %578 : vector<2x16xf32> to vector<1x2x16xf32>
    tpu.vector_store %arg5[%c3_172, %c0_173, %c0_174], %581 {strides = array<i32>} : memref<12x2x16xf32, #tpu.memory_space<vmem>>, vector<1x2x16xf32>,
    %c9_175 = arith.constant 9 : index
    %c0_176 = arith.constant 0 : index
    %c0_177 = arith.constant 0 : index
    %582 = vector.load %arg0[%c9_175, %c0_176, %c0_177] : memref<12x2x64xf32, #tpu.memory_space<vmem>>, vector<1x2x64xf32>
    %583 = vector.shape_cast %582 : vector<1x2x64xf32> to vector<2x64xf32>
    %cst_178 = arith.constant dense<0.000000e+00> : vector<2x64xf32>
    %584 = tpu.matmul %546, %0, %cst_178 {dimension_numbers = #tpu.dot_dimension_numbers<[1], [0], [0], [1], [0, 0, 1, 1], [], []>} : vector<2x16xf32>, vector<16x64xf32>, vector<2x64xf32> -> vector<2x64xf32>
    %585 = arith.addf %583, %584 : vector<2x64xf32>
    %586 = vector.extract_strided_slice %585 {offsets = [0, 0], sizes = [2, 16], strides = [1, 1]} : vector<2x64xf32> to vector<2x16xf32>
    %587 = arith.negf %586 : vector<2x16xf32>
    %588 = math.exp %587 : vector<2x16xf32>
    %cst_179 = arith.constant 1.000000e+00 : f32
    %589 = vector.broadcast %cst_179 : f32 to vector<2x16xf32>
    %590 = arith.addf %589, %588 : vector<2x16xf32>
    %591 = arith.divf %589, %590 : vector<2x16xf32>
    %592 = vector.extract_strided_slice %585 {offsets = [0, 16], sizes = [2, 16], strides = [1, 1]} : vector<2x64xf32> to vector<2x16xf32>
    %593 = arith.negf %592 : vector<2x16xf32>
    %594 = math.exp %593 : vector<2x16xf32>
    %cst_180 = arith.constant 1.000000e+00 : f32
    %595 = vector.broadcast %cst_180 : f32 to vector<2x16xf32>
    %596 = arith.addf %595, %594 : vector<2x16xf32>
    %597 = arith.divf %595, %596 : vector<2x16xf32>
    %598 = vector.extract_strided_slice %585 {offsets = [0, 32], sizes = [2, 16], strides = [1, 1]} : vector<2x64xf32> to vector<2x16xf32>
    %599 = math.tanh %598 : vector<2x16xf32>
    %600 = vector.extract_strided_slice %585 {offsets = [0, 48], sizes = [2, 16], strides = [1, 1]} : vector<2x64xf32> to vector<2x16xf32>
    %601 = arith.negf %600 : vector<2x16xf32>
    %602 = math.exp %601 : vector<2x16xf32>
    %cst_181 = arith.constant 1.000000e+00 : f32
    %603 = vector.broadcast %cst_181 : f32 to vector<2x16xf32>
    %604 = arith.addf %603, %602 : vector<2x16xf32>
    %605 = arith.divf %603, %604 : vector<2x16xf32>
    %606 = arith.mulf %597, %544 : vector<2x16xf32>
    %607 = arith.mulf %591, %599 : vector<2x16xf32>
    %608 = arith.addf %606, %607 : vector<2x16xf32>
    %609 = math.tanh %608 : vector<2x16xf32>
    %610 = arith.mulf %605, %609 : vector<2x16xf32>
    %c9_182 = arith.constant 9 : index
    %c0_183 = arith.constant 0 : index
    %c0_184 = arith.constant 0 : index
    %611 = vector.load %arg4[%c9_182, %c0_183, %c0_184] : memref<12x2x16xf32, #tpu.memory_space<vmem>>, vector<1x2x16xf32>
    %612 = vector.shape_cast %611 : vector<1x2x16xf32> to vector<2x16xf32>
    %613 = vector.shape_cast %610 : vector<2x16xf32> to vector<1x2x16xf32>
    tpu.vector_store %arg4[%c9_182, %c0_183, %c0_184], %613 {strides = array<i32>} : memref<12x2x16xf32, #tpu.memory_space<vmem>>, vector<1x2x16xf32>,
    %c2_185 = arith.constant 2 : index
    %c0_186 = arith.constant 0 : index
    %c0_187 = arith.constant 0 : index
    %614 = vector.load %arg1[%c2_185, %c0_186, %c0_187] : memref<12x2x64xf32, #tpu.memory_space<vmem>>, vector<1x2x64xf32>
    %615 = vector.shape_cast %614 : vector<1x2x64xf32> to vector<2x64xf32>
    %cst_188 = arith.constant dense<0.000000e+00> : vector<2x64xf32>
    %616 = tpu.matmul %578, %1, %cst_188 {dimension_numbers = #tpu.dot_dimension_numbers<[1], [0], [0], [1], [0, 0, 1, 1], [], []>} : vector<2x16xf32>, vector<16x64xf32>, vector<2x64xf32> -> vector<2x64xf32>
    %617 = arith.addf %615, %616 : vector<2x64xf32>
    %618 = vector.extract_strided_slice %617 {offsets = [0, 0], sizes = [2, 16], strides = [1, 1]} : vector<2x64xf32> to vector<2x16xf32>
    %619 = arith.negf %618 : vector<2x16xf32>
    %620 = math.exp %619 : vector<2x16xf32>
    %cst_189 = arith.constant 1.000000e+00 : f32
    %621 = vector.broadcast %cst_189 : f32 to vector<2x16xf32>
    %622 = arith.addf %621, %620 : vector<2x16xf32>
    %623 = arith.divf %621, %622 : vector<2x16xf32>
    %624 = vector.extract_strided_slice %617 {offsets = [0, 16], sizes = [2, 16], strides = [1, 1]} : vector<2x64xf32> to vector<2x16xf32>
    %625 = arith.negf %624 : vector<2x16xf32>
    %626 = math.exp %625 : vector<2x16xf32>
    %cst_190 = arith.constant 1.000000e+00 : f32
    %627 = vector.broadcast %cst_190 : f32 to vector<2x16xf32>
    %628 = arith.addf %627, %626 : vector<2x16xf32>
    %629 = arith.divf %627, %628 : vector<2x16xf32>
    %630 = vector.extract_strided_slice %617 {offsets = [0, 32], sizes = [2, 16], strides = [1, 1]} : vector<2x64xf32> to vector<2x16xf32>
    %631 = math.tanh %630 : vector<2x16xf32>
    %632 = vector.extract_strided_slice %617 {offsets = [0, 48], sizes = [2, 16], strides = [1, 1]} : vector<2x64xf32> to vector<2x16xf32>
    %633 = arith.negf %632 : vector<2x16xf32>
    %634 = math.exp %633 : vector<2x16xf32>
    %cst_191 = arith.constant 1.000000e+00 : f32
    %635 = vector.broadcast %cst_191 : f32 to vector<2x16xf32>
    %636 = arith.addf %635, %634 : vector<2x16xf32>
    %637 = arith.divf %635, %636 : vector<2x16xf32>
    %638 = arith.mulf %629, %576 : vector<2x16xf32>
    %639 = arith.mulf %623, %631 : vector<2x16xf32>
    %640 = arith.addf %638, %639 : vector<2x16xf32>
    %641 = math.tanh %640 : vector<2x16xf32>
    %642 = arith.mulf %637, %641 : vector<2x16xf32>
    %c2_192 = arith.constant 2 : index
    %c0_193 = arith.constant 0 : index
    %c0_194 = arith.constant 0 : index
    %643 = vector.load %arg5[%c2_192, %c0_193, %c0_194] : memref<12x2x16xf32, #tpu.memory_space<vmem>>, vector<1x2x16xf32>
    %644 = vector.shape_cast %643 : vector<1x2x16xf32> to vector<2x16xf32>
    %645 = vector.shape_cast %642 : vector<2x16xf32> to vector<1x2x16xf32>
    tpu.vector_store %arg5[%c2_192, %c0_193, %c0_194], %645 {strides = array<i32>} : memref<12x2x16xf32, #tpu.memory_space<vmem>>, vector<1x2x16xf32>,
    %c10_195 = arith.constant 10 : index
    %c0_196 = arith.constant 0 : index
    %c0_197 = arith.constant 0 : index
    %646 = vector.load %arg0[%c10_195, %c0_196, %c0_197] : memref<12x2x64xf32, #tpu.memory_space<vmem>>, vector<1x2x64xf32>
    %647 = vector.shape_cast %646 : vector<1x2x64xf32> to vector<2x64xf32>
    %cst_198 = arith.constant dense<0.000000e+00> : vector<2x64xf32>
    %648 = tpu.matmul %610, %0, %cst_198 {dimension_numbers = #tpu.dot_dimension_numbers<[1], [0], [0], [1], [0, 0, 1, 1], [], []>} : vector<2x16xf32>, vector<16x64xf32>, vector<2x64xf32> -> vector<2x64xf32>
    %649 = arith.addf %647, %648 : vector<2x64xf32>
    %650 = vector.extract_strided_slice %649 {offsets = [0, 0], sizes = [2, 16], strides = [1, 1]} : vector<2x64xf32> to vector<2x16xf32>
    %651 = arith.negf %650 : vector<2x16xf32>
    %652 = math.exp %651 : vector<2x16xf32>
    %cst_199 = arith.constant 1.000000e+00 : f32
    %653 = vector.broadcast %cst_199 : f32 to vector<2x16xf32>
    %654 = arith.addf %653, %652 : vector<2x16xf32>
    %655 = arith.divf %653, %654 : vector<2x16xf32>
    %656 = vector.extract_strided_slice %649 {offsets = [0, 16], sizes = [2, 16], strides = [1, 1]} : vector<2x64xf32> to vector<2x16xf32>
    %657 = arith.negf %656 : vector<2x16xf32>
    %658 = math.exp %657 : vector<2x16xf32>
    %cst_200 = arith.constant 1.000000e+00 : f32
    %659 = vector.broadcast %cst_200 : f32 to vector<2x16xf32>
    %660 = arith.addf %659, %658 : vector<2x16xf32>
    %661 = arith.divf %659, %660 : vector<2x16xf32>
    %662 = vector.extract_strided_slice %649 {offsets = [0, 32], sizes = [2, 16], strides = [1, 1]} : vector<2x64xf32> to vector<2x16xf32>
    %663 = math.tanh %662 : vector<2x16xf32>
    %664 = vector.extract_strided_slice %649 {offsets = [0, 48], sizes = [2, 16], strides = [1, 1]} : vector<2x64xf32> to vector<2x16xf32>
    %665 = arith.negf %664 : vector<2x16xf32>
    %666 = math.exp %665 : vector<2x16xf32>
    %cst_201 = arith.constant 1.000000e+00 : f32
    %667 = vector.broadcast %cst_201 : f32 to vector<2x16xf32>
    %668 = arith.addf %667, %666 : vector<2x16xf32>
    %669 = arith.divf %667, %668 : vector<2x16xf32>
    %670 = arith.mulf %661, %608 : vector<2x16xf32>
    %671 = arith.mulf %655, %663 : vector<2x16xf32>
    %672 = arith.addf %670, %671 : vector<2x16xf32>
    %673 = math.tanh %672 : vector<2x16xf32>
    %674 = arith.mulf %669, %673 : vector<2x16xf32>
    %c10_202 = arith.constant 10 : index
    %c0_203 = arith.constant 0 : index
    %c0_204 = arith.constant 0 : index
    %675 = vector.load %arg4[%c10_202, %c0_203, %c0_204] : memref<12x2x16xf32, #tpu.memory_space<vmem>>, vector<1x2x16xf32>
    %676 = vector.shape_cast %675 : vector<1x2x16xf32> to vector<2x16xf32>
    %677 = vector.shape_cast %674 : vector<2x16xf32> to vector<1x2x16xf32>
    tpu.vector_store %arg4[%c10_202, %c0_203, %c0_204], %677 {strides = array<i32>} : memref<12x2x16xf32, #tpu.memory_space<vmem>>, vector<1x2x16xf32>,
    %c1_205 = arith.constant 1 : index
    %c0_206 = arith.constant 0 : index
    %c0_207 = arith.constant 0 : index
    %678 = vector.load %arg1[%c1_205, %c0_206, %c0_207] : memref<12x2x64xf32, #tpu.memory_space<vmem>>, vector<1x2x64xf32>
    %679 = vector.shape_cast %678 : vector<1x2x64xf32> to vector<2x64xf32>
    %cst_208 = arith.constant dense<0.000000e+00> : vector<2x64xf32>
    %680 = tpu.matmul %642, %1, %cst_208 {dimension_numbers = #tpu.dot_dimension_numbers<[1], [0], [0], [1], [0, 0, 1, 1], [], []>} : vector<2x16xf32>, vector<16x64xf32>, vector<2x64xf32> -> vector<2x64xf32>
    %681 = arith.addf %679, %680 : vector<2x64xf32>
    %682 = vector.extract_strided_slice %681 {offsets = [0, 0], sizes = [2, 16], strides = [1, 1]} : vector<2x64xf32> to vector<2x16xf32>
    %683 = arith.negf %682 : vector<2x16xf32>
    %684 = math.exp %683 : vector<2x16xf32>
    %cst_209 = arith.constant 1.000000e+00 : f32
    %685 = vector.broadcast %cst_209 : f32 to vector<2x16xf32>
    %686 = arith.addf %685, %684 : vector<2x16xf32>
    %687 = arith.divf %685, %686 : vector<2x16xf32>
    %688 = vector.extract_strided_slice %681 {offsets = [0, 16], sizes = [2, 16], strides = [1, 1]} : vector<2x64xf32> to vector<2x16xf32>
    %689 = arith.negf %688 : vector<2x16xf32>
    %690 = math.exp %689 : vector<2x16xf32>
    %cst_210 = arith.constant 1.000000e+00 : f32
    %691 = vector.broadcast %cst_210 : f32 to vector<2x16xf32>
    %692 = arith.addf %691, %690 : vector<2x16xf32>
    %693 = arith.divf %691, %692 : vector<2x16xf32>
    %694 = vector.extract_strided_slice %681 {offsets = [0, 32], sizes = [2, 16], strides = [1, 1]} : vector<2x64xf32> to vector<2x16xf32>
    %695 = math.tanh %694 : vector<2x16xf32>
    %696 = vector.extract_strided_slice %681 {offsets = [0, 48], sizes = [2, 16], strides = [1, 1]} : vector<2x64xf32> to vector<2x16xf32>
    %697 = arith.negf %696 : vector<2x16xf32>
    %698 = math.exp %697 : vector<2x16xf32>
    %cst_211 = arith.constant 1.000000e+00 : f32
    %699 = vector.broadcast %cst_211 : f32 to vector<2x16xf32>
    %700 = arith.addf %699, %698 : vector<2x16xf32>
    %701 = arith.divf %699, %700 : vector<2x16xf32>
    %702 = arith.mulf %693, %640 : vector<2x16xf32>
    %703 = arith.mulf %687, %695 : vector<2x16xf32>
    %704 = arith.addf %702, %703 : vector<2x16xf32>
    %705 = math.tanh %704 : vector<2x16xf32>
    %706 = arith.mulf %701, %705 : vector<2x16xf32>
    %c1_212 = arith.constant 1 : index
    %c0_213 = arith.constant 0 : index
    %c0_214 = arith.constant 0 : index
    %707 = vector.load %arg5[%c1_212, %c0_213, %c0_214] : memref<12x2x16xf32, #tpu.memory_space<vmem>>, vector<1x2x16xf32>
    %708 = vector.shape_cast %707 : vector<1x2x16xf32> to vector<2x16xf32>
    %709 = vector.shape_cast %706 : vector<2x16xf32> to vector<1x2x16xf32>
    tpu.vector_store %arg5[%c1_212, %c0_213, %c0_214], %709 {strides = array<i32>} : memref<12x2x16xf32, #tpu.memory_space<vmem>>, vector<1x2x16xf32>,
    %c11_215 = arith.constant 11 : index
    %c0_216 = arith.constant 0 : index
    %c0_217 = arith.constant 0 : index
    %710 = vector.load %arg0[%c11_215, %c0_216, %c0_217] : memref<12x2x64xf32, #tpu.memory_space<vmem>>, vector<1x2x64xf32>
    %711 = vector.shape_cast %710 : vector<1x2x64xf32> to vector<2x64xf32>
    %cst_218 = arith.constant dense<0.000000e+00> : vector<2x64xf32>
    %712 = tpu.matmul %674, %0, %cst_218 {dimension_numbers = #tpu.dot_dimension_numbers<[1], [0], [0], [1], [0, 0, 1, 1], [], []>} : vector<2x16xf32>, vector<16x64xf32>, vector<2x64xf32> -> vector<2x64xf32>
    %713 = arith.addf %711, %712 : vector<2x64xf32>
    %714 = vector.extract_strided_slice %713 {offsets = [0, 0], sizes = [2, 16], strides = [1, 1]} : vector<2x64xf32> to vector<2x16xf32>
    %715 = arith.negf %714 : vector<2x16xf32>
    %716 = math.exp %715 : vector<2x16xf32>
    %cst_219 = arith.constant 1.000000e+00 : f32
    %717 = vector.broadcast %cst_219 : f32 to vector<2x16xf32>
    %718 = arith.addf %717, %716 : vector<2x16xf32>
    %719 = arith.divf %717, %718 : vector<2x16xf32>
    %720 = vector.extract_strided_slice %713 {offsets = [0, 16], sizes = [2, 16], strides = [1, 1]} : vector<2x64xf32> to vector<2x16xf32>
    %721 = arith.negf %720 : vector<2x16xf32>
    %722 = math.exp %721 : vector<2x16xf32>
    %cst_220 = arith.constant 1.000000e+00 : f32
    %723 = vector.broadcast %cst_220 : f32 to vector<2x16xf32>
    %724 = arith.addf %723, %722 : vector<2x16xf32>
    %725 = arith.divf %723, %724 : vector<2x16xf32>
    %726 = vector.extract_strided_slice %713 {offsets = [0, 32], sizes = [2, 16], strides = [1, 1]} : vector<2x64xf32> to vector<2x16xf32>
    %727 = math.tanh %726 : vector<2x16xf32>
    %728 = vector.extract_strided_slice %713 {offsets = [0, 48], sizes = [2, 16], strides = [1, 1]} : vector<2x64xf32> to vector<2x16xf32>
    %729 = arith.negf %728 : vector<2x16xf32>
    %730 = math.exp %729 : vector<2x16xf32>
    %cst_221 = arith.constant 1.000000e+00 : f32
    %731 = vector.broadcast %cst_221 : f32 to vector<2x16xf32>
    %732 = arith.addf %731, %730 : vector<2x16xf32>
    %733 = arith.divf %731, %732 : vector<2x16xf32>
    %734 = arith.mulf %725, %672 : vector<2x16xf32>
    %735 = arith.mulf %719, %727 : vector<2x16xf32>
    %736 = arith.addf %734, %735 : vector<2x16xf32>
    %737 = math.tanh %736 : vector<2x16xf32>
    %738 = arith.mulf %733, %737 : vector<2x16xf32>
    %c11_222 = arith.constant 11 : index
    %c0_223 = arith.constant 0 : index
    %c0_224 = arith.constant 0 : index
    %739 = vector.load %arg4[%c11_222, %c0_223, %c0_224] : memref<12x2x16xf32, #tpu.memory_space<vmem>>, vector<1x2x16xf32>
    %740 = vector.shape_cast %739 : vector<1x2x16xf32> to vector<2x16xf32>
    %741 = vector.shape_cast %738 : vector<2x16xf32> to vector<1x2x16xf32>
    tpu.vector_store %arg4[%c11_222, %c0_223, %c0_224], %741 {strides = array<i32>} : memref<12x2x16xf32, #tpu.memory_space<vmem>>, vector<1x2x16xf32>,
    %c0_225 = arith.constant 0 : index
    %c0_226 = arith.constant 0 : index
    %c0_227 = arith.constant 0 : index
    %742 = vector.load %arg1[%c0_225, %c0_226, %c0_227] : memref<12x2x64xf32, #tpu.memory_space<vmem>>, vector<1x2x64xf32>
    %743 = vector.shape_cast %742 : vector<1x2x64xf32> to vector<2x64xf32>
    %cst_228 = arith.constant dense<0.000000e+00> : vector<2x64xf32>
    %744 = tpu.matmul %706, %1, %cst_228 {dimension_numbers = #tpu.dot_dimension_numbers<[1], [0], [0], [1], [0, 0, 1, 1], [], []>} : vector<2x16xf32>, vector<16x64xf32>, vector<2x64xf32> -> vector<2x64xf32>
    %745 = arith.addf %743, %744 : vector<2x64xf32>
    %746 = vector.extract_strided_slice %745 {offsets = [0, 0], sizes = [2, 16], strides = [1, 1]} : vector<2x64xf32> to vector<2x16xf32>
    %747 = arith.negf %746 : vector<2x16xf32>
    %748 = math.exp %747 : vector<2x16xf32>
    %cst_229 = arith.constant 1.000000e+00 : f32
    %749 = vector.broadcast %cst_229 : f32 to vector<2x16xf32>
    %750 = arith.addf %749, %748 : vector<2x16xf32>
    %751 = arith.divf %749, %750 : vector<2x16xf32>
    %752 = vector.extract_strided_slice %745 {offsets = [0, 16], sizes = [2, 16], strides = [1, 1]} : vector<2x64xf32> to vector<2x16xf32>
    %753 = arith.negf %752 : vector<2x16xf32>
    %754 = math.exp %753 : vector<2x16xf32>
    %cst_230 = arith.constant 1.000000e+00 : f32
    %755 = vector.broadcast %cst_230 : f32 to vector<2x16xf32>
    %756 = arith.addf %755, %754 : vector<2x16xf32>
    %757 = arith.divf %755, %756 : vector<2x16xf32>
    %758 = vector.extract_strided_slice %745 {offsets = [0, 32], sizes = [2, 16], strides = [1, 1]} : vector<2x64xf32> to vector<2x16xf32>
    %759 = math.tanh %758 : vector<2x16xf32>
    %760 = vector.extract_strided_slice %745 {offsets = [0, 48], sizes = [2, 16], strides = [1, 1]} : vector<2x64xf32> to vector<2x16xf32>
    %761 = arith.negf %760 : vector<2x16xf32>
    %762 = math.exp %761 : vector<2x16xf32>
    %cst_231 = arith.constant 1.000000e+00 : f32
    %763 = vector.broadcast %cst_231 : f32 to vector<2x16xf32>
    %764 = arith.addf %763, %762 : vector<2x16xf32>
    %765 = arith.divf %763, %764 : vector<2x16xf32>
    %766 = arith.mulf %757, %704 : vector<2x16xf32>
    %767 = arith.mulf %751, %759 : vector<2x16xf32>
    %768 = arith.addf %766, %767 : vector<2x16xf32>
    %769 = math.tanh %768 : vector<2x16xf32>
    %770 = arith.mulf %765, %769 : vector<2x16xf32>
    %c0_232 = arith.constant 0 : index
    %c0_233 = arith.constant 0 : index
    %c0_234 = arith.constant 0 : index
    %771 = vector.load %arg5[%c0_232, %c0_233, %c0_234] : memref<12x2x16xf32, #tpu.memory_space<vmem>>, vector<1x2x16xf32>
    %772 = vector.shape_cast %771 : vector<1x2x16xf32> to vector<2x16xf32>
    %773 = vector.shape_cast %770 : vector<2x16xf32> to vector<1x2x16xf32>
    tpu.vector_store %arg5[%c0_232, %c0_233, %c0_234], %773 {strides = array<i32>} : memref<12x2x16xf32, #tpu.memory_space<vmem>>, vector<1x2x16xf32>,
    %c0_235 = arith.constant 0 : index
    %c0_236 = arith.constant 0 : index
    %774 = vector.load %arg6[%c0_235, %c0_236] : memref<2x16xf32, #tpu.memory_space<vmem>>, vector<2x16xf32>
    tpu.vector_store %arg6[%c0_235, %c0_236], %738 {strides = array<i32>} : memref<2x16xf32, #tpu.memory_space<vmem>>, vector<2x16xf32>,
    %c0_237 = arith.constant 0 : index
    %c0_238 = arith.constant 0 : index
    %775 = vector.load %arg7[%c0_237, %c0_238] : memref<2x16xf32, #tpu.memory_space<vmem>>, vector<2x16xf32>
    tpu.vector_store %arg7[%c0_237, %c0_238], %736 {strides = array<i32>} : memref<2x16xf32, #tpu.memory_space<vmem>>, vector<2x16xf32>,
    %c0_239 = arith.constant 0 : index
    %c0_240 = arith.constant 0 : index
    %776 = vector.load %arg8[%c0_239, %c0_240] : memref<2x16xf32, #tpu.memory_space<vmem>>, vector<2x16xf32>
    tpu.vector_store %arg8[%c0_239, %c0_240], %770 {strides = array<i32>} : memref<2x16xf32, #tpu.memory_space<vmem>>, vector<2x16xf32>,
    %c0_241 = arith.constant 0 : index
    %c0_242 = arith.constant 0 : index
    %777 = vector.load %arg9[%c0_241, %c0_242] : memref<2x16xf32, #tpu.memory_space<vmem>>, vector<2x16xf32>
    tpu.vector_store %arg9[%c0_241, %c0_242], %768 {strides = array<i32>} : memref<2x16xf32, #tpu.memory_space<vmem>>, vector<2x16xf32>,
    return
  }
}

module attributes {stable_mosaic.version = 11 : i64} {
  func.func @_attn_decoder_kernel(%arg0: memref<1x2x32xf32, #tpu.memory_space<vmem>>, %arg1: memref<1x2x32xf32, #tpu.memory_space<vmem>>, %arg2: memref<12x2x32xf32, #tpu.memory_space<vmem>>, %arg3: memref<6x18xf32, #tpu.memory_space<vmem>>, %arg4: memref<1x18xf32, #tpu.memory_space<vmem>>, %arg5: memref<32x12xf32, #tpu.memory_space<vmem>>, %arg6: memref<32x6xf32, #tpu.memory_space<vmem>>, %arg7: memref<6x128xf32, #tpu.memory_space<vmem>>, %arg8: memref<1x32x128xf32, #tpu.memory_space<vmem>>, %arg9: memref<1x32x128xf32, #tpu.memory_space<vmem>>, %arg10: memref<1x1x128xf32, #tpu.memory_space<vmem>>, %arg11: memref<32x6xf32, #tpu.memory_space<vmem>>, %arg12: memref<1x6xf32, #tpu.memory_space<vmem>>, %arg13: memref<5x2x6xf32, #tpu.memory_space<vmem>>) attributes {dimension_semantics = [], scalar_prefetch = 0 : i64, scratch_operands = 0 : i64, tpu.core_type = #tpu.core_type<tc>} {
    %c0 = arith.constant 0 : index
    %c0_0 = arith.constant 0 : index
    %0 = vector.load %arg3[%c0, %c0_0] : memref<6x18xf32, #tpu.memory_space<vmem>>, vector<6x18xf32>
    %c0_1 = arith.constant 0 : index
    %c0_2 = arith.constant 0 : index
    %1 = vector.load %arg4[%c0_1, %c0_2] : memref<1x18xf32, #tpu.memory_space<vmem>>, vector<1x18xf32>
    %c0_3 = arith.constant 0 : index
    %c0_4 = arith.constant 0 : index
    %2 = vector.load %arg5[%c0_3, %c0_4] : memref<32x12xf32, #tpu.memory_space<vmem>>, vector<32x12xf32>
    %c0_5 = arith.constant 0 : index
    %c0_6 = arith.constant 0 : index
    %3 = vector.load %arg6[%c0_5, %c0_6] : memref<32x6xf32, #tpu.memory_space<vmem>>, vector<32x6xf32>
    %c0_7 = arith.constant 0 : index
    %c0_8 = arith.constant 0 : index
    %4 = vector.load %arg11[%c0_7, %c0_8] : memref<32x6xf32, #tpu.memory_space<vmem>>, vector<32x6xf32>
    %c0_9 = arith.constant 0 : index
    %c0_10 = arith.constant 0 : index
    %5 = vector.load %arg12[%c0_9, %c0_10] : memref<1x6xf32, #tpu.memory_space<vmem>>, vector<1x6xf32>
    %c0_11 = arith.constant 0 : index
    %c0_12 = arith.constant 0 : index
    %6 = vector.load %arg7[%c0_11, %c0_12] : memref<6x128xf32, #tpu.memory_space<vmem>>, vector<6x128xf32>
    %c0_13 = arith.constant 0 : index
    %c0_14 = arith.constant 0 : index
    %c0_15 = arith.constant 0 : index
    %7 = vector.load %arg9[%c0_13, %c0_14, %c0_15] : memref<1x32x128xf32, #tpu.memory_space<vmem>>, vector<1x32x128xf32>
    %8 = vector.shape_cast %7 : vector<1x32x128xf32> to vector<32x128xf32>
    %c0_16 = arith.constant 0 : index
    %c0_17 = arith.constant 0 : index
    %c0_18 = arith.constant 0 : index
    %9 = vector.load %arg10[%c0_16, %c0_17, %c0_18] : memref<1x1x128xf32, #tpu.memory_space<vmem>>, vector<1x1x128xf32>
    %10 = vector.shape_cast %9 : vector<1x1x128xf32> to vector<1x128xf32>
    %c0_19 = arith.constant 0 : index
    %c0_20 = arith.constant 0 : index
    %c0_21 = arith.constant 0 : index
    %11 = vector.load %arg2[%c0_19, %c0_20, %c0_21] : memref<12x2x32xf32, #tpu.memory_space<vmem>>, vector<1x2x32xf32>
    %12 = vector.shape_cast %11 : vector<1x2x32xf32> to vector<2x32xf32>
    %c1 = arith.constant 1 : index
    %c0_22 = arith.constant 0 : index
    %c0_23 = arith.constant 0 : index
    %13 = vector.load %arg2[%c1, %c0_22, %c0_23] : memref<12x2x32xf32, #tpu.memory_space<vmem>>, vector<1x2x32xf32>
    %14 = vector.shape_cast %13 : vector<1x2x32xf32> to vector<2x32xf32>
    %c2 = arith.constant 2 : index
    %c0_24 = arith.constant 0 : index
    %c0_25 = arith.constant 0 : index
    %15 = vector.load %arg2[%c2, %c0_24, %c0_25] : memref<12x2x32xf32, #tpu.memory_space<vmem>>, vector<1x2x32xf32>
    %16 = vector.shape_cast %15 : vector<1x2x32xf32> to vector<2x32xf32>
    %c3 = arith.constant 3 : index
    %c0_26 = arith.constant 0 : index
    %c0_27 = arith.constant 0 : index
    %17 = vector.load %arg2[%c3, %c0_26, %c0_27] : memref<12x2x32xf32, #tpu.memory_space<vmem>>, vector<1x2x32xf32>
    %18 = vector.shape_cast %17 : vector<1x2x32xf32> to vector<2x32xf32>
    %c4 = arith.constant 4 : index
    %c0_28 = arith.constant 0 : index
    %c0_29 = arith.constant 0 : index
    %19 = vector.load %arg2[%c4, %c0_28, %c0_29] : memref<12x2x32xf32, #tpu.memory_space<vmem>>, vector<1x2x32xf32>
    %20 = vector.shape_cast %19 : vector<1x2x32xf32> to vector<2x32xf32>
    %c5 = arith.constant 5 : index
    %c0_30 = arith.constant 0 : index
    %c0_31 = arith.constant 0 : index
    %21 = vector.load %arg2[%c5, %c0_30, %c0_31] : memref<12x2x32xf32, #tpu.memory_space<vmem>>, vector<1x2x32xf32>
    %22 = vector.shape_cast %21 : vector<1x2x32xf32> to vector<2x32xf32>
    %c6 = arith.constant 6 : index
    %c0_32 = arith.constant 0 : index
    %c0_33 = arith.constant 0 : index
    %23 = vector.load %arg2[%c6, %c0_32, %c0_33] : memref<12x2x32xf32, #tpu.memory_space<vmem>>, vector<1x2x32xf32>
    %24 = vector.shape_cast %23 : vector<1x2x32xf32> to vector<2x32xf32>
    %c7 = arith.constant 7 : index
    %c0_34 = arith.constant 0 : index
    %c0_35 = arith.constant 0 : index
    %25 = vector.load %arg2[%c7, %c0_34, %c0_35] : memref<12x2x32xf32, #tpu.memory_space<vmem>>, vector<1x2x32xf32>
    %26 = vector.shape_cast %25 : vector<1x2x32xf32> to vector<2x32xf32>
    %c8 = arith.constant 8 : index
    %c0_36 = arith.constant 0 : index
    %c0_37 = arith.constant 0 : index
    %27 = vector.load %arg2[%c8, %c0_36, %c0_37] : memref<12x2x32xf32, #tpu.memory_space<vmem>>, vector<1x2x32xf32>
    %28 = vector.shape_cast %27 : vector<1x2x32xf32> to vector<2x32xf32>
    %c9 = arith.constant 9 : index
    %c0_38 = arith.constant 0 : index
    %c0_39 = arith.constant 0 : index
    %29 = vector.load %arg2[%c9, %c0_38, %c0_39] : memref<12x2x32xf32, #tpu.memory_space<vmem>>, vector<1x2x32xf32>
    %30 = vector.shape_cast %29 : vector<1x2x32xf32> to vector<2x32xf32>
    %c10 = arith.constant 10 : index
    %c0_40 = arith.constant 0 : index
    %c0_41 = arith.constant 0 : index
    %31 = vector.load %arg2[%c10, %c0_40, %c0_41] : memref<12x2x32xf32, #tpu.memory_space<vmem>>, vector<1x2x32xf32>
    %32 = vector.shape_cast %31 : vector<1x2x32xf32> to vector<2x32xf32>
    %c11 = arith.constant 11 : index
    %c0_42 = arith.constant 0 : index
    %c0_43 = arith.constant 0 : index
    %33 = vector.load %arg2[%c11, %c0_42, %c0_43] : memref<12x2x32xf32, #tpu.memory_space<vmem>>, vector<1x2x32xf32>
    %34 = vector.shape_cast %33 : vector<1x2x32xf32> to vector<2x32xf32>
    %c0_44 = arith.constant 0 : index
    %c0_45 = arith.constant 0 : index
    %c0_46 = arith.constant 0 : index
    %35 = vector.load %arg0[%c0_44, %c0_45, %c0_46] : memref<1x2x32xf32, #tpu.memory_space<vmem>>, vector<1x2x32xf32>
    %36 = vector.shape_cast %35 : vector<1x2x32xf32> to vector<2x32xf32>
    %c0_47 = arith.constant 0 : index
    %c0_48 = arith.constant 0 : index
    %c0_49 = arith.constant 0 : index
    %37 = vector.load %arg1[%c0_47, %c0_48, %c0_49] : memref<1x2x32xf32, #tpu.memory_space<vmem>>, vector<1x2x32xf32>
    %38 = vector.shape_cast %37 : vector<1x2x32xf32> to vector<2x32xf32>
    %cst = arith.constant 0.000000e+00 : f32
    %39 = vector.broadcast %cst : f32 to vector<2x6xf32>
    %cst_50 = arith.constant dense<0.000000e+00> : vector<2x18xf32>
    %40 = tpu.matmul %39, %0, %cst_50 {dimension_numbers = #tpu.dot_dimension_numbers<[1], [0], [0], [1], [0, 0, 1, 1], [], []>} : vector<2x6xf32>, vector<6x18xf32>, vector<2x18xf32> -> vector<2x18xf32>
    %41 = vector.broadcast %1 : vector<1x18xf32> to vector<2x18xf32>
    %42 = arith.addf %40, %41 : vector<2x18xf32>
    %43 = vector.extract_strided_slice %42 {offsets = [0, 0], sizes = [2, 12], strides = [1, 1]} : vector<2x18xf32> to vector<2x12xf32>
    %cst_51 = arith.constant dense<0.000000e+00> : vector<2x12xf32>
    %44 = tpu.matmul %36, %2, %cst_51 {dimension_numbers = #tpu.dot_dimension_numbers<[1], [0], [0], [1], [0, 0, 1, 1], [], []>} : vector<2x32xf32>, vector<32x12xf32>, vector<2x12xf32> -> vector<2x12xf32>
    %45 = arith.addf %43, %44 : vector<2x12xf32>
    %cst_52 = arith.constant dense<0xFF800000> : vector<2xf32>
    %46 = vector.multi_reduction <maximumf>, %45, %cst_52 [1] : vector<2x12xf32> to vector<2xf32>
    %47 = vector.shape_cast %46 : vector<2xf32> to vector<2x1xf32>
    %48 = vector.broadcast %47 : vector<2x1xf32> to vector<2x12xf32>
    %49 = arith.subf %45, %48 : vector<2x12xf32>
    %50 = math.exp %49 : vector<2x12xf32>
    %cst_53 = arith.constant dense<0.000000e+00> : vector<2xf32>
    %51 = vector.multi_reduction <add>, %50, %cst_53 [1] : vector<2x12xf32> to vector<2xf32>
    %52 = vector.shape_cast %51 : vector<2xf32> to vector<2x1xf32>
    %53 = tpu.reciprocal %52 {approx = true} : vector<2x1xf32> -> vector<2x1xf32>
    %54 = vector.broadcast %53 : vector<2x1xf32> to vector<2x12xf32>
    %55 = arith.mulf %50, %54 : vector<2x12xf32>
    %cst_54 = arith.constant 0.000000e+00 : f32
    %56 = vector.broadcast %cst_54 : f32 to vector<2x32xf32>
    %57 = vector.extract_strided_slice %55 {offsets = [0, 0], sizes = [2, 1], strides = [1, 1]} : vector<2x12xf32> to vector<2x1xf32>
    %58 = vector.broadcast %57 : vector<2x1xf32> to vector<2x32xf32>
    %59 = arith.mulf %58, %12 : vector<2x32xf32>
    %60 = arith.addf %56, %59 : vector<2x32xf32>
    %61 = vector.extract_strided_slice %55 {offsets = [0, 1], sizes = [2, 1], strides = [1, 1]} : vector<2x12xf32> to vector<2x1xf32>
    %62 = vector.broadcast %61 : vector<2x1xf32> to vector<2x32xf32>
    %63 = arith.mulf %62, %14 : vector<2x32xf32>
    %64 = arith.addf %60, %63 : vector<2x32xf32>
    %65 = vector.extract_strided_slice %55 {offsets = [0, 2], sizes = [2, 1], strides = [1, 1]} : vector<2x12xf32> to vector<2x1xf32>
    %66 = vector.broadcast %65 : vector<2x1xf32> to vector<2x32xf32>
    %67 = arith.mulf %66, %16 : vector<2x32xf32>
    %68 = arith.addf %64, %67 : vector<2x32xf32>
    %69 = vector.extract_strided_slice %55 {offsets = [0, 3], sizes = [2, 1], strides = [1, 1]} : vector<2x12xf32> to vector<2x1xf32>
    %70 = vector.broadcast %69 : vector<2x1xf32> to vector<2x32xf32>
    %71 = arith.mulf %70, %18 : vector<2x32xf32>
    %72 = arith.addf %68, %71 : vector<2x32xf32>
    %73 = vector.extract_strided_slice %55 {offsets = [0, 4], sizes = [2, 1], strides = [1, 1]} : vector<2x12xf32> to vector<2x1xf32>
    %74 = vector.broadcast %73 : vector<2x1xf32> to vector<2x32xf32>
    %75 = arith.mulf %74, %20 : vector<2x32xf32>
    %76 = arith.addf %72, %75 : vector<2x32xf32>
    %77 = vector.extract_strided_slice %55 {offsets = [0, 5], sizes = [2, 1], strides = [1, 1]} : vector<2x12xf32> to vector<2x1xf32>
    %78 = vector.broadcast %77 : vector<2x1xf32> to vector<2x32xf32>
    %79 = arith.mulf %78, %22 : vector<2x32xf32>
    %80 = arith.addf %76, %79 : vector<2x32xf32>
    %81 = vector.extract_strided_slice %55 {offsets = [0, 6], sizes = [2, 1], strides = [1, 1]} : vector<2x12xf32> to vector<2x1xf32>
    %82 = vector.broadcast %81 : vector<2x1xf32> to vector<2x32xf32>
    %83 = arith.mulf %82, %24 : vector<2x32xf32>
    %84 = arith.addf %80, %83 : vector<2x32xf32>
    %85 = vector.extract_strided_slice %55 {offsets = [0, 7], sizes = [2, 1], strides = [1, 1]} : vector<2x12xf32> to vector<2x1xf32>
    %86 = vector.broadcast %85 : vector<2x1xf32> to vector<2x32xf32>
    %87 = arith.mulf %86, %26 : vector<2x32xf32>
    %88 = arith.addf %84, %87 : vector<2x32xf32>
    %89 = vector.extract_strided_slice %55 {offsets = [0, 8], sizes = [2, 1], strides = [1, 1]} : vector<2x12xf32> to vector<2x1xf32>
    %90 = vector.broadcast %89 : vector<2x1xf32> to vector<2x32xf32>
    %91 = arith.mulf %90, %28 : vector<2x32xf32>
    %92 = arith.addf %88, %91 : vector<2x32xf32>
    %93 = vector.extract_strided_slice %55 {offsets = [0, 9], sizes = [2, 1], strides = [1, 1]} : vector<2x12xf32> to vector<2x1xf32>
    %94 = vector.broadcast %93 : vector<2x1xf32> to vector<2x32xf32>
    %95 = arith.mulf %94, %30 : vector<2x32xf32>
    %96 = arith.addf %92, %95 : vector<2x32xf32>
    %97 = vector.extract_strided_slice %55 {offsets = [0, 10], sizes = [2, 1], strides = [1, 1]} : vector<2x12xf32> to vector<2x1xf32>
    %98 = vector.broadcast %97 : vector<2x1xf32> to vector<2x32xf32>
    %99 = arith.mulf %98, %32 : vector<2x32xf32>
    %100 = arith.addf %96, %99 : vector<2x32xf32>
    %101 = vector.extract_strided_slice %55 {offsets = [0, 11], sizes = [2, 1], strides = [1, 1]} : vector<2x12xf32> to vector<2x1xf32>
    %102 = vector.broadcast %101 : vector<2x1xf32> to vector<2x32xf32>
    %103 = arith.mulf %102, %34 : vector<2x32xf32>
    %104 = arith.addf %100, %103 : vector<2x32xf32>
    %105 = vector.extract_strided_slice %42 {offsets = [0, 12], sizes = [2, 6], strides = [1, 1]} : vector<2x18xf32> to vector<2x6xf32>
    %cst_55 = arith.constant dense<0.000000e+00> : vector<2x6xf32>
    %106 = tpu.matmul %104, %3, %cst_55 {dimension_numbers = #tpu.dot_dimension_numbers<[1], [0], [0], [1], [0, 0, 1, 1], [], []>} : vector<2x32xf32>, vector<32x6xf32>, vector<2x6xf32> -> vector<2x6xf32>
    %107 = arith.addf %105, %106 : vector<2x6xf32>
    %cst_56 = arith.constant 0.000000e+00 : f32
    %108 = vector.broadcast %cst_56 : f32 to vector<2x6xf32>
    %109 = arith.maximumf %107, %108 : vector<2x6xf32>
    %cst_57 = arith.constant dense<0.000000e+00> : vector<2x128xf32>
    %110 = tpu.matmul %109, %6, %cst_57 {dimension_numbers = #tpu.dot_dimension_numbers<[1], [0], [0], [1], [0, 0, 1, 1], [], []>} : vector<2x6xf32>, vector<6x128xf32>, vector<2x128xf32> -> vector<2x128xf32>
    %cst_58 = arith.constant dense<0.000000e+00> : vector<2x128xf32>
    %111 = tpu.matmul %36, %8, %cst_58 {dimension_numbers = #tpu.dot_dimension_numbers<[1], [0], [0], [1], [0, 0, 1, 1], [], []>} : vector<2x32xf32>, vector<32x128xf32>, vector<2x128xf32> -> vector<2x128xf32>
    %112 = arith.addf %110, %111 : vector<2x128xf32>
    %113 = vector.broadcast %10 : vector<1x128xf32> to vector<2x128xf32>
    %114 = arith.addf %112, %113 : vector<2x128xf32>
    %115 = vector.extract_strided_slice %114 {offsets = [0, 0], sizes = [2, 32], strides = [1, 1]} : vector<2x128xf32> to vector<2x32xf32>
    %116 = arith.negf %115 : vector<2x32xf32>
    %117 = math.exp %116 : vector<2x32xf32>
    %cst_59 = arith.constant 1.000000e+00 : f32
    %118 = vector.broadcast %cst_59 : f32 to vector<2x32xf32>
    %119 = arith.addf %118, %117 : vector<2x32xf32>
    %120 = arith.divf %118, %119 : vector<2x32xf32>
    %121 = vector.extract_strided_slice %114 {offsets = [0, 32], sizes = [2, 32], strides = [1, 1]} : vector<2x128xf32> to vector<2x32xf32>
    %122 = arith.negf %121 : vector<2x32xf32>
    %123 = math.exp %122 : vector<2x32xf32>
    %cst_60 = arith.constant 1.000000e+00 : f32
    %124 = vector.broadcast %cst_60 : f32 to vector<2x32xf32>
    %125 = arith.addf %124, %123 : vector<2x32xf32>
    %126 = arith.divf %124, %125 : vector<2x32xf32>
    %127 = vector.extract_strided_slice %114 {offsets = [0, 64], sizes = [2, 32], strides = [1, 1]} : vector<2x128xf32> to vector<2x32xf32>
    %128 = math.tanh %127 : vector<2x32xf32>
    %129 = vector.extract_strided_slice %114 {offsets = [0, 96], sizes = [2, 32], strides = [1, 1]} : vector<2x128xf32> to vector<2x32xf32>
    %130 = arith.negf %129 : vector<2x32xf32>
    %131 = math.exp %130 : vector<2x32xf32>
    %cst_61 = arith.constant 1.000000e+00 : f32
    %132 = vector.broadcast %cst_61 : f32 to vector<2x32xf32>
    %133 = arith.addf %132, %131 : vector<2x32xf32>
    %134 = arith.divf %132, %133 : vector<2x32xf32>
    %135 = arith.mulf %126, %38 : vector<2x32xf32>
    %136 = arith.mulf %120, %128 : vector<2x32xf32>
    %137 = arith.addf %135, %136 : vector<2x32xf32>
    %138 = math.tanh %137 : vector<2x32xf32>
    %139 = arith.mulf %134, %138 : vector<2x32xf32>
    %cst_62 = arith.constant dense<0.000000e+00> : vector<2x6xf32>
    %140 = tpu.matmul %139, %4, %cst_62 {dimension_numbers = #tpu.dot_dimension_numbers<[1], [0], [0], [1], [0, 0, 1, 1], [], []>} : vector<2x32xf32>, vector<32x6xf32>, vector<2x6xf32> -> vector<2x6xf32>
    %141 = vector.broadcast %5 : vector<1x6xf32> to vector<2x6xf32>
    %142 = arith.addf %140, %141 : vector<2x6xf32>
    %c0_63 = arith.constant 0 : index
    %c0_64 = arith.constant 0 : index
    %c0_65 = arith.constant 0 : index
    %143 = vector.load %arg13[%c0_63, %c0_64, %c0_65] : memref<5x2x6xf32, #tpu.memory_space<vmem>>, vector<1x2x6xf32>
    %144 = vector.shape_cast %143 : vector<1x2x6xf32> to vector<2x6xf32>
    %145 = vector.shape_cast %142 : vector<2x6xf32> to vector<1x2x6xf32>
    tpu.vector_store %arg13[%c0_63, %c0_64, %c0_65], %145 {strides = array<i32>} : memref<5x2x6xf32, #tpu.memory_space<vmem>>, vector<1x2x6xf32>,
    %cst_66 = arith.constant dense<0.000000e+00> : vector<2x18xf32>
    %146 = tpu.matmul %142, %0, %cst_66 {dimension_numbers = #tpu.dot_dimension_numbers<[1], [0], [0], [1], [0, 0, 1, 1], [], []>} : vector<2x6xf32>, vector<6x18xf32>, vector<2x18xf32> -> vector<2x18xf32>
    %147 = vector.broadcast %1 : vector<1x18xf32> to vector<2x18xf32>
    %148 = arith.addf %146, %147 : vector<2x18xf32>
    %149 = vector.extract_strided_slice %148 {offsets = [0, 0], sizes = [2, 12], strides = [1, 1]} : vector<2x18xf32> to vector<2x12xf32>
    %cst_67 = arith.constant dense<0.000000e+00> : vector<2x12xf32>
    %150 = tpu.matmul %139, %2, %cst_67 {dimension_numbers = #tpu.dot_dimension_numbers<[1], [0], [0], [1], [0, 0, 1, 1], [], []>} : vector<2x32xf32>, vector<32x12xf32>, vector<2x12xf32> -> vector<2x12xf32>
    %151 = arith.addf %149, %150 : vector<2x12xf32>
    %cst_68 = arith.constant dense<0xFF800000> : vector<2xf32>
    %152 = vector.multi_reduction <maximumf>, %151, %cst_68 [1] : vector<2x12xf32> to vector<2xf32>
    %153 = vector.shape_cast %152 : vector<2xf32> to vector<2x1xf32>
    %154 = vector.broadcast %153 : vector<2x1xf32> to vector<2x12xf32>
    %155 = arith.subf %151, %154 : vector<2x12xf32>
    %156 = math.exp %155 : vector<2x12xf32>
    %cst_69 = arith.constant dense<0.000000e+00> : vector<2xf32>
    %157 = vector.multi_reduction <add>, %156, %cst_69 [1] : vector<2x12xf32> to vector<2xf32>
    %158 = vector.shape_cast %157 : vector<2xf32> to vector<2x1xf32>
    %159 = tpu.reciprocal %158 {approx = true} : vector<2x1xf32> -> vector<2x1xf32>
    %160 = vector.broadcast %159 : vector<2x1xf32> to vector<2x12xf32>
    %161 = arith.mulf %156, %160 : vector<2x12xf32>
    %cst_70 = arith.constant 0.000000e+00 : f32
    %162 = vector.broadcast %cst_70 : f32 to vector<2x32xf32>
    %163 = vector.extract_strided_slice %161 {offsets = [0, 0], sizes = [2, 1], strides = [1, 1]} : vector<2x12xf32> to vector<2x1xf32>
    %164 = vector.broadcast %163 : vector<2x1xf32> to vector<2x32xf32>
    %165 = arith.mulf %164, %12 : vector<2x32xf32>
    %166 = arith.addf %162, %165 : vector<2x32xf32>
    %167 = vector.extract_strided_slice %161 {offsets = [0, 1], sizes = [2, 1], strides = [1, 1]} : vector<2x12xf32> to vector<2x1xf32>
    %168 = vector.broadcast %167 : vector<2x1xf32> to vector<2x32xf32>
    %169 = arith.mulf %168, %14 : vector<2x32xf32>
    %170 = arith.addf %166, %169 : vector<2x32xf32>
    %171 = vector.extract_strided_slice %161 {offsets = [0, 2], sizes = [2, 1], strides = [1, 1]} : vector<2x12xf32> to vector<2x1xf32>
    %172 = vector.broadcast %171 : vector<2x1xf32> to vector<2x32xf32>
    %173 = arith.mulf %172, %16 : vector<2x32xf32>
    %174 = arith.addf %170, %173 : vector<2x32xf32>
    %175 = vector.extract_strided_slice %161 {offsets = [0, 3], sizes = [2, 1], strides = [1, 1]} : vector<2x12xf32> to vector<2x1xf32>
    %176 = vector.broadcast %175 : vector<2x1xf32> to vector<2x32xf32>
    %177 = arith.mulf %176, %18 : vector<2x32xf32>
    %178 = arith.addf %174, %177 : vector<2x32xf32>
    %179 = vector.extract_strided_slice %161 {offsets = [0, 4], sizes = [2, 1], strides = [1, 1]} : vector<2x12xf32> to vector<2x1xf32>
    %180 = vector.broadcast %179 : vector<2x1xf32> to vector<2x32xf32>
    %181 = arith.mulf %180, %20 : vector<2x32xf32>
    %182 = arith.addf %178, %181 : vector<2x32xf32>
    %183 = vector.extract_strided_slice %161 {offsets = [0, 5], sizes = [2, 1], strides = [1, 1]} : vector<2x12xf32> to vector<2x1xf32>
    %184 = vector.broadcast %183 : vector<2x1xf32> to vector<2x32xf32>
    %185 = arith.mulf %184, %22 : vector<2x32xf32>
    %186 = arith.addf %182, %185 : vector<2x32xf32>
    %187 = vector.extract_strided_slice %161 {offsets = [0, 6], sizes = [2, 1], strides = [1, 1]} : vector<2x12xf32> to vector<2x1xf32>
    %188 = vector.broadcast %187 : vector<2x1xf32> to vector<2x32xf32>
    %189 = arith.mulf %188, %24 : vector<2x32xf32>
    %190 = arith.addf %186, %189 : vector<2x32xf32>
    %191 = vector.extract_strided_slice %161 {offsets = [0, 7], sizes = [2, 1], strides = [1, 1]} : vector<2x12xf32> to vector<2x1xf32>
    %192 = vector.broadcast %191 : vector<2x1xf32> to vector<2x32xf32>
    %193 = arith.mulf %192, %26 : vector<2x32xf32>
    %194 = arith.addf %190, %193 : vector<2x32xf32>
    %195 = vector.extract_strided_slice %161 {offsets = [0, 8], sizes = [2, 1], strides = [1, 1]} : vector<2x12xf32> to vector<2x1xf32>
    %196 = vector.broadcast %195 : vector<2x1xf32> to vector<2x32xf32>
    %197 = arith.mulf %196, %28 : vector<2x32xf32>
    %198 = arith.addf %194, %197 : vector<2x32xf32>
    %199 = vector.extract_strided_slice %161 {offsets = [0, 9], sizes = [2, 1], strides = [1, 1]} : vector<2x12xf32> to vector<2x1xf32>
    %200 = vector.broadcast %199 : vector<2x1xf32> to vector<2x32xf32>
    %201 = arith.mulf %200, %30 : vector<2x32xf32>
    %202 = arith.addf %198, %201 : vector<2x32xf32>
    %203 = vector.extract_strided_slice %161 {offsets = [0, 10], sizes = [2, 1], strides = [1, 1]} : vector<2x12xf32> to vector<2x1xf32>
    %204 = vector.broadcast %203 : vector<2x1xf32> to vector<2x32xf32>
    %205 = arith.mulf %204, %32 : vector<2x32xf32>
    %206 = arith.addf %202, %205 : vector<2x32xf32>
    %207 = vector.extract_strided_slice %161 {offsets = [0, 11], sizes = [2, 1], strides = [1, 1]} : vector<2x12xf32> to vector<2x1xf32>
    %208 = vector.broadcast %207 : vector<2x1xf32> to vector<2x32xf32>
    %209 = arith.mulf %208, %34 : vector<2x32xf32>
    %210 = arith.addf %206, %209 : vector<2x32xf32>
    %211 = vector.extract_strided_slice %148 {offsets = [0, 12], sizes = [2, 6], strides = [1, 1]} : vector<2x18xf32> to vector<2x6xf32>
    %cst_71 = arith.constant dense<0.000000e+00> : vector<2x6xf32>
    %212 = tpu.matmul %210, %3, %cst_71 {dimension_numbers = #tpu.dot_dimension_numbers<[1], [0], [0], [1], [0, 0, 1, 1], [], []>} : vector<2x32xf32>, vector<32x6xf32>, vector<2x6xf32> -> vector<2x6xf32>
    %213 = arith.addf %211, %212 : vector<2x6xf32>
    %cst_72 = arith.constant 0.000000e+00 : f32
    %214 = vector.broadcast %cst_72 : f32 to vector<2x6xf32>
    %215 = arith.maximumf %213, %214 : vector<2x6xf32>
    %cst_73 = arith.constant dense<0.000000e+00> : vector<2x128xf32>
    %216 = tpu.matmul %215, %6, %cst_73 {dimension_numbers = #tpu.dot_dimension_numbers<[1], [0], [0], [1], [0, 0, 1, 1], [], []>} : vector<2x6xf32>, vector<6x128xf32>, vector<2x128xf32> -> vector<2x128xf32>
    %cst_74 = arith.constant dense<0.000000e+00> : vector<2x128xf32>
    %217 = tpu.matmul %139, %8, %cst_74 {dimension_numbers = #tpu.dot_dimension_numbers<[1], [0], [0], [1], [0, 0, 1, 1], [], []>} : vector<2x32xf32>, vector<32x128xf32>, vector<2x128xf32> -> vector<2x128xf32>
    %218 = arith.addf %216, %217 : vector<2x128xf32>
    %219 = vector.broadcast %10 : vector<1x128xf32> to vector<2x128xf32>
    %220 = arith.addf %218, %219 : vector<2x128xf32>
    %221 = vector.extract_strided_slice %220 {offsets = [0, 0], sizes = [2, 32], strides = [1, 1]} : vector<2x128xf32> to vector<2x32xf32>
    %222 = arith.negf %221 : vector<2x32xf32>
    %223 = math.exp %222 : vector<2x32xf32>
    %cst_75 = arith.constant 1.000000e+00 : f32
    %224 = vector.broadcast %cst_75 : f32 to vector<2x32xf32>
    %225 = arith.addf %224, %223 : vector<2x32xf32>
    %226 = arith.divf %224, %225 : vector<2x32xf32>
    %227 = vector.extract_strided_slice %220 {offsets = [0, 32], sizes = [2, 32], strides = [1, 1]} : vector<2x128xf32> to vector<2x32xf32>
    %228 = arith.negf %227 : vector<2x32xf32>
    %229 = math.exp %228 : vector<2x32xf32>
    %cst_76 = arith.constant 1.000000e+00 : f32
    %230 = vector.broadcast %cst_76 : f32 to vector<2x32xf32>
    %231 = arith.addf %230, %229 : vector<2x32xf32>
    %232 = arith.divf %230, %231 : vector<2x32xf32>
    %233 = vector.extract_strided_slice %220 {offsets = [0, 64], sizes = [2, 32], strides = [1, 1]} : vector<2x128xf32> to vector<2x32xf32>
    %234 = math.tanh %233 : vector<2x32xf32>
    %235 = vector.extract_strided_slice %220 {offsets = [0, 96], sizes = [2, 32], strides = [1, 1]} : vector<2x128xf32> to vector<2x32xf32>
    %236 = arith.negf %235 : vector<2x32xf32>
    %237 = math.exp %236 : vector<2x32xf32>
    %cst_77 = arith.constant 1.000000e+00 : f32
    %238 = vector.broadcast %cst_77 : f32 to vector<2x32xf32>
    %239 = arith.addf %238, %237 : vector<2x32xf32>
    %240 = arith.divf %238, %239 : vector<2x32xf32>
    %241 = arith.mulf %232, %137 : vector<2x32xf32>
    %242 = arith.mulf %226, %234 : vector<2x32xf32>
    %243 = arith.addf %241, %242 : vector<2x32xf32>
    %244 = math.tanh %243 : vector<2x32xf32>
    %245 = arith.mulf %240, %244 : vector<2x32xf32>
    %cst_78 = arith.constant dense<0.000000e+00> : vector<2x6xf32>
    %246 = tpu.matmul %245, %4, %cst_78 {dimension_numbers = #tpu.dot_dimension_numbers<[1], [0], [0], [1], [0, 0, 1, 1], [], []>} : vector<2x32xf32>, vector<32x6xf32>, vector<2x6xf32> -> vector<2x6xf32>
    %247 = vector.broadcast %5 : vector<1x6xf32> to vector<2x6xf32>
    %248 = arith.addf %246, %247 : vector<2x6xf32>
    %c1_79 = arith.constant 1 : index
    %c0_80 = arith.constant 0 : index
    %c0_81 = arith.constant 0 : index
    %249 = vector.load %arg13[%c1_79, %c0_80, %c0_81] : memref<5x2x6xf32, #tpu.memory_space<vmem>>, vector<1x2x6xf32>
    %250 = vector.shape_cast %249 : vector<1x2x6xf32> to vector<2x6xf32>
    %251 = vector.shape_cast %248 : vector<2x6xf32> to vector<1x2x6xf32>
    tpu.vector_store %arg13[%c1_79, %c0_80, %c0_81], %251 {strides = array<i32>} : memref<5x2x6xf32, #tpu.memory_space<vmem>>, vector<1x2x6xf32>,
    %cst_82 = arith.constant dense<0.000000e+00> : vector<2x18xf32>
    %252 = tpu.matmul %248, %0, %cst_82 {dimension_numbers = #tpu.dot_dimension_numbers<[1], [0], [0], [1], [0, 0, 1, 1], [], []>} : vector<2x6xf32>, vector<6x18xf32>, vector<2x18xf32> -> vector<2x18xf32>
    %253 = vector.broadcast %1 : vector<1x18xf32> to vector<2x18xf32>
    %254 = arith.addf %252, %253 : vector<2x18xf32>
    %255 = vector.extract_strided_slice %254 {offsets = [0, 0], sizes = [2, 12], strides = [1, 1]} : vector<2x18xf32> to vector<2x12xf32>
    %cst_83 = arith.constant dense<0.000000e+00> : vector<2x12xf32>
    %256 = tpu.matmul %245, %2, %cst_83 {dimension_numbers = #tpu.dot_dimension_numbers<[1], [0], [0], [1], [0, 0, 1, 1], [], []>} : vector<2x32xf32>, vector<32x12xf32>, vector<2x12xf32> -> vector<2x12xf32>
    %257 = arith.addf %255, %256 : vector<2x12xf32>
    %cst_84 = arith.constant dense<0xFF800000> : vector<2xf32>
    %258 = vector.multi_reduction <maximumf>, %257, %cst_84 [1] : vector<2x12xf32> to vector<2xf32>
    %259 = vector.shape_cast %258 : vector<2xf32> to vector<2x1xf32>
    %260 = vector.broadcast %259 : vector<2x1xf32> to vector<2x12xf32>
    %261 = arith.subf %257, %260 : vector<2x12xf32>
    %262 = math.exp %261 : vector<2x12xf32>
    %cst_85 = arith.constant dense<0.000000e+00> : vector<2xf32>
    %263 = vector.multi_reduction <add>, %262, %cst_85 [1] : vector<2x12xf32> to vector<2xf32>
    %264 = vector.shape_cast %263 : vector<2xf32> to vector<2x1xf32>
    %265 = tpu.reciprocal %264 {approx = true} : vector<2x1xf32> -> vector<2x1xf32>
    %266 = vector.broadcast %265 : vector<2x1xf32> to vector<2x12xf32>
    %267 = arith.mulf %262, %266 : vector<2x12xf32>
    %cst_86 = arith.constant 0.000000e+00 : f32
    %268 = vector.broadcast %cst_86 : f32 to vector<2x32xf32>
    %269 = vector.extract_strided_slice %267 {offsets = [0, 0], sizes = [2, 1], strides = [1, 1]} : vector<2x12xf32> to vector<2x1xf32>
    %270 = vector.broadcast %269 : vector<2x1xf32> to vector<2x32xf32>
    %271 = arith.mulf %270, %12 : vector<2x32xf32>
    %272 = arith.addf %268, %271 : vector<2x32xf32>
    %273 = vector.extract_strided_slice %267 {offsets = [0, 1], sizes = [2, 1], strides = [1, 1]} : vector<2x12xf32> to vector<2x1xf32>
    %274 = vector.broadcast %273 : vector<2x1xf32> to vector<2x32xf32>
    %275 = arith.mulf %274, %14 : vector<2x32xf32>
    %276 = arith.addf %272, %275 : vector<2x32xf32>
    %277 = vector.extract_strided_slice %267 {offsets = [0, 2], sizes = [2, 1], strides = [1, 1]} : vector<2x12xf32> to vector<2x1xf32>
    %278 = vector.broadcast %277 : vector<2x1xf32> to vector<2x32xf32>
    %279 = arith.mulf %278, %16 : vector<2x32xf32>
    %280 = arith.addf %276, %279 : vector<2x32xf32>
    %281 = vector.extract_strided_slice %267 {offsets = [0, 3], sizes = [2, 1], strides = [1, 1]} : vector<2x12xf32> to vector<2x1xf32>
    %282 = vector.broadcast %281 : vector<2x1xf32> to vector<2x32xf32>
    %283 = arith.mulf %282, %18 : vector<2x32xf32>
    %284 = arith.addf %280, %283 : vector<2x32xf32>
    %285 = vector.extract_strided_slice %267 {offsets = [0, 4], sizes = [2, 1], strides = [1, 1]} : vector<2x12xf32> to vector<2x1xf32>
    %286 = vector.broadcast %285 : vector<2x1xf32> to vector<2x32xf32>
    %287 = arith.mulf %286, %20 : vector<2x32xf32>
    %288 = arith.addf %284, %287 : vector<2x32xf32>
    %289 = vector.extract_strided_slice %267 {offsets = [0, 5], sizes = [2, 1], strides = [1, 1]} : vector<2x12xf32> to vector<2x1xf32>
    %290 = vector.broadcast %289 : vector<2x1xf32> to vector<2x32xf32>
    %291 = arith.mulf %290, %22 : vector<2x32xf32>
    %292 = arith.addf %288, %291 : vector<2x32xf32>
    %293 = vector.extract_strided_slice %267 {offsets = [0, 6], sizes = [2, 1], strides = [1, 1]} : vector<2x12xf32> to vector<2x1xf32>
    %294 = vector.broadcast %293 : vector<2x1xf32> to vector<2x32xf32>
    %295 = arith.mulf %294, %24 : vector<2x32xf32>
    %296 = arith.addf %292, %295 : vector<2x32xf32>
    %297 = vector.extract_strided_slice %267 {offsets = [0, 7], sizes = [2, 1], strides = [1, 1]} : vector<2x12xf32> to vector<2x1xf32>
    %298 = vector.broadcast %297 : vector<2x1xf32> to vector<2x32xf32>
    %299 = arith.mulf %298, %26 : vector<2x32xf32>
    %300 = arith.addf %296, %299 : vector<2x32xf32>
    %301 = vector.extract_strided_slice %267 {offsets = [0, 8], sizes = [2, 1], strides = [1, 1]} : vector<2x12xf32> to vector<2x1xf32>
    %302 = vector.broadcast %301 : vector<2x1xf32> to vector<2x32xf32>
    %303 = arith.mulf %302, %28 : vector<2x32xf32>
    %304 = arith.addf %300, %303 : vector<2x32xf32>
    %305 = vector.extract_strided_slice %267 {offsets = [0, 9], sizes = [2, 1], strides = [1, 1]} : vector<2x12xf32> to vector<2x1xf32>
    %306 = vector.broadcast %305 : vector<2x1xf32> to vector<2x32xf32>
    %307 = arith.mulf %306, %30 : vector<2x32xf32>
    %308 = arith.addf %304, %307 : vector<2x32xf32>
    %309 = vector.extract_strided_slice %267 {offsets = [0, 10], sizes = [2, 1], strides = [1, 1]} : vector<2x12xf32> to vector<2x1xf32>
    %310 = vector.broadcast %309 : vector<2x1xf32> to vector<2x32xf32>
    %311 = arith.mulf %310, %32 : vector<2x32xf32>
    %312 = arith.addf %308, %311 : vector<2x32xf32>
    %313 = vector.extract_strided_slice %267 {offsets = [0, 11], sizes = [2, 1], strides = [1, 1]} : vector<2x12xf32> to vector<2x1xf32>
    %314 = vector.broadcast %313 : vector<2x1xf32> to vector<2x32xf32>
    %315 = arith.mulf %314, %34 : vector<2x32xf32>
    %316 = arith.addf %312, %315 : vector<2x32xf32>
    %317 = vector.extract_strided_slice %254 {offsets = [0, 12], sizes = [2, 6], strides = [1, 1]} : vector<2x18xf32> to vector<2x6xf32>
    %cst_87 = arith.constant dense<0.000000e+00> : vector<2x6xf32>
    %318 = tpu.matmul %316, %3, %cst_87 {dimension_numbers = #tpu.dot_dimension_numbers<[1], [0], [0], [1], [0, 0, 1, 1], [], []>} : vector<2x32xf32>, vector<32x6xf32>, vector<2x6xf32> -> vector<2x6xf32>
    %319 = arith.addf %317, %318 : vector<2x6xf32>
    %cst_88 = arith.constant 0.000000e+00 : f32
    %320 = vector.broadcast %cst_88 : f32 to vector<2x6xf32>
    %321 = arith.maximumf %319, %320 : vector<2x6xf32>
    %cst_89 = arith.constant dense<0.000000e+00> : vector<2x128xf32>
    %322 = tpu.matmul %321, %6, %cst_89 {dimension_numbers = #tpu.dot_dimension_numbers<[1], [0], [0], [1], [0, 0, 1, 1], [], []>} : vector<2x6xf32>, vector<6x128xf32>, vector<2x128xf32> -> vector<2x128xf32>
    %cst_90 = arith.constant dense<0.000000e+00> : vector<2x128xf32>
    %323 = tpu.matmul %245, %8, %cst_90 {dimension_numbers = #tpu.dot_dimension_numbers<[1], [0], [0], [1], [0, 0, 1, 1], [], []>} : vector<2x32xf32>, vector<32x128xf32>, vector<2x128xf32> -> vector<2x128xf32>
    %324 = arith.addf %322, %323 : vector<2x128xf32>
    %325 = vector.broadcast %10 : vector<1x128xf32> to vector<2x128xf32>
    %326 = arith.addf %324, %325 : vector<2x128xf32>
    %327 = vector.extract_strided_slice %326 {offsets = [0, 0], sizes = [2, 32], strides = [1, 1]} : vector<2x128xf32> to vector<2x32xf32>
    %328 = arith.negf %327 : vector<2x32xf32>
    %329 = math.exp %328 : vector<2x32xf32>
    %cst_91 = arith.constant 1.000000e+00 : f32
    %330 = vector.broadcast %cst_91 : f32 to vector<2x32xf32>
    %331 = arith.addf %330, %329 : vector<2x32xf32>
    %332 = arith.divf %330, %331 : vector<2x32xf32>
    %333 = vector.extract_strided_slice %326 {offsets = [0, 32], sizes = [2, 32], strides = [1, 1]} : vector<2x128xf32> to vector<2x32xf32>
    %334 = arith.negf %333 : vector<2x32xf32>
    %335 = math.exp %334 : vector<2x32xf32>
    %cst_92 = arith.constant 1.000000e+00 : f32
    %336 = vector.broadcast %cst_92 : f32 to vector<2x32xf32>
    %337 = arith.addf %336, %335 : vector<2x32xf32>
    %338 = arith.divf %336, %337 : vector<2x32xf32>
    %339 = vector.extract_strided_slice %326 {offsets = [0, 64], sizes = [2, 32], strides = [1, 1]} : vector<2x128xf32> to vector<2x32xf32>
    %340 = math.tanh %339 : vector<2x32xf32>
    %341 = vector.extract_strided_slice %326 {offsets = [0, 96], sizes = [2, 32], strides = [1, 1]} : vector<2x128xf32> to vector<2x32xf32>
    %342 = arith.negf %341 : vector<2x32xf32>
    %343 = math.exp %342 : vector<2x32xf32>
    %cst_93 = arith.constant 1.000000e+00 : f32
    %344 = vector.broadcast %cst_93 : f32 to vector<2x32xf32>
    %345 = arith.addf %344, %343 : vector<2x32xf32>
    %346 = arith.divf %344, %345 : vector<2x32xf32>
    %347 = arith.mulf %338, %243 : vector<2x32xf32>
    %348 = arith.mulf %332, %340 : vector<2x32xf32>
    %349 = arith.addf %347, %348 : vector<2x32xf32>
    %350 = math.tanh %349 : vector<2x32xf32>
    %351 = arith.mulf %346, %350 : vector<2x32xf32>
    %cst_94 = arith.constant dense<0.000000e+00> : vector<2x6xf32>
    %352 = tpu.matmul %351, %4, %cst_94 {dimension_numbers = #tpu.dot_dimension_numbers<[1], [0], [0], [1], [0, 0, 1, 1], [], []>} : vector<2x32xf32>, vector<32x6xf32>, vector<2x6xf32> -> vector<2x6xf32>
    %353 = vector.broadcast %5 : vector<1x6xf32> to vector<2x6xf32>
    %354 = arith.addf %352, %353 : vector<2x6xf32>
    %c2_95 = arith.constant 2 : index
    %c0_96 = arith.constant 0 : index
    %c0_97 = arith.constant 0 : index
    %355 = vector.load %arg13[%c2_95, %c0_96, %c0_97] : memref<5x2x6xf32, #tpu.memory_space<vmem>>, vector<1x2x6xf32>
    %356 = vector.shape_cast %355 : vector<1x2x6xf32> to vector<2x6xf32>
    %357 = vector.shape_cast %354 : vector<2x6xf32> to vector<1x2x6xf32>
    tpu.vector_store %arg13[%c2_95, %c0_96, %c0_97], %357 {strides = array<i32>} : memref<5x2x6xf32, #tpu.memory_space<vmem>>, vector<1x2x6xf32>,
    %cst_98 = arith.constant dense<0.000000e+00> : vector<2x18xf32>
    %358 = tpu.matmul %354, %0, %cst_98 {dimension_numbers = #tpu.dot_dimension_numbers<[1], [0], [0], [1], [0, 0, 1, 1], [], []>} : vector<2x6xf32>, vector<6x18xf32>, vector<2x18xf32> -> vector<2x18xf32>
    %359 = vector.broadcast %1 : vector<1x18xf32> to vector<2x18xf32>
    %360 = arith.addf %358, %359 : vector<2x18xf32>
    %361 = vector.extract_strided_slice %360 {offsets = [0, 0], sizes = [2, 12], strides = [1, 1]} : vector<2x18xf32> to vector<2x12xf32>
    %cst_99 = arith.constant dense<0.000000e+00> : vector<2x12xf32>
    %362 = tpu.matmul %351, %2, %cst_99 {dimension_numbers = #tpu.dot_dimension_numbers<[1], [0], [0], [1], [0, 0, 1, 1], [], []>} : vector<2x32xf32>, vector<32x12xf32>, vector<2x12xf32> -> vector<2x12xf32>
    %363 = arith.addf %361, %362 : vector<2x12xf32>
    %cst_100 = arith.constant dense<0xFF800000> : vector<2xf32>
    %364 = vector.multi_reduction <maximumf>, %363, %cst_100 [1] : vector<2x12xf32> to vector<2xf32>
    %365 = vector.shape_cast %364 : vector<2xf32> to vector<2x1xf32>
    %366 = vector.broadcast %365 : vector<2x1xf32> to vector<2x12xf32>
    %367 = arith.subf %363, %366 : vector<2x12xf32>
    %368 = math.exp %367 : vector<2x12xf32>
    %cst_101 = arith.constant dense<0.000000e+00> : vector<2xf32>
    %369 = vector.multi_reduction <add>, %368, %cst_101 [1] : vector<2x12xf32> to vector<2xf32>
    %370 = vector.shape_cast %369 : vector<2xf32> to vector<2x1xf32>
    %371 = tpu.reciprocal %370 {approx = true} : vector<2x1xf32> -> vector<2x1xf32>
    %372 = vector.broadcast %371 : vector<2x1xf32> to vector<2x12xf32>
    %373 = arith.mulf %368, %372 : vector<2x12xf32>
    %cst_102 = arith.constant 0.000000e+00 : f32
    %374 = vector.broadcast %cst_102 : f32 to vector<2x32xf32>
    %375 = vector.extract_strided_slice %373 {offsets = [0, 0], sizes = [2, 1], strides = [1, 1]} : vector<2x12xf32> to vector<2x1xf32>
    %376 = vector.broadcast %375 : vector<2x1xf32> to vector<2x32xf32>
    %377 = arith.mulf %376, %12 : vector<2x32xf32>
    %378 = arith.addf %374, %377 : vector<2x32xf32>
    %379 = vector.extract_strided_slice %373 {offsets = [0, 1], sizes = [2, 1], strides = [1, 1]} : vector<2x12xf32> to vector<2x1xf32>
    %380 = vector.broadcast %379 : vector<2x1xf32> to vector<2x32xf32>
    %381 = arith.mulf %380, %14 : vector<2x32xf32>
    %382 = arith.addf %378, %381 : vector<2x32xf32>
    %383 = vector.extract_strided_slice %373 {offsets = [0, 2], sizes = [2, 1], strides = [1, 1]} : vector<2x12xf32> to vector<2x1xf32>
    %384 = vector.broadcast %383 : vector<2x1xf32> to vector<2x32xf32>
    %385 = arith.mulf %384, %16 : vector<2x32xf32>
    %386 = arith.addf %382, %385 : vector<2x32xf32>
    %387 = vector.extract_strided_slice %373 {offsets = [0, 3], sizes = [2, 1], strides = [1, 1]} : vector<2x12xf32> to vector<2x1xf32>
    %388 = vector.broadcast %387 : vector<2x1xf32> to vector<2x32xf32>
    %389 = arith.mulf %388, %18 : vector<2x32xf32>
    %390 = arith.addf %386, %389 : vector<2x32xf32>
    %391 = vector.extract_strided_slice %373 {offsets = [0, 4], sizes = [2, 1], strides = [1, 1]} : vector<2x12xf32> to vector<2x1xf32>
    %392 = vector.broadcast %391 : vector<2x1xf32> to vector<2x32xf32>
    %393 = arith.mulf %392, %20 : vector<2x32xf32>
    %394 = arith.addf %390, %393 : vector<2x32xf32>
    %395 = vector.extract_strided_slice %373 {offsets = [0, 5], sizes = [2, 1], strides = [1, 1]} : vector<2x12xf32> to vector<2x1xf32>
    %396 = vector.broadcast %395 : vector<2x1xf32> to vector<2x32xf32>
    %397 = arith.mulf %396, %22 : vector<2x32xf32>
    %398 = arith.addf %394, %397 : vector<2x32xf32>
    %399 = vector.extract_strided_slice %373 {offsets = [0, 6], sizes = [2, 1], strides = [1, 1]} : vector<2x12xf32> to vector<2x1xf32>
    %400 = vector.broadcast %399 : vector<2x1xf32> to vector<2x32xf32>
    %401 = arith.mulf %400, %24 : vector<2x32xf32>
    %402 = arith.addf %398, %401 : vector<2x32xf32>
    %403 = vector.extract_strided_slice %373 {offsets = [0, 7], sizes = [2, 1], strides = [1, 1]} : vector<2x12xf32> to vector<2x1xf32>
    %404 = vector.broadcast %403 : vector<2x1xf32> to vector<2x32xf32>
    %405 = arith.mulf %404, %26 : vector<2x32xf32>
    %406 = arith.addf %402, %405 : vector<2x32xf32>
    %407 = vector.extract_strided_slice %373 {offsets = [0, 8], sizes = [2, 1], strides = [1, 1]} : vector<2x12xf32> to vector<2x1xf32>
    %408 = vector.broadcast %407 : vector<2x1xf32> to vector<2x32xf32>
    %409 = arith.mulf %408, %28 : vector<2x32xf32>
    %410 = arith.addf %406, %409 : vector<2x32xf32>
    %411 = vector.extract_strided_slice %373 {offsets = [0, 9], sizes = [2, 1], strides = [1, 1]} : vector<2x12xf32> to vector<2x1xf32>
    %412 = vector.broadcast %411 : vector<2x1xf32> to vector<2x32xf32>
    %413 = arith.mulf %412, %30 : vector<2x32xf32>
    %414 = arith.addf %410, %413 : vector<2x32xf32>
    %415 = vector.extract_strided_slice %373 {offsets = [0, 10], sizes = [2, 1], strides = [1, 1]} : vector<2x12xf32> to vector<2x1xf32>
    %416 = vector.broadcast %415 : vector<2x1xf32> to vector<2x32xf32>
    %417 = arith.mulf %416, %32 : vector<2x32xf32>
    %418 = arith.addf %414, %417 : vector<2x32xf32>
    %419 = vector.extract_strided_slice %373 {offsets = [0, 11], sizes = [2, 1], strides = [1, 1]} : vector<2x12xf32> to vector<2x1xf32>
    %420 = vector.broadcast %419 : vector<2x1xf32> to vector<2x32xf32>
    %421 = arith.mulf %420, %34 : vector<2x32xf32>
    %422 = arith.addf %418, %421 : vector<2x32xf32>
    %423 = vector.extract_strided_slice %360 {offsets = [0, 12], sizes = [2, 6], strides = [1, 1]} : vector<2x18xf32> to vector<2x6xf32>
    %cst_103 = arith.constant dense<0.000000e+00> : vector<2x6xf32>
    %424 = tpu.matmul %422, %3, %cst_103 {dimension_numbers = #tpu.dot_dimension_numbers<[1], [0], [0], [1], [0, 0, 1, 1], [], []>} : vector<2x32xf32>, vector<32x6xf32>, vector<2x6xf32> -> vector<2x6xf32>
    %425 = arith.addf %423, %424 : vector<2x6xf32>
    %cst_104 = arith.constant 0.000000e+00 : f32
    %426 = vector.broadcast %cst_104 : f32 to vector<2x6xf32>
    %427 = arith.maximumf %425, %426 : vector<2x6xf32>
    %cst_105 = arith.constant dense<0.000000e+00> : vector<2x128xf32>
    %428 = tpu.matmul %427, %6, %cst_105 {dimension_numbers = #tpu.dot_dimension_numbers<[1], [0], [0], [1], [0, 0, 1, 1], [], []>} : vector<2x6xf32>, vector<6x128xf32>, vector<2x128xf32> -> vector<2x128xf32>
    %cst_106 = arith.constant dense<0.000000e+00> : vector<2x128xf32>
    %429 = tpu.matmul %351, %8, %cst_106 {dimension_numbers = #tpu.dot_dimension_numbers<[1], [0], [0], [1], [0, 0, 1, 1], [], []>} : vector<2x32xf32>, vector<32x128xf32>, vector<2x128xf32> -> vector<2x128xf32>
    %430 = arith.addf %428, %429 : vector<2x128xf32>
    %431 = vector.broadcast %10 : vector<1x128xf32> to vector<2x128xf32>
    %432 = arith.addf %430, %431 : vector<2x128xf32>
    %433 = vector.extract_strided_slice %432 {offsets = [0, 0], sizes = [2, 32], strides = [1, 1]} : vector<2x128xf32> to vector<2x32xf32>
    %434 = arith.negf %433 : vector<2x32xf32>
    %435 = math.exp %434 : vector<2x32xf32>
    %cst_107 = arith.constant 1.000000e+00 : f32
    %436 = vector.broadcast %cst_107 : f32 to vector<2x32xf32>
    %437 = arith.addf %436, %435 : vector<2x32xf32>
    %438 = arith.divf %436, %437 : vector<2x32xf32>
    %439 = vector.extract_strided_slice %432 {offsets = [0, 32], sizes = [2, 32], strides = [1, 1]} : vector<2x128xf32> to vector<2x32xf32>
    %440 = arith.negf %439 : vector<2x32xf32>
    %441 = math.exp %440 : vector<2x32xf32>
    %cst_108 = arith.constant 1.000000e+00 : f32
    %442 = vector.broadcast %cst_108 : f32 to vector<2x32xf32>
    %443 = arith.addf %442, %441 : vector<2x32xf32>
    %444 = arith.divf %442, %443 : vector<2x32xf32>
    %445 = vector.extract_strided_slice %432 {offsets = [0, 64], sizes = [2, 32], strides = [1, 1]} : vector<2x128xf32> to vector<2x32xf32>
    %446 = math.tanh %445 : vector<2x32xf32>
    %447 = vector.extract_strided_slice %432 {offsets = [0, 96], sizes = [2, 32], strides = [1, 1]} : vector<2x128xf32> to vector<2x32xf32>
    %448 = arith.negf %447 : vector<2x32xf32>
    %449 = math.exp %448 : vector<2x32xf32>
    %cst_109 = arith.constant 1.000000e+00 : f32
    %450 = vector.broadcast %cst_109 : f32 to vector<2x32xf32>
    %451 = arith.addf %450, %449 : vector<2x32xf32>
    %452 = arith.divf %450, %451 : vector<2x32xf32>
    %453 = arith.mulf %444, %349 : vector<2x32xf32>
    %454 = arith.mulf %438, %446 : vector<2x32xf32>
    %455 = arith.addf %453, %454 : vector<2x32xf32>
    %456 = math.tanh %455 : vector<2x32xf32>
    %457 = arith.mulf %452, %456 : vector<2x32xf32>
    %cst_110 = arith.constant dense<0.000000e+00> : vector<2x6xf32>
    %458 = tpu.matmul %457, %4, %cst_110 {dimension_numbers = #tpu.dot_dimension_numbers<[1], [0], [0], [1], [0, 0, 1, 1], [], []>} : vector<2x32xf32>, vector<32x6xf32>, vector<2x6xf32> -> vector<2x6xf32>
    %459 = vector.broadcast %5 : vector<1x6xf32> to vector<2x6xf32>
    %460 = arith.addf %458, %459 : vector<2x6xf32>
    %c3_111 = arith.constant 3 : index
    %c0_112 = arith.constant 0 : index
    %c0_113 = arith.constant 0 : index
    %461 = vector.load %arg13[%c3_111, %c0_112, %c0_113] : memref<5x2x6xf32, #tpu.memory_space<vmem>>, vector<1x2x6xf32>
    %462 = vector.shape_cast %461 : vector<1x2x6xf32> to vector<2x6xf32>
    %463 = vector.shape_cast %460 : vector<2x6xf32> to vector<1x2x6xf32>
    tpu.vector_store %arg13[%c3_111, %c0_112, %c0_113], %463 {strides = array<i32>} : memref<5x2x6xf32, #tpu.memory_space<vmem>>, vector<1x2x6xf32>,
    %cst_114 = arith.constant dense<0.000000e+00> : vector<2x18xf32>
    %464 = tpu.matmul %460, %0, %cst_114 {dimension_numbers = #tpu.dot_dimension_numbers<[1], [0], [0], [1], [0, 0, 1, 1], [], []>} : vector<2x6xf32>, vector<6x18xf32>, vector<2x18xf32> -> vector<2x18xf32>
    %465 = vector.broadcast %1 : vector<1x18xf32> to vector<2x18xf32>
    %466 = arith.addf %464, %465 : vector<2x18xf32>
    %467 = vector.extract_strided_slice %466 {offsets = [0, 0], sizes = [2, 12], strides = [1, 1]} : vector<2x18xf32> to vector<2x12xf32>
    %cst_115 = arith.constant dense<0.000000e+00> : vector<2x12xf32>
    %468 = tpu.matmul %457, %2, %cst_115 {dimension_numbers = #tpu.dot_dimension_numbers<[1], [0], [0], [1], [0, 0, 1, 1], [], []>} : vector<2x32xf32>, vector<32x12xf32>, vector<2x12xf32> -> vector<2x12xf32>
    %469 = arith.addf %467, %468 : vector<2x12xf32>
    %cst_116 = arith.constant dense<0xFF800000> : vector<2xf32>
    %470 = vector.multi_reduction <maximumf>, %469, %cst_116 [1] : vector<2x12xf32> to vector<2xf32>
    %471 = vector.shape_cast %470 : vector<2xf32> to vector<2x1xf32>
    %472 = vector.broadcast %471 : vector<2x1xf32> to vector<2x12xf32>
    %473 = arith.subf %469, %472 : vector<2x12xf32>
    %474 = math.exp %473 : vector<2x12xf32>
    %cst_117 = arith.constant dense<0.000000e+00> : vector<2xf32>
    %475 = vector.multi_reduction <add>, %474, %cst_117 [1] : vector<2x12xf32> to vector<2xf32>
    %476 = vector.shape_cast %475 : vector<2xf32> to vector<2x1xf32>
    %477 = tpu.reciprocal %476 {approx = true} : vector<2x1xf32> -> vector<2x1xf32>
    %478 = vector.broadcast %477 : vector<2x1xf32> to vector<2x12xf32>
    %479 = arith.mulf %474, %478 : vector<2x12xf32>
    %cst_118 = arith.constant 0.000000e+00 : f32
    %480 = vector.broadcast %cst_118 : f32 to vector<2x32xf32>
    %481 = vector.extract_strided_slice %479 {offsets = [0, 0], sizes = [2, 1], strides = [1, 1]} : vector<2x12xf32> to vector<2x1xf32>
    %482 = vector.broadcast %481 : vector<2x1xf32> to vector<2x32xf32>
    %483 = arith.mulf %482, %12 : vector<2x32xf32>
    %484 = arith.addf %480, %483 : vector<2x32xf32>
    %485 = vector.extract_strided_slice %479 {offsets = [0, 1], sizes = [2, 1], strides = [1, 1]} : vector<2x12xf32> to vector<2x1xf32>
    %486 = vector.broadcast %485 : vector<2x1xf32> to vector<2x32xf32>
    %487 = arith.mulf %486, %14 : vector<2x32xf32>
    %488 = arith.addf %484, %487 : vector<2x32xf32>
    %489 = vector.extract_strided_slice %479 {offsets = [0, 2], sizes = [2, 1], strides = [1, 1]} : vector<2x12xf32> to vector<2x1xf32>
    %490 = vector.broadcast %489 : vector<2x1xf32> to vector<2x32xf32>
    %491 = arith.mulf %490, %16 : vector<2x32xf32>
    %492 = arith.addf %488, %491 : vector<2x32xf32>
    %493 = vector.extract_strided_slice %479 {offsets = [0, 3], sizes = [2, 1], strides = [1, 1]} : vector<2x12xf32> to vector<2x1xf32>
    %494 = vector.broadcast %493 : vector<2x1xf32> to vector<2x32xf32>
    %495 = arith.mulf %494, %18 : vector<2x32xf32>
    %496 = arith.addf %492, %495 : vector<2x32xf32>
    %497 = vector.extract_strided_slice %479 {offsets = [0, 4], sizes = [2, 1], strides = [1, 1]} : vector<2x12xf32> to vector<2x1xf32>
    %498 = vector.broadcast %497 : vector<2x1xf32> to vector<2x32xf32>
    %499 = arith.mulf %498, %20 : vector<2x32xf32>
    %500 = arith.addf %496, %499 : vector<2x32xf32>
    %501 = vector.extract_strided_slice %479 {offsets = [0, 5], sizes = [2, 1], strides = [1, 1]} : vector<2x12xf32> to vector<2x1xf32>
    %502 = vector.broadcast %501 : vector<2x1xf32> to vector<2x32xf32>
    %503 = arith.mulf %502, %22 : vector<2x32xf32>
    %504 = arith.addf %500, %503 : vector<2x32xf32>
    %505 = vector.extract_strided_slice %479 {offsets = [0, 6], sizes = [2, 1], strides = [1, 1]} : vector<2x12xf32> to vector<2x1xf32>
    %506 = vector.broadcast %505 : vector<2x1xf32> to vector<2x32xf32>
    %507 = arith.mulf %506, %24 : vector<2x32xf32>
    %508 = arith.addf %504, %507 : vector<2x32xf32>
    %509 = vector.extract_strided_slice %479 {offsets = [0, 7], sizes = [2, 1], strides = [1, 1]} : vector<2x12xf32> to vector<2x1xf32>
    %510 = vector.broadcast %509 : vector<2x1xf32> to vector<2x32xf32>
    %511 = arith.mulf %510, %26 : vector<2x32xf32>
    %512 = arith.addf %508, %511 : vector<2x32xf32>
    %513 = vector.extract_strided_slice %479 {offsets = [0, 8], sizes = [2, 1], strides = [1, 1]} : vector<2x12xf32> to vector<2x1xf32>
    %514 = vector.broadcast %513 : vector<2x1xf32> to vector<2x32xf32>
    %515 = arith.mulf %514, %28 : vector<2x32xf32>
    %516 = arith.addf %512, %515 : vector<2x32xf32>
    %517 = vector.extract_strided_slice %479 {offsets = [0, 9], sizes = [2, 1], strides = [1, 1]} : vector<2x12xf32> to vector<2x1xf32>
    %518 = vector.broadcast %517 : vector<2x1xf32> to vector<2x32xf32>
    %519 = arith.mulf %518, %30 : vector<2x32xf32>
    %520 = arith.addf %516, %519 : vector<2x32xf32>
    %521 = vector.extract_strided_slice %479 {offsets = [0, 10], sizes = [2, 1], strides = [1, 1]} : vector<2x12xf32> to vector<2x1xf32>
    %522 = vector.broadcast %521 : vector<2x1xf32> to vector<2x32xf32>
    %523 = arith.mulf %522, %32 : vector<2x32xf32>
    %524 = arith.addf %520, %523 : vector<2x32xf32>
    %525 = vector.extract_strided_slice %479 {offsets = [0, 11], sizes = [2, 1], strides = [1, 1]} : vector<2x12xf32> to vector<2x1xf32>
    %526 = vector.broadcast %525 : vector<2x1xf32> to vector<2x32xf32>
    %527 = arith.mulf %526, %34 : vector<2x32xf32>
    %528 = arith.addf %524, %527 : vector<2x32xf32>
    %529 = vector.extract_strided_slice %466 {offsets = [0, 12], sizes = [2, 6], strides = [1, 1]} : vector<2x18xf32> to vector<2x6xf32>
    %cst_119 = arith.constant dense<0.000000e+00> : vector<2x6xf32>
    %530 = tpu.matmul %528, %3, %cst_119 {dimension_numbers = #tpu.dot_dimension_numbers<[1], [0], [0], [1], [0, 0, 1, 1], [], []>} : vector<2x32xf32>, vector<32x6xf32>, vector<2x6xf32> -> vector<2x6xf32>
    %531 = arith.addf %529, %530 : vector<2x6xf32>
    %cst_120 = arith.constant 0.000000e+00 : f32
    %532 = vector.broadcast %cst_120 : f32 to vector<2x6xf32>
    %533 = arith.maximumf %531, %532 : vector<2x6xf32>
    %cst_121 = arith.constant dense<0.000000e+00> : vector<2x128xf32>
    %534 = tpu.matmul %533, %6, %cst_121 {dimension_numbers = #tpu.dot_dimension_numbers<[1], [0], [0], [1], [0, 0, 1, 1], [], []>} : vector<2x6xf32>, vector<6x128xf32>, vector<2x128xf32> -> vector<2x128xf32>
    %cst_122 = arith.constant dense<0.000000e+00> : vector<2x128xf32>
    %535 = tpu.matmul %457, %8, %cst_122 {dimension_numbers = #tpu.dot_dimension_numbers<[1], [0], [0], [1], [0, 0, 1, 1], [], []>} : vector<2x32xf32>, vector<32x128xf32>, vector<2x128xf32> -> vector<2x128xf32>
    %536 = arith.addf %534, %535 : vector<2x128xf32>
    %537 = vector.broadcast %10 : vector<1x128xf32> to vector<2x128xf32>
    %538 = arith.addf %536, %537 : vector<2x128xf32>
    %539 = vector.extract_strided_slice %538 {offsets = [0, 0], sizes = [2, 32], strides = [1, 1]} : vector<2x128xf32> to vector<2x32xf32>
    %540 = arith.negf %539 : vector<2x32xf32>
    %541 = math.exp %540 : vector<2x32xf32>
    %cst_123 = arith.constant 1.000000e+00 : f32
    %542 = vector.broadcast %cst_123 : f32 to vector<2x32xf32>
    %543 = arith.addf %542, %541 : vector<2x32xf32>
    %544 = arith.divf %542, %543 : vector<2x32xf32>
    %545 = vector.extract_strided_slice %538 {offsets = [0, 32], sizes = [2, 32], strides = [1, 1]} : vector<2x128xf32> to vector<2x32xf32>
    %546 = arith.negf %545 : vector<2x32xf32>
    %547 = math.exp %546 : vector<2x32xf32>
    %cst_124 = arith.constant 1.000000e+00 : f32
    %548 = vector.broadcast %cst_124 : f32 to vector<2x32xf32>
    %549 = arith.addf %548, %547 : vector<2x32xf32>
    %550 = arith.divf %548, %549 : vector<2x32xf32>
    %551 = vector.extract_strided_slice %538 {offsets = [0, 64], sizes = [2, 32], strides = [1, 1]} : vector<2x128xf32> to vector<2x32xf32>
    %552 = math.tanh %551 : vector<2x32xf32>
    %553 = vector.extract_strided_slice %538 {offsets = [0, 96], sizes = [2, 32], strides = [1, 1]} : vector<2x128xf32> to vector<2x32xf32>
    %554 = arith.negf %553 : vector<2x32xf32>
    %555 = math.exp %554 : vector<2x32xf32>
    %cst_125 = arith.constant 1.000000e+00 : f32
    %556 = vector.broadcast %cst_125 : f32 to vector<2x32xf32>
    %557 = arith.addf %556, %555 : vector<2x32xf32>
    %558 = arith.divf %556, %557 : vector<2x32xf32>
    %559 = arith.mulf %550, %455 : vector<2x32xf32>
    %560 = arith.mulf %544, %552 : vector<2x32xf32>
    %561 = arith.addf %559, %560 : vector<2x32xf32>
    %562 = math.tanh %561 : vector<2x32xf32>
    %563 = arith.mulf %558, %562 : vector<2x32xf32>
    %cst_126 = arith.constant dense<0.000000e+00> : vector<2x6xf32>
    %564 = tpu.matmul %563, %4, %cst_126 {dimension_numbers = #tpu.dot_dimension_numbers<[1], [0], [0], [1], [0, 0, 1, 1], [], []>} : vector<2x32xf32>, vector<32x6xf32>, vector<2x6xf32> -> vector<2x6xf32>
    %565 = vector.broadcast %5 : vector<1x6xf32> to vector<2x6xf32>
    %566 = arith.addf %564, %565 : vector<2x6xf32>
    %c4_127 = arith.constant 4 : index
    %c0_128 = arith.constant 0 : index
    %c0_129 = arith.constant 0 : index
    %567 = vector.load %arg13[%c4_127, %c0_128, %c0_129] : memref<5x2x6xf32, #tpu.memory_space<vmem>>, vector<1x2x6xf32>
    %568 = vector.shape_cast %567 : vector<1x2x6xf32> to vector<2x6xf32>
    %569 = vector.shape_cast %566 : vector<2x6xf32> to vector<1x2x6xf32>
    tpu.vector_store %arg13[%c4_127, %c0_128, %c0_129], %569 {strides = array<i32>} : memref<5x2x6xf32, #tpu.memory_space<vmem>>, vector<1x2x6xf32>,
    return
  }
}

</mosaic_0001>

<bundles_post_ra>
// kernel: _lambda_.2
= control target key start
LH: loop header
LB: loop body
LE: loop exit
PB: predicated region body
PF: predicated region fallthrough
CT: control target
= control target key end

     0   :  { %v1984_v4 = vmov 0.0   ;;  %s1985_s21 = smov 96   ;;  %s1986_s22 = smov 16   ;;  %vm94_vm8 = vcmask 123904   ;;  %vm28_vm9 = vcmask 130048   ;;  %s2518_s2 = inlined_call_operand.vmem [shape: f32[16,64], index: 2, kind: input, shape index: {}]   ;;  %s2519_s3 = inlined_call_operand.vmem [shape: f32[16,64], index: 3, kind: input, shape index: {}]   ;;  %s2520_s0 = inlined_call_operand.vmem [shape: f32[12,2,64], index: 0, kind: input, shape index: {}]   ;;  %s2521_s1 = inlined_call_operand.vmem [shape: f32[12,2,64], index: 1, kind: input, shape index: {}]   ;;  %s2522_s4 = inlined_call_operand.vmem [shape: f32[12,2,16], index: 4, kind: output, shape index: {0}]   ;;  %s2523_s5 = inlined_call_operand.vmem [shape: f32[12,2,16], index: 5, kind: output, shape index: {1}]   ;;  %s2524_s7 = inlined_call_operand.vmem [shape: f32[2,16], index: 7, kind: output, shape index: {3}]   ;;  %s2525_s6 = inlined_call_operand.vmem [shape: f32[2,16], index: 6, kind: output, shape index: {2}]   ;;  %s2526_s9 = inlined_call_operand.vmem [shape: f32[2,16], index: 9, kind: output, shape index: {5}]   ;;  %s2527_s8 = inlined_call_operand.vmem [shape: f32[2,16], index: 8, kind: output, shape index: {4}]  }
   0x1   :  { %v2043_v0 = vld [vmem:[%s2518_s2 + $0x8] sm:$0xff]  ;;  %v2053_v2 = vld [vmem:[%s2518_s2] sm:$0xff]  ;;  %v1693_v8 = vld [vmem:[%s2521_s1 + $0x16] sm:$0x3]  ;;  %s1987_s23 = smov 32   ;;  %s1988_s24 = smov 80  }
   0x2   :  { %v2048_v1 = vld [vmem:[%s2519_s3 + $0x8] sm:$0xff]  ;;  %46 = vmatpush.msra.mxu0 %v2043_v0  ;;  %v2060_v3 = vld [vmem:[%s2519_s3] sm:$0xff]  ;;  %180 = vmatpush.msra.mxu2 %v2043_v0  ;;  %v1700_v60 = vld [vmem:[%s2521_s1 + $0x14] sm:$0x3] }
   0x3   :  { %112 = vmatpush.msra.mxu1 %v2048_v1  ;;  %248 = vmatpush.msra.mxu3 %v2048_v1  ;;  %v27_v5 = vld [vmem:[%s2520_s0] sm:$0x3]  ;;  %v1696_v57 = vld [vmem:[%s2520_s0 + $0x2] sm:$0x3] }
   0x4   :  { %47 = vmatpush.msra.mxu0 %v2053_v2  ;;  %181 = vmatpush.msra.mxu2 %v2053_v2 }
   0x5   :  { %113 = vmatpush.msra.mxu1 %v2060_v3  ;;  %48 = vmatmul.f32.vlgmr.msra.gmra.mxu0 %v1984_v4 }
   0x6   :  { %114 = vmatmul.f32.vlgmr.msra.gmra.mxu1 %v1984_v4  ;;  %249 = vmatpush.msra.mxu3 %v2060_v3 }
   0x7   :  { %316 = vmatpush.msrb.mxu0 %v2043_v0  ;;  %384 = vmatpush.msrb.mxu1 %v2048_v1 }
   0x8   :  { %452 = vmatpush.msrb.mxu2 %v2043_v0  ;;  %520 = vmatpush.msrb.mxu3 %v2048_v1 }
   0x9   :  { %317 = vmatpush.msrb.mxu0 %v2053_v2  ;;  %385 = vmatpush.msrb.mxu1 %v2060_v3 }
   0xa   :  { %453 = vmatpush.msrb.mxu2 %v2053_v2  ;;  %521 = vmatpush.msrb.mxu3 %v2060_v3 }
   0xb   :  { %588 = vmatpush.msra.mxu0 %v2043_v0  ;;  %656 = vmatpush.msra.mxu1 %v2048_v1 }
   0xd   :  { %589 = vmatpush.msra.mxu0 %v2053_v2  ;;  %657 = vmatpush.msra.mxu1 %v2060_v3 }
  0x82   :  { %v49_v6 = vpop.f32.mrf.mxu0 }
  0x83   :  { %v52_v7 = vadd.f32 %v49_v6, %v27_v5  ;;  %v115_v9 = vpop.f32.mrf.mxu1 }
  0x84   :  { %v118_v10 = vadd.f32 %v1693_v8, %v115_v9 }
  0x85   :  { %1788 = vtanh.f32 %v52_v7  ;;  %v1692_v13 = vmul.f32 -1.442695, %v52_v7 }
  0x86   :  { %1790 = vtanh.f32 %v118_v10  ;;  %v1694_v14 = vmul.f32 -1.442695, %v118_v10 }
  0x87   :  { %1792 = vpow2.f32 %v1692_v13 }
  0x88   :  { %1794 = vpow2.f32 %v1694_v14 }
  0x8b   :  { %v1789_v11 = vpop.eup %1788 }
  0x8c   :  { %75 = vrot.lane.b32.xlu0 %v1789_v11, %s1985_s21  ;;  %v1791_v12 = vpop.eup %1790 }
  0x8d   :  { %v1793_v15 = vpop.eup %1792 }
  0x8e   :  { %v56_v16 = vadd.f32 1.0, %v1793_v15  ;;  %v1795_v17 = vpop.eup %1794 }
  0x8f   :  { %v122_v18 = vadd.f32 1.0, %v1795_v17 }
  0x90   :  { %1796 = vrcp.f32 %v56_v16  ;;  %v68_v27 = vand.u32 2147483648, %v56_v16  ;;  %vm62_vm1 = vweird.f32 %v56_v16  ;;  %v66_v28 = vand.u32 2147483647, %v56_v16 }
  0x91   :  { %1798 = vrcp.f32 %v122_v18  ;;  %vm128_vm4 = vweird.f32 %v122_v18  ;;  %v134_v36 = vand.u32 2147483648, %v122_v18  ;;  %v132_v37 = vand.u32 2147483647, %v122_v18 }
  0x92   :  { %v69_v31 = vor.u32 1.1754944e-38, %v68_v27  ;;  %vm67_vm3 = vcmp.eq.f32.partialorder %v66_v28, 8.507059e+37 }
  0x93   :  { %v135_v39 = vor.u32 1.1754944e-38, %v134_v36  ;;  %vm133_vm7 = vcmp.eq.f32.partialorder %v132_v37, 8.507059e+37 }
  0x94   :  { %141 = vrot.lane.b32.xlu0 %v1791_v12, %s1985_s21 }
  0x96   :  { %v1797_v19 = vpop.eup %1796 }
  0x97   :  { %v58_v20 = vmul.f32 %v1797_v19, %v56_v16  ;;  %v1799_v22 = vpop.eup %1798  ;;  %vm63_vm0 = vweird.f32 %v1797_v19 }
  0x98   :  { %v124_v24 = vmul.f32 %v1799_v22, %v122_v18  ;;  %vm64_vm2 = vmor %vm62_vm1, %vm63_vm0  ;;  %vm129_vm5 = vweird.f32 %v1799_v22 }
  0x99   :  { %v59_v21 = vsub.f32 1.0, %v58_v20  ;;  %vm130_vm6 = vmor %vm128_vm4, %vm129_vm5 }
  0x9a   :  { %v125_v26 = vsub.f32 1.0, %v124_v24 }
  0x9b   :  { %v60_v23 = vmul.f32 %v1797_v19, %v59_v21 }
  0x9c   :  { %v126_v30 = vmul.f32 %v1799_v22, %v125_v26 }
  0x9d   :  { %v61_v25 = vadd.f32 %v1797_v19, %v60_v23 }
  0x9e   :  { %v127_v35 = vadd.f32 %v1799_v22, %v126_v30 }
  0x9f   :  { %v65_v29 = vsel %vm64_vm2, %v1797_v19, %v61_v25 }
  0xa0   :  { %v70_v33 = vsel %vm67_vm3, %v69_v31, %v65_v29  ;;  %v131_v38 = vsel %vm130_vm6, %v1799_v22, %v127_v35 }
  0xa1   :  { %v136_v40 = vsel %vm133_vm7, %v135_v39, %v131_v38  ;;  %v73_v43 = vmul.f32 0.0, %v70_v33 }
  0xa2   :  { %v139_v46 = vmul.f32 0.0, %v136_v40 }
  0xfe   :  { %v76_v32 = vpop.permute.xlu0 %75 }
  0xff   :  { %v78_v34 = vmul.f32 %v76_v32, %v70_v33 }
 0x101   :  { %80 = vrot.lane.b32.xlu1 %v78_v34, %s1986_s22 }
 0x106   :  { %v142_v41 = vpop.permute.xlu0 %141 }
 0x107   :  { %v144_v42 = vmul.f32 %v142_v41, %v136_v40 }
 0x109   :  { %146 = vrot.lane.b32.xlu1 %v144_v42, %s1986_s22 }
 0x173   :  { %v81_v44 = vpop.permute.xlu1 %80 }
 0x174   :  { %v2090_v45 = vadd.f32 %v81_v44, %v73_v43 }
 0x176   :  { %1800 = vtanh.f32 %v2090_v45 }
 0x17b   :  { %v147_v47 = vpop.permute.xlu1 %146 }
 0x17c   :  { %v1801_v48 = vpop.eup %1800  ;;  %v2093_v49 = vadd.f32 %v147_v47, %v139_v46 }
 0x17d   :  { %86 = vrot.lane.b32.xlu2 %v1801_v48, %s1987_s23 }
 0x17e   :  { %1802 = vtanh.f32 %v2093_v49 }
 0x184   :  { %v1803_v50 = vpop.eup %1802 }
 0x185   :  { %152 = vrot.lane.b32.xlu2 %v1803_v50, %s1987_s23 }
 0x1d7   :  { %v87_v51 = vpop.permute.xlu2 %86 }
 0x1d8   :  { %v89_v52 = vmul.f32 %v87_v51, %v70_v33 }
 0x1da   :  { %91 = vrot.lane.b32.xlu0 %v89_v52, %s1988_s24 }
 0x1df   :  { %v153_v53 = vpop.permute.xlu2 %152 }
 0x1e0   :  { %v155_v54 = vmul.f32 %v153_v53, %v136_v40  ;;  %v1708_v53 = vld [vmem:[%s2521_s1 + $0x12] sm:$0x3] }
 0x1e2   :  { %157 = vrot.lane.b32.xlu1 %v155_v54, %s1988_s24 }
 0x24c   :  { %v92_v55 = vpop.permute.xlu0 %91 }
 0x24d   :  { %95 = vst.msk [vmem:[%s2522_s4] sm:$0x3] %vm94_vm8, %v92_v55  ;;  %1697 = vmatmul.msk.f32.vlgmr.msra.gmra.mxu2 %vm28_vm9, %v92_v55 }
 0x24e   :  { %724 = vmatpush.msra.mxu2 %v2043_v0 }
 0x250   :  { %725 = vmatpush.msra.mxu2 %v2053_v2 }
 0x254   :  { %v158_v56 = vpop.permute.xlu1 %157 }
 0x255   :  { %1695 = vst.msk [vmem:[%s2523_s5 + $0x16] sm:$0x3] %vm94_vm8, %v158_v56  ;;  %1701 = vmatmul.msk.f32.vlgmr.msra.gmra.mxu3 %vm28_vm9, %v158_v56 }
 0x256   :  { %792 = vmatpush.msra.mxu3 %v2048_v1 }
 0x258   :  { %793 = vmatpush.msra.mxu3 %v2060_v3 }
 0x2d0   :  { %v183_v58 = vpop.f32.mrf.mxu2 }
 0x2d1   :  { %v186_v59 = vadd.f32 %v1696_v57, %v183_v58 }
 0x2d3   :  { %1804 = vtanh.f32 %v186_v59  ;;  %v1698_v5 = vmul.f32 -1.442695, %v186_v59 }
 0x2d8   :  { %v251_v61 = vpop.f32.mrf.mxu3 }
 0x2d9   :  { %v1805_v62 = vpop.eup %1804  ;;  %v254_v63 = vadd.f32 %v1700_v60, %v251_v61 }
 0x2da   :  { %209 = vrot.lane.b32.xlu2 %v1805_v62, %s1985_s21 }
 0x2db   :  { %1806 = vtanh.f32 %v254_v63  ;;  %v1702_v11 = vmul.f32 -1.442695, %v254_v63 }
 0x2dc   :  { %1808 = vpow2.f32 %v1698_v5 }
 0x2e1   :  { %v1807_v4 = vpop.eup %1806 }
 0x2e2   :  { %277 = vrot.lane.b32.xlu0 %v1807_v4, %s1985_s21  ;;  %v1809_v6 = vpop.eup %1808 }
 0x2e3   :  { %v190_v7 = vadd.f32 1.0, %v1809_v6 }
 0x2e5   :  { %1810 = vrcp.f32 %v190_v7  ;;  %v202_v14 = vand.u32 2147483648, %v190_v7  ;;  %vm196_vm11 = vweird.f32 %v190_v7  ;;  %v200_v15 = vand.u32 2147483647, %v190_v7 }
 0x2e6   :  { %1812 = vpow2.f32 %v1702_v11 }
 0x2e7   :  { %v203_v18 = vor.u32 1.1754944e-38, %v202_v14  ;;  %vm201_vm13 = vcmp.eq.f32.partialorder %v200_v15, 8.507059e+37 }
 0x2eb   :  { %v1811_v8 = vpop.eup %1810 }
 0x2ec   :  { %v192_v9 = vmul.f32 %v1811_v8, %v190_v7  ;;  %vm197_vm10 = vweird.f32 %v1811_v8  ;;  %v1813_v16 = vpop.eup %1812 }
 0x2ed   :  { %vm198_vm12 = vmor %vm196_vm11, %vm197_vm10  ;;  %v258_v19 = vadd.f32 1.0, %v1813_v16 }
 0x2ee   :  { %v193_v10 = vsub.f32 1.0, %v192_v9 }
 0x2ef   :  { %1814 = vrcp.f32 %v258_v19  ;;  %v270_v28 = vand.u32 2147483648, %v258_v19  ;;  %vm264_vm15 = vweird.f32 %v258_v19  ;;  %v268_v29 = vand.u32 2147483647, %v258_v19 }
 0x2f0   :  { %v194_v12 = vmul.f32 %v1811_v8, %v193_v10 }
 0x2f1   :  { %v271_v31 = vor.u32 1.1754944e-38, %v270_v28  ;;  %vm269_vm1 = vcmp.eq.f32.partialorder %v268_v29, 8.507059e+37 }
 0x2f2   :  { %v195_v13 = vadd.f32 %v1811_v8, %v194_v12 }
 0x2f4   :  { %v199_v17 = vsel %vm198_vm12, %v1811_v8, %v195_v13 }
 0x2f5   :  { %v204_v20 = vsel %vm201_vm13, %v203_v18, %v199_v17  ;;  %v1815_v23 = vpop.eup %1814 }
 0x2f6   :  { %v260_v24 = vmul.f32 %v1815_v23, %v258_v19  ;;  %vm265_vm14 = vweird.f32 %v1815_v23  ;;  %v207_v35 = vmul.f32 %v204_v20, %v2090_v45 }
 0x2f7   :  { %vm266_vm0 = vmor %vm264_vm15, %vm265_vm14 }
 0x2f8   :  { %v261_v25 = vsub.f32 1.0, %v260_v24 }
 0x2fa   :  { %v262_v26 = vmul.f32 %v1815_v23, %v261_v25 }
 0x2fc   :  { %v263_v27 = vadd.f32 %v1815_v23, %v262_v26 }
 0x2fe   :  { %v267_v30 = vsel %vm266_vm0, %v1815_v23, %v263_v27 }
 0x2ff   :  { %v272_v33 = vsel %vm269_vm1, %v271_v31, %v267_v30 }
 0x300   :  { %v275_v38 = vmul.f32 %v272_v33, %v2093_v49  ;;  %v1704_v49 = vld [vmem:[%s2520_s0 + $0x4] sm:$0x3] }
 0x334   :  { %v210_v21 = vpop.permute.xlu2 %209 }
 0x335   :  { %v212_v22 = vmul.f32 %v210_v21, %v204_v20 }
 0x337   :  { %214 = vrot.lane.b32.xlu1 %v212_v22, %s1986_s22 }
 0x354   :  { %v278_v32 = vpop.permute.xlu0 %277 }
 0x355   :  { %v280_v34 = vmul.f32 %v278_v32, %v272_v33 }
 0x357   :  { %282 = vrot.lane.b32.xlu2 %v280_v34, %s1986_s22 }
 0x3a9   :  { %v215_v36 = vpop.permute.xlu1 %214 }
 0x3aa   :  { %v2125_v37 = vadd.f32 %v215_v36, %v207_v35 }
 0x3ac   :  { %1816 = vtanh.f32 %v2125_v37 }
 0x3b1   :  { %v283_v39 = vpop.permute.xlu2 %282 }
 0x3b2   :  { %v1817_v40 = vpop.eup %1816  ;;  %v2129_v41 = vadd.f32 %v283_v39, %v275_v38 }
 0x3b3   :  { %220 = vrot.lane.b32.xlu0 %v1817_v40, %s1987_s23 }
 0x3b4   :  { %1818 = vtanh.f32 %v2129_v41 }
 0x3ba   :  { %v1819_v42 = vpop.eup %1818 }
 0x3bb   :  { %288 = vrot.lane.b32.xlu1 %v1819_v42, %s1987_s23 }
 0x425   :  { %v221_v43 = vpop.permute.xlu0 %220 }
 0x426   :  { %v223_v44 = vmul.f32 %v221_v43, %v204_v20 }
 0x428   :  { %225 = vrot.lane.b32.xlu2 %v223_v44, %s1988_s24  ;;  %v1716_v44 = vld [vmem:[%s2521_s1 + $0x10] sm:$0x3] }
 0x42d   :  { %v289_v45 = vpop.permute.xlu1 %288 }
 0x42e   :  { %v291_v46 = vmul.f32 %v289_v45, %v272_v33 }
 0x430   :  { %293 = vrot.lane.b32.xlu0 %v291_v46, %s1988_s24 }
 0x482   :  { %v226_v47 = vpop.permute.xlu2 %225 }
 0x483   :  { %1699 = vst.msk [vmem:[%s2522_s4 + $0x2] sm:$0x3] %vm94_vm8, %v226_v47  ;;  %1705 = vmatmul.msk.f32.vlgmr.msrb.gmra.mxu0 %vm28_vm9, %v226_v47 }
 0x484   :  { %860 = vmatpush.msrb.mxu0 %v2043_v0 }
 0x486   :  { %861 = vmatpush.msrb.mxu0 %v2053_v2 }
 0x4a2   :  { %v294_v48 = vpop.permute.xlu0 %293 }
 0x4a3   :  { %1703 = vst.msk [vmem:[%s2523_s5 + $0x14] sm:$0x3] %vm94_vm8, %v294_v48  ;;  %1709 = vmatmul.msk.f32.vlgmr.msrb.gmra.mxu1 %vm28_vm9, %v294_v48 }
 0x4a4   :  { %928 = vmatpush.msrb.mxu1 %v2048_v1 }
 0x4a6   :  { %929 = vmatpush.msrb.mxu1 %v2060_v3 }
 0x500   :  { %v319_v50 = vpop.f32.mrf.mxu0 }
 0x501   :  { %v322_v51 = vadd.f32 %v1704_v49, %v319_v50 }
 0x503   :  { %1820 = vtanh.f32 %v322_v51  ;;  %v1706_v57 = vmul.f32 -1.442695, %v322_v51 }
 0x509   :  { %v1821_v52 = vpop.eup %1820 }
 0x50a   :  { %345 = vrot.lane.b32.xlu1 %v1821_v52, %s1985_s21 }
 0x520   :  { %v387_v54 = vpop.f32.mrf.mxu1 }
 0x521   :  { %v390_v55 = vadd.f32 %v1708_v53, %v387_v54 }
 0x523   :  { %1822 = vtanh.f32 %v390_v55  ;;  %v1710_v58 = vmul.f32 -1.442695, %v390_v55 }
 0x524   :  { %1824 = vpow2.f32 %v1706_v57 }
 0x525   :  { %1826 = vpow2.f32 %v1710_v58 }
 0x529   :  { %v1823_v56 = vpop.eup %1822 }
 0x52a   :  { %413 = vrot.lane.b32.xlu2 %v1823_v56, %s1985_s21  ;;  %v1825_v59 = vpop.eup %1824 }
 0x52b   :  { %v326_v60 = vadd.f32 1.0, %v1825_v59  ;;  %v1827_v61 = vpop.eup %1826 }
 0x52c   :  { %v394_v62 = vadd.f32 1.0, %v1827_v61 }
 0x52d   :  { %1828 = vrcp.f32 %v326_v60  ;;  %v338_v11 = vand.u32 2147483648, %v326_v60  ;;  %vm332_vm3 = vweird.f32 %v326_v60  ;;  %v336_v12 = vand.u32 2147483647, %v326_v60 }
 0x52e   :  { %1830 = vrcp.f32 %v394_v62  ;;  %v406_v20 = vand.u32 2147483648, %v394_v62  ;;  %vm400_vm7 = vweird.f32 %v394_v62  ;;  %v404_v21 = vand.u32 2147483647, %v394_v62 }
 0x52f   :  { %v339_v15 = vor.u32 1.1754944e-38, %v338_v11  ;;  %vm337_vm5 = vcmp.eq.f32.partialorder %v336_v12, 8.507059e+37 }
 0x530   :  { %v407_v23 = vor.u32 1.1754944e-38, %v406_v20  ;;  %vm405_vm11 = vcmp.eq.f32.partialorder %v404_v21, 8.507059e+37 }
 0x533   :  { %v1829_v63 = vpop.eup %1828 }
 0x534   :  { %v328_v4 = vmul.f32 %v1829_v63, %v326_v60  ;;  %v1831_v6 = vpop.eup %1830  ;;  %vm333_vm2 = vweird.f32 %v1829_v63 }
 0x535   :  { %v396_v8 = vmul.f32 %v1831_v6, %v394_v62  ;;  %vm334_vm4 = vmor %vm332_vm3, %vm333_vm2  ;;  %vm401_vm6 = vweird.f32 %v1831_v6 }
 0x536   :  { %v329_v5 = vsub.f32 1.0, %v328_v4  ;;  %vm402_vm10 = vmor %vm400_vm7, %vm401_vm6 }
 0x537   :  { %v397_v10 = vsub.f32 1.0, %v396_v8 }
 0x538   :  { %v330_v7 = vmul.f32 %v1829_v63, %v329_v5 }
 0x539   :  { %v398_v14 = vmul.f32 %v1831_v6, %v397_v10 }
 0x53a   :  { %v331_v9 = vadd.f32 %v1829_v63, %v330_v7 }
 0x53b   :  { %v399_v19 = vadd.f32 %v1831_v6, %v398_v14 }
 0x53c   :  { %v335_v13 = vsel %vm334_vm4, %v1829_v63, %v331_v9 }
 0x53d   :  { %v340_v17 = vsel %vm337_vm5, %v339_v15, %v335_v13  ;;  %v403_v22 = vsel %vm402_vm10, %v1831_v6, %v399_v19 }
 0x53e   :  { %v408_v24 = vsel %vm405_vm11, %v407_v23, %v403_v22  ;;  %v343_v27 = vmul.f32 %v340_v17, %v2125_v37 }
 0x53f   :  { %v411_v30 = vmul.f32 %v408_v24, %v2129_v41  ;;  %v1712_v41 = vld [vmem:[%s2520_s0 + $0x6] sm:$0x3] }
 0x57c   :  { %v346_v16 = vpop.permute.xlu1 %345 }
 0x57d   :  { %v348_v18 = vmul.f32 %v346_v16, %v340_v17 }
 0x57f   :  { %350 = vrot.lane.b32.xlu0 %v348_v18, %s1986_s22 }
 0x584   :  { %v414_v25 = vpop.permute.xlu2 %413 }
 0x585   :  { %v416_v26 = vmul.f32 %v414_v25, %v408_v24 }
 0x587   :  { %418 = vrot.lane.b32.xlu1 %v416_v26, %s1986_s22 }
 0x5f1   :  { %v351_v28 = vpop.permute.xlu0 %350 }
 0x5f2   :  { %v2161_v29 = vadd.f32 %v351_v28, %v343_v27 }
 0x5f4   :  { %1832 = vtanh.f32 %v2161_v29 }
 0x5f9   :  { %v419_v31 = vpop.permute.xlu1 %418 }
 0x5fa   :  { %v1833_v32 = vpop.eup %1832  ;;  %v2165_v33 = vadd.f32 %v419_v31, %v411_v30 }
 0x5fb   :  { %356 = vrot.lane.b32.xlu2 %v1833_v32, %s1987_s23 }
 0x5fc   :  { %1834 = vtanh.f32 %v2165_v33 }
 0x602   :  { %v1835_v34 = vpop.eup %1834 }
 0x603   :  { %424 = vrot.lane.b32.xlu0 %v1835_v34, %s1987_s23 }
 0x655   :  { %v357_v35 = vpop.permute.xlu2 %356 }
 0x656   :  { %v359_v36 = vmul.f32 %v357_v35, %v340_v17 }
 0x658   :  { %361 = vrot.lane.b32.xlu1 %v359_v36, %s1988_s24  ;;  %v1724_v36 = vld [vmem:[%s2521_s1 + $0xe] sm:$0x3] }
 0x675   :  { %v425_v37 = vpop.permute.xlu0 %424 }
 0x676   :  { %v427_v38 = vmul.f32 %v425_v37, %v408_v24 }
 0x678   :  { %429 = vrot.lane.b32.xlu2 %v427_v38, %s1988_s24 }
 0x6ca   :  { %v362_v39 = vpop.permute.xlu1 %361 }
 0x6cb   :  { %1707 = vst.msk [vmem:[%s2522_s4 + $0x4] sm:$0x3] %vm94_vm8, %v362_v39  ;;  %1713 = vmatmul.msk.f32.vlgmr.msrb.gmra.mxu2 %vm28_vm9, %v362_v39 }
 0x6cc   :  { %996 = vmatpush.msrb.mxu2 %v2043_v0 }
 0x6ce   :  { %997 = vmatpush.msrb.mxu2 %v2053_v2 }
 0x6d2   :  { %v430_v40 = vpop.permute.xlu2 %429 }
 0x6d3   :  { %1711 = vst.msk [vmem:[%s2523_s5 + $0x12] sm:$0x3] %vm94_vm8, %v430_v40  ;;  %1717 = vmatmul.msk.f32.vlgmr.msrb.gmra.mxu3 %vm28_vm9, %v430_v40 }
 0x6d4   :  { %1064 = vmatpush.msrb.mxu3 %v2048_v1 }
 0x6d6   :  { %1065 = vmatpush.msrb.mxu3 %v2060_v3 }
 0x74e   :  { %v455_v42 = vpop.f32.mrf.mxu2 }
 0x74f   :  { %v458_v43 = vadd.f32 %v1712_v41, %v455_v42 }
 0x751   :  { %1836 = vtanh.f32 %v458_v43  ;;  %v1714_v49 = vmul.f32 -1.442695, %v458_v43 }
 0x756   :  { %v523_v45 = vpop.f32.mrf.mxu3 }
 0x757   :  { %v1837_v46 = vpop.eup %1836  ;;  %v526_v47 = vadd.f32 %v1716_v44, %v523_v45 }
 0x758   :  { %481 = vrot.lane.b32.xlu0 %v1837_v46, %s1985_s21 }
 0x759   :  { %1838 = vtanh.f32 %v526_v47  ;;  %v1718_v50 = vmul.f32 -1.442695, %v526_v47 }
 0x75a   :  { %1840 = vpow2.f32 %v1714_v49 }
 0x75b   :  { %1842 = vpow2.f32 %v1718_v50 }
 0x75f   :  { %v1839_v48 = vpop.eup %1838 }
 0x760   :  { %549 = vrot.lane.b32.xlu1 %v1839_v48, %s1985_s21  ;;  %v1841_v51 = vpop.eup %1840 }
 0x761   :  { %v462_v52 = vadd.f32 1.0, %v1841_v51  ;;  %v1843_v53 = vpop.eup %1842 }
 0x762   :  { %v530_v54 = vadd.f32 1.0, %v1843_v53 }
 0x763   :  { %1844 = vrcp.f32 %v462_v52  ;;  %v474_v63 = vand.u32 2147483648, %v462_v52  ;;  %vm468_vm13 = vweird.f32 %v462_v52  ;;  %v472_v4 = vand.u32 2147483647, %v462_v52 }
 0x764   :  { %1846 = vrcp.f32 %v530_v54  ;;  %v542_v12 = vand.u32 2147483648, %v530_v54  ;;  %vm536_vm1 = vweird.f32 %v530_v54  ;;  %v540_v13 = vand.u32 2147483647, %v530_v54 }
 0x765   :  { %v475_v7 = vor.u32 1.1754944e-38, %v474_v63  ;;  %vm473_vm15 = vcmp.eq.f32.partialorder %v472_v4, 8.507059e+37 }
 0x766   :  { %v543_v15 = vor.u32 1.1754944e-38, %v542_v12  ;;  %vm541_vm3 = vcmp.eq.f32.partialorder %v540_v13, 8.507059e+37 }
 0x769   :  { %v1845_v55 = vpop.eup %1844 }
 0x76a   :  { %v464_v56 = vmul.f32 %v1845_v55, %v462_v52  ;;  %v1847_v58 = vpop.eup %1846  ;;  %vm469_vm12 = vweird.f32 %v1845_v55 }
 0x76b   :  { %v532_v60 = vmul.f32 %v1847_v58, %v530_v54  ;;  %vm470_vm14 = vmor %vm468_vm13, %vm469_vm12  ;;  %vm537_vm0 = vweird.f32 %v1847_v58 }
 0x76c   :  { %v465_v57 = vsub.f32 1.0, %v464_v56  ;;  %vm538_vm2 = vmor %vm536_vm1, %vm537_vm0 }
 0x76d   :  { %v533_v62 = vsub.f32 1.0, %v532_v60 }
 0x76e   :  { %v466_v59 = vmul.f32 %v1845_v55, %v465_v57 }
 0x76f   :  { %v534_v6 = vmul.f32 %v1847_v58, %v533_v62 }
 0x770   :  { %v467_v61 = vadd.f32 %v1845_v55, %v466_v59 }
 0x771   :  { %v535_v11 = vadd.f32 %v1847_v58, %v534_v6 }
 0x772   :  { %v471_v5 = vsel %vm470_vm14, %v1845_v55, %v467_v61 }
 0x773   :  { %v476_v9 = vsel %vm473_vm15, %v475_v7, %v471_v5  ;;  %v539_v14 = vsel %vm538_vm2, %v1847_v58, %v535_v11 }
 0x774   :  { %v544_v17 = vsel %vm541_vm3, %v543_v15, %v539_v14  ;;  %v479_v19 = vmul.f32 %v476_v9, %v2161_v29 }
 0x775   :  { %v547_v23 = vmul.f32 %v544_v17, %v2165_v33  ;;  %v1720_v33 = vld [vmem:[%s2520_s0 + $0x8] sm:$0x3] }
 0x7ca   :  { %v482_v8 = vpop.permute.xlu0 %481 }
 0x7cb   :  { %v484_v10 = vmul.f32 %v482_v8, %v476_v9 }
 0x7cd   :  { %486 = vrot.lane.b32.xlu2 %v484_v10, %s1986_s22 }
 0x7d2   :  { %v550_v16 = vpop.permute.xlu1 %549 }
 0x7d3   :  { %v552_v18 = vmul.f32 %v550_v16, %v544_v17 }
 0x7d5   :  { %554 = vrot.lane.b32.xlu0 %v552_v18, %s1986_s22 }
 0x827   :  { %v487_v20 = vpop.permute.xlu2 %486 }
 0x828   :  { %v2197_v21 = vadd.f32 %v487_v20, %v479_v19 }
 0x82a   :  { %1848 = vtanh.f32 %v2197_v21 }
 0x830   :  { %v1849_v22 = vpop.eup %1848 }
 0x831   :  { %492 = vrot.lane.b32.xlu1 %v1849_v22, %s1987_s23 }
 0x847   :  { %v555_v24 = vpop.permute.xlu0 %554 }
 0x848   :  { %v2202_v25 = vadd.f32 %v555_v24, %v547_v23 }
 0x84a   :  { %1850 = vtanh.f32 %v2202_v25 }
 0x850   :  { %v1851_v26 = vpop.eup %1850 }
 0x851   :  { %560 = vrot.lane.b32.xlu2 %v1851_v26, %s1987_s23 }
 0x8a3   :  { %v493_v27 = vpop.permute.xlu1 %492 }
 0x8a4   :  { %v495_v28 = vmul.f32 %v493_v27, %v476_v9  ;;  %v1732_v27 = vld [vmem:[%s2521_s1 + $0xc] sm:$0x3] }
 0x8a6   :  { %497 = vrot.lane.b32.xlu0 %v495_v28, %s1988_s24 }
 0x8ab   :  { %v561_v29 = vpop.permute.xlu2 %560 }
 0x8ac   :  { %v563_v30 = vmul.f32 %v561_v29, %v544_v17 }
 0x8ae   :  { %565 = vrot.lane.b32.xlu1 %v563_v30, %s1988_s24 }
 0x918   :  { %v498_v31 = vpop.permute.xlu0 %497 }
 0x919   :  { %1715 = vst.msk [vmem:[%s2522_s4 + $0x6] sm:$0x3] %vm94_vm8, %v498_v31  ;;  %1721 = vmatmul.msk.f32.vlgmr.msra.gmra.mxu0 %vm28_vm9, %v498_v31 }
 0x91a   :  { %1132 = vmatpush.msra.mxu0 %v2043_v0 }
 0x91c   :  { %1133 = vmatpush.msra.mxu0 %v2053_v2 }
 0x920   :  { %v566_v32 = vpop.permute.xlu1 %565 }
 0x921   :  { %1719 = vst.msk [vmem:[%s2523_s5 + $0x10] sm:$0x3] %vm94_vm8, %v566_v32  ;;  %1725 = vmatmul.msk.f32.vlgmr.msra.gmra.mxu1 %vm28_vm9, %v566_v32 }
 0x922   :  { %1200 = vmatpush.msra.mxu1 %v2048_v1 }
 0x924   :  { %1201 = vmatpush.msra.mxu1 %v2060_v3 }
 0x996   :  { %v591_v34 = vpop.f32.mrf.mxu0 }
 0x997   :  { %v594_v35 = vadd.f32 %v1720_v33, %v591_v34 }
 0x999   :  { %1852 = vtanh.f32 %v594_v35  ;;  %v1722_v41 = vmul.f32 -1.442695, %v594_v35 }
 0x99e   :  { %v659_v37 = vpop.f32.mrf.mxu1 }
 0x99f   :  { %v1853_v38 = vpop.eup %1852  ;;  %v662_v39 = vadd.f32 %v1724_v36, %v659_v37 }
 0x9a0   :  { %617 = vrot.lane.b32.xlu2 %v1853_v38, %s1985_s21 }
 0x9a1   :  { %1854 = vtanh.f32 %v662_v39  ;;  %v1726_v47 = vmul.f32 -1.442695, %v662_v39 }
 0x9a2   :  { %1856 = vpow2.f32 %v1722_v41 }
 0x9a7   :  { %v1855_v40 = vpop.eup %1854 }
 0x9a8   :  { %685 = vrot.lane.b32.xlu0 %v1855_v40, %s1985_s21  ;;  %v1857_v42 = vpop.eup %1856 }
 0x9a9   :  { %v598_v43 = vadd.f32 1.0, %v1857_v42 }
 0x9ab   :  { %1858 = vrcp.f32 %v598_v43  ;;  %v610_v50 = vand.u32 2147483648, %v598_v43  ;;  %vm604_vm5 = vweird.f32 %v598_v43  ;;  %v608_v51 = vand.u32 2147483647, %v598_v43 }
 0x9ac   :  { %1860 = vpow2.f32 %v1726_v47 }
 0x9ad   :  { %v611_v54 = vor.u32 1.1754944e-38, %v610_v50  ;;  %vm609_vm7 = vcmp.eq.f32.partialorder %v608_v51, 8.507059e+37 }
 0x9b1   :  { %v1859_v44 = vpop.eup %1858 }
 0x9b2   :  { %v600_v45 = vmul.f32 %v1859_v44, %v598_v43  ;;  %vm605_vm4 = vweird.f32 %v1859_v44  ;;  %v1861_v52 = vpop.eup %1860 }
 0x9b3   :  { %vm606_vm6 = vmor %vm604_vm5, %vm605_vm4  ;;  %v666_v55 = vadd.f32 1.0, %v1861_v52 }
 0x9b4   :  { %v601_v46 = vsub.f32 1.0, %v600_v45 }
 0x9b5   :  { %1862 = vrcp.f32 %v666_v55  ;;  %v678_v4 = vand.u32 2147483648, %v666_v55  ;;  %vm672_vm11 = vweird.f32 %v666_v55  ;;  %v676_v5 = vand.u32 2147483647, %v666_v55 }
 0x9b6   :  { %v602_v48 = vmul.f32 %v1859_v44, %v601_v46 }
 0x9b7   :  { %v679_v7 = vor.u32 1.1754944e-38, %v678_v4  ;;  %vm677_vm13 = vcmp.eq.f32.partialorder %v676_v5, 8.507059e+37 }
 0x9b8   :  { %v603_v49 = vadd.f32 %v1859_v44, %v602_v48 }
 0x9ba   :  { %v607_v53 = vsel %vm606_vm6, %v1859_v44, %v603_v49 }
 0x9bb   :  { %v612_v56 = vsel %vm609_vm7, %v611_v54, %v607_v53  ;;  %v1863_v59 = vpop.eup %1862 }
 0x9bc   :  { %v668_v60 = vmul.f32 %v1863_v59, %v666_v55  ;;  %vm673_vm10 = vweird.f32 %v1863_v59  ;;  %v615_v11 = vmul.f32 %v612_v56, %v2197_v21 }
 0x9bd   :  { %vm674_vm12 = vmor %vm672_vm11, %vm673_vm10 }
 0x9be   :  { %v669_v61 = vsub.f32 1.0, %v668_v60 }
 0x9c0   :  { %v670_v62 = vmul.f32 %v1863_v59, %v669_v61 }
 0x9c2   :  { %v671_v63 = vadd.f32 %v1863_v59, %v670_v62 }
 0x9c4   :  { %v675_v6 = vsel %vm674_vm12, %v1863_v59, %v671_v63 }
 0x9c5   :  { %v680_v9 = vsel %vm677_vm13, %v679_v7, %v675_v6 }
 0x9c6   :  { %v683_v14 = vmul.f32 %v680_v9, %v2202_v25  ;;  %v1728_v25 = vld [vmem:[%s2520_s0 + $0xa] sm:$0x3] }
 0x9fa   :  { %v618_v57 = vpop.permute.xlu2 %617 }
 0x9fb   :  { %v620_v58 = vmul.f32 %v618_v57, %v612_v56 }
 0x9fd   :  { %622 = vrot.lane.b32.xlu1 %v620_v58, %s1986_s22 }
 0xa1a   :  { %v686_v8 = vpop.permute.xlu0 %685 }
 0xa1b   :  { %v688_v10 = vmul.f32 %v686_v8, %v680_v9 }
 0xa1d   :  { %690 = vrot.lane.b32.xlu2 %v688_v10, %s1986_s22 }
 0xa6f   :  { %v623_v12 = vpop.permute.xlu1 %622 }
 0xa70   :  { %v2233_v13 = vadd.f32 %v623_v12, %v615_v11  ;;  %v2288_v12 = vld [vmem:[%s2518_s2 + $0x8] sm:$0xff] }
 0xa72   :  { %1864 = vtanh.f32 %v2233_v13 }
 0xa77   :  { %v691_v15 = vpop.permute.xlu2 %690 }
 0xa78   :  { %v1865_v16 = vpop.eup %1864  ;;  %v2237_v17 = vadd.f32 %v691_v15, %v683_v14  ;;  %v2305_v15 = vld [vmem:[%s2519_s3 + $0x8] sm:$0xff] }
 0xa79   :  { %628 = vrot.lane.b32.xlu0 %v1865_v16, %s1987_s23  ;;  %v2311_v16 = vld [vmem:[%s2519_s3] sm:$0xff] }
 0xa7a   :  { %1866 = vtanh.f32 %v2237_v17 }
 0xa80   :  { %v1867_v18 = vpop.eup %1866 }
 0xa81   :  { %696 = vrot.lane.b32.xlu1 %v1867_v18, %s1987_s23 }
 0xaeb   :  { %v629_v19 = vpop.permute.xlu0 %628 }
 0xaec   :  { %v631_v20 = vmul.f32 %v629_v19, %v612_v56 }
 0xaee   :  { %633 = vrot.lane.b32.xlu2 %v631_v20, %s1988_s24  ;;  %v1740_v20 = vld [vmem:[%s2521_s1 + $0xa] sm:$0x3] }
 0xaf3   :  { %v697_v21 = vpop.permute.xlu1 %696 }
 0xaf4   :  { %v699_v22 = vmul.f32 %v697_v21, %v680_v9 }
 0xaf6   :  { %701 = vrot.lane.b32.xlu0 %v699_v22, %s1988_s24 }
 0xb48   :  { %v634_v23 = vpop.permute.xlu2 %633 }
 0xb49   :  { %1723 = vst.msk [vmem:[%s2522_s4 + $0x8] sm:$0x3] %vm94_vm8, %v634_v23  ;;  %1729 = vmatmul.msk.f32.vlgmr.msra.gmra.mxu2 %vm28_vm9, %v634_v23 }
 0xb4a   :  { %1268 = vmatpush.msra.mxu2 %v2043_v0 }
 0xb4c   :  { %1269 = vmatpush.msra.mxu2 %v2053_v2 }
 0xb68   :  { %v702_v24 = vpop.permute.xlu0 %701 }
 0xb69   :  { %1727 = vst.msk [vmem:[%s2523_s5 + $0xe] sm:$0x3] %vm94_vm8, %v702_v24  ;;  %1733 = vmatmul.msk.f32.vlgmr.msra.gmra.mxu3 %vm28_vm9, %v702_v24 }
 0xb6a   :  { %1336 = vmatpush.msra.mxu3 %v2048_v1 }
 0xb6c   :  { %1337 = vmatpush.msra.mxu3 %v2060_v3 }
 0xbcc   :  { %v727_v26 = vpop.f32.mrf.mxu2 }
 0xbcd   :  { %v730_v0 = vadd.f32 %v1728_v25, %v727_v26 }
 0xbcf   :  { %1868 = vtanh.f32 %v730_v0  ;;  %v1730_v3 = vmul.f32 -1.442695, %v730_v0 }
 0xbd5   :  { %v1869_v2 = vpop.eup %1868 }
 0xbd6   :  { %753 = vrot.lane.b32.xlu1 %v1869_v2, %s1985_s21 }
 0xbec   :  { %v795_v28 = vpop.f32.mrf.mxu3 }
 0xbed   :  { %v798_v29 = vadd.f32 %v1732_v27, %v795_v28 }
 0xbef   :  { %1870 = vtanh.f32 %v798_v29  ;;  %v1734_v30 = vmul.f32 -1.442695, %v798_v29 }
 0xbf0   :  { %1872 = vpow2.f32 %v1730_v3 }
 0xbf1   :  { %1874 = vpow2.f32 %v1734_v30 }
 0xbf5   :  { %v1871_v1 = vpop.eup %1870 }
 0xbf6   :  { %821 = vrot.lane.b32.xlu2 %v1871_v1, %s1985_s21  ;;  %v1873_v31 = vpop.eup %1872 }
 0xbf7   :  { %v734_v32 = vadd.f32 1.0, %v1873_v31  ;;  %v1875_v33 = vpop.eup %1874 }
 0xbf8   :  { %v802_v34 = vadd.f32 1.0, %v1875_v33 }
 0xbf9   :  { %1876 = vrcp.f32 %v734_v32  ;;  %v746_v43 = vand.u32 2147483648, %v734_v32  ;;  %vm740_vm15 = vweird.f32 %v734_v32  ;;  %v744_v44 = vand.u32 2147483647, %v734_v32 }
 0xbfa   :  { %1878 = vrcp.f32 %v802_v34  ;;  %v814_v52 = vand.u32 2147483648, %v802_v34  ;;  %vm808_vm3 = vweird.f32 %v802_v34  ;;  %v812_v53 = vand.u32 2147483647, %v802_v34 }
 0xbfb   :  { %v747_v47 = vor.u32 1.1754944e-38, %v746_v43  ;;  %vm745_vm1 = vcmp.eq.f32.partialorder %v744_v44, 8.507059e+37 }
 0xbfc   :  { %v815_v55 = vor.u32 1.1754944e-38, %v814_v52  ;;  %vm813_vm5 = vcmp.eq.f32.partialorder %v812_v53, 8.507059e+37 }
 0xbff   :  { %v1877_v35 = vpop.eup %1876 }
 0xc00   :  { %v736_v36 = vmul.f32 %v1877_v35, %v734_v32  ;;  %v1879_v38 = vpop.eup %1878  ;;  %vm741_vm14 = vweird.f32 %v1877_v35 }
 0xc01   :  { %v804_v40 = vmul.f32 %v1879_v38, %v802_v34  ;;  %vm742_vm0 = vmor %vm740_vm15, %vm741_vm14  ;;  %vm809_vm2 = vweird.f32 %v1879_v38 }
 0xc02   :  { %v737_v37 = vsub.f32 1.0, %v736_v36  ;;  %vm810_vm4 = vmor %vm808_vm3, %vm809_vm2 }
 0xc03   :  { %v805_v42 = vsub.f32 1.0, %v804_v40 }
 0xc04   :  { %v738_v39 = vmul.f32 %v1877_v35, %v737_v37 }
 0xc05   :  { %v806_v46 = vmul.f32 %v1879_v38, %v805_v42 }
 0xc06   :  { %v739_v41 = vadd.f32 %v1877_v35, %v738_v39 }
 0xc07   :  { %v807_v51 = vadd.f32 %v1879_v38, %v806_v46 }
 0xc08   :  { %v743_v45 = vsel %vm742_vm0, %v1877_v35, %v739_v41 }
 0xc09   :  { %v748_v49 = vsel %vm745_vm1, %v747_v47, %v743_v45  ;;  %v811_v54 = vsel %vm810_vm4, %v1879_v38, %v807_v51 }
 0xc0a   :  { %v816_v56 = vsel %vm813_vm5, %v815_v55, %v811_v54  ;;  %v751_v59 = vmul.f32 %v748_v49, %v2233_v13  ;;  %v2294_v13 = vld [vmem:[%s2518_s2] sm:$0xff] }
 0xc0b   :  { %v819_v62 = vmul.f32 %v816_v56, %v2237_v17  ;;  %v1736_v17 = vld [vmem:[%s2520_s0 + $0xc] sm:$0x3] }
 0xc48   :  { %v754_v48 = vpop.permute.xlu1 %753 }
 0xc49   :  { %v756_v50 = vmul.f32 %v754_v48, %v748_v49 }
 0xc4b   :  { %758 = vrot.lane.b32.xlu0 %v756_v50, %s1986_s22 }
 0xc50   :  { %v822_v57 = vpop.permute.xlu2 %821 }
 0xc51   :  { %v824_v58 = vmul.f32 %v822_v57, %v816_v56 }
 0xc53   :  { %826 = vrot.lane.b32.xlu1 %v824_v58, %s1986_s22 }
 0xcbd   :  { %v759_v60 = vpop.permute.xlu0 %758 }
 0xcbe   :  { %v2269_v61 = vadd.f32 %v759_v60, %v751_v59 }
 0xcc0   :  { %1880 = vtanh.f32 %v2269_v61 }
 0xcc5   :  { %v827_v63 = vpop.permute.xlu1 %826 }
 0xcc6   :  { %v1881_v4 = vpop.eup %1880  ;;  %v2273_v5 = vadd.f32 %v827_v63, %v819_v62 }
 0xcc7   :  { %764 = vrot.lane.b32.xlu2 %v1881_v4, %s1987_s23 }
 0xcc8   :  { %1882 = vtanh.f32 %v2273_v5 }
 0xcce   :  { %v1883_v6 = vpop.eup %1882 }
 0xccf   :  { %832 = vrot.lane.b32.xlu0 %v1883_v6, %s1987_s23 }
 0xd21   :  { %v765_v7 = vpop.permute.xlu2 %764 }
 0xd22   :  { %v767_v8 = vmul.f32 %v765_v7, %v748_v49 }
 0xd24   :  { %769 = vrot.lane.b32.xlu1 %v767_v8, %s1988_s24  ;;  %v1748_v8 = vld [vmem:[%s2521_s1 + $0x8] sm:$0x3] }
 0xd41   :  { %v833_v9 = vpop.permute.xlu0 %832 }
 0xd42   :  { %v835_v10 = vmul.f32 %v833_v9, %v816_v56 }
 0xd44   :  { %837 = vrot.lane.b32.xlu2 %v835_v10, %s1988_s24 }
 0xd96   :  { %v770_v11 = vpop.permute.xlu1 %769 }
 0xd97   :  { %1731 = vst.msk [vmem:[%s2522_s4 + $0xa] sm:$0x3] %vm94_vm8, %v770_v11  ;;  %1737 = vmatmul.msk.f32.vlgmr.msrb.gmra.mxu0 %vm28_vm9, %v770_v11 }
 0xd98   :  { %1404 = vmatpush.msrb.mxu0 %v2288_v12 }
 0xd9a   :  { %1405 = vmatpush.msrb.mxu0 %v2294_v13 }
 0xd9e   :  { %v838_v14 = vpop.permute.xlu2 %837 }
 0xd9f   :  { %1735 = vst.msk [vmem:[%s2523_s5 + $0xc] sm:$0x3] %vm94_vm8, %v838_v14  ;;  %1741 = vmatmul.msk.f32.vlgmr.msrb.gmra.mxu1 %vm28_vm9, %v838_v14 }
 0xda0   :  { %1472 = vmatpush.msrb.mxu1 %v2305_v15 }
 0xda2   :  { %1473 = vmatpush.msrb.mxu1 %v2311_v16 }
 0xe14   :  { %v863_v18 = vpop.f32.mrf.mxu0 }
 0xe15   :  { %v866_v19 = vadd.f32 %v1736_v17, %v863_v18 }
 0xe17   :  { %1884 = vtanh.f32 %v866_v19  ;;  %v1738_v25 = vmul.f32 -1.442695, %v866_v19 }
 0xe1c   :  { %v931_v21 = vpop.f32.mrf.mxu1 }
 0xe1d   :  { %v1885_v22 = vpop.eup %1884  ;;  %v934_v23 = vadd.f32 %v1740_v20, %v931_v21 }
 0xe1e   :  { %889 = vrot.lane.b32.xlu0 %v1885_v22, %s1985_s21 }
 0xe1f   :  { %1886 = vtanh.f32 %v934_v23  ;;  %v1742_v26 = vmul.f32 -1.442695, %v934_v23 }
 0xe20   :  { %1888 = vpow2.f32 %v1738_v25 }
 0xe21   :  { %1890 = vpow2.f32 %v1742_v26 }
 0xe25   :  { %v1887_v24 = vpop.eup %1886 }
 0xe26   :  { %957 = vrot.lane.b32.xlu1 %v1887_v24, %s1985_s21  ;;  %v1889_v0 = vpop.eup %1888 }
 0xe27   :  { %v870_v2 = vadd.f32 1.0, %v1889_v0  ;;  %v1891_v27 = vpop.eup %1890 }
 0xe28   :  { %v938_v28 = vadd.f32 1.0, %v1891_v27 }
 0xe29   :  { %1892 = vrcp.f32 %v870_v2  ;;  %v882_v35 = vand.u32 2147483648, %v870_v2  ;;  %vm876_vm7 = vweird.f32 %v870_v2  ;;  %v880_v36 = vand.u32 2147483647, %v870_v2 }
 0xe2a   :  { %1894 = vrcp.f32 %v938_v28  ;;  %v950_v44 = vand.u32 2147483648, %v938_v28  ;;  %vm944_vm13 = vweird.f32 %v938_v28  ;;  %v948_v45 = vand.u32 2147483647, %v938_v28 }
 0xe2b   :  { %v883_v39 = vor.u32 1.1754944e-38, %v882_v35  ;;  %vm881_vm11 = vcmp.eq.f32.partialorder %v880_v36, 8.507059e+37 }
 0xe2c   :  { %v951_v47 = vor.u32 1.1754944e-38, %v950_v44  ;;  %vm949_vm15 = vcmp.eq.f32.partialorder %v948_v45, 8.507059e+37 }
 0xe2f   :  { %v1893_v29 = vpop.eup %1892 }
 0xe30   :  { %v872_v1 = vmul.f32 %v1893_v29, %v870_v2  ;;  %v1895_v30 = vpop.eup %1894  ;;  %vm877_vm6 = vweird.f32 %v1893_v29 }
 0xe31   :  { %v940_v32 = vmul.f32 %v1895_v30, %v938_v28  ;;  %vm878_vm10 = vmor %vm876_vm7, %vm877_vm6  ;;  %vm945_vm12 = vweird.f32 %v1895_v30 }
 0xe32   :  { %v873_v3 = vsub.f32 1.0, %v872_v1  ;;  %vm946_vm14 = vmor %vm944_vm13, %vm945_vm12 }
 0xe33   :  { %v941_v34 = vsub.f32 1.0, %v940_v32 }
 0xe34   :  { %v874_v31 = vmul.f32 %v1893_v29, %v873_v3 }
 0xe35   :  { %v942_v38 = vmul.f32 %v1895_v30, %v941_v34 }
 0xe36   :  { %v875_v33 = vadd.f32 %v1893_v29, %v874_v31 }
 0xe37   :  { %v943_v43 = vadd.f32 %v1895_v30, %v942_v38 }
 0xe38   :  { %v879_v37 = vsel %vm878_vm10, %v1893_v29, %v875_v33 }
 0xe39   :  { %v884_v41 = vsel %vm881_vm11, %v883_v39, %v879_v37  ;;  %v947_v46 = vsel %vm946_vm14, %v1895_v30, %v943_v43 }
 0xe3a   :  { %v952_v49 = vsel %vm949_vm15, %v951_v47, %v947_v46  ;;  %v887_v51 = vmul.f32 %v884_v41, %v2269_v61 }
 0xe3b   :  { %v955_v55 = vmul.f32 %v952_v49, %v2273_v5  ;;  %v1744_v5 = vld [vmem:[%s2520_s0 + $0xe] sm:$0x3] }
 0xe90   :  { %v890_v40 = vpop.permute.xlu0 %889 }
 0xe91   :  { %v892_v42 = vmul.f32 %v890_v40, %v884_v41 }
 0xe93   :  { %894 = vrot.lane.b32.xlu2 %v892_v42, %s1986_s22 }
 0xe98   :  { %v958_v48 = vpop.permute.xlu1 %957 }
 0xe99   :  { %v960_v50 = vmul.f32 %v958_v48, %v952_v49 }
 0xe9b   :  { %962 = vrot.lane.b32.xlu0 %v960_v50, %s1986_s22 }
 0xeed   :  { %v895_v52 = vpop.permute.xlu2 %894 }
 0xeee   :  { %v2325_v53 = vadd.f32 %v895_v52, %v887_v51 }
 0xef0   :  { %1896 = vtanh.f32 %v2325_v53 }
 0xef6   :  { %v1897_v54 = vpop.eup %1896 }
 0xef7   :  { %900 = vrot.lane.b32.xlu1 %v1897_v54, %s1987_s23 }
 0xf0d   :  { %v963_v56 = vpop.permute.xlu0 %962 }
 0xf0e   :  { %v2330_v57 = vadd.f32 %v963_v56, %v955_v55 }
 0xf10   :  { %1898 = vtanh.f32 %v2330_v57 }
 0xf16   :  { %v1899_v58 = vpop.eup %1898 }
 0xf17   :  { %968 = vrot.lane.b32.xlu2 %v1899_v58, %s1987_s23 }
 0xf69   :  { %v901_v59 = vpop.permute.xlu1 %900 }
 0xf6a   :  { %v903_v60 = vmul.f32 %v901_v59, %v884_v41 }
 0xf6c   :  { %905 = vrot.lane.b32.xlu0 %v903_v60, %s1988_s24 }
 0xf71   :  { %v969_v61 = vpop.permute.xlu2 %968 }
 0xf72   :  { %v971_v62 = vmul.f32 %v969_v61, %v952_v49 }
 0xf74   :  { %973 = vrot.lane.b32.xlu1 %v971_v62, %s1988_s24 }
 0xfde   :  { %v906_v63 = vpop.permute.xlu0 %905 }
 0xfdf   :  { %1739 = vst.msk [vmem:[%s2522_s4 + $0xc] sm:$0x3] %vm94_vm8, %v906_v63  ;;  %1745 = vmatmul.msk.f32.vlgmr.msrb.gmra.mxu2 %vm28_vm9, %v906_v63 }
 0xfe0   :  { %1540 = vmatpush.msrb.mxu2 %v2288_v12 }
 0xfe2   :  { %1541 = vmatpush.msrb.mxu2 %v2294_v13 }
 0xfe6   :  { %v974_v4 = vpop.permute.xlu1 %973 }
 0xfe7   :  { %1743 = vst.msk [vmem:[%s2523_s5 + $0xa] sm:$0x3] %vm94_vm8, %v974_v4  ;;  %1749 = vmatmul.msk.f32.vlgmr.msrb.gmra.mxu3 %vm28_vm9, %v974_v4 }
 0xfe8   :  { %1607 = vmatpush.msrb.mxu3 %v2305_v15 }
 0xfea   :  { %1608 = vmatpush.msrb.mxu3 %v2311_v16 }
0x1062   :  { %v999_v6 = vpop.f32.mrf.mxu2 }
0x1063   :  { %v1002_v7 = vadd.f32 %v1744_v5, %v999_v6 }
0x1065   :  { %1900 = vtanh.f32 %v1002_v7  ;;  %v1746_v13 = vmul.f32 -1.442695, %v1002_v7 }
0x106a   :  { %v1067_v9 = vpop.f32.mrf.mxu3 }
0x106b   :  { %v1901_v10 = vpop.eup %1900  ;;  %v1070_v11 = vadd.f32 %v1748_v8, %v1067_v9 }
0x106c   :  { %1025 = vrot.lane.b32.xlu2 %v1901_v10, %s1985_s21 }
0x106d   :  { %1902 = vtanh.f32 %v1070_v11  ;;  %v1750_v19 = vmul.f32 -1.442695, %v1070_v11 }
0x106e   :  { %1904 = vpow2.f32 %v1746_v13 }
0x1073   :  { %v1903_v12 = vpop.eup %1902 }
0x1074   :  { %1093 = vrot.lane.b32.xlu0 %v1903_v12, %s1985_s21  ;;  %v1905_v14 = vpop.eup %1904 }
0x1075   :  { %v1006_v15 = vadd.f32 1.0, %v1905_v14 }
0x1077   :  { %1906 = vrcp.f32 %v1006_v15  ;;  %v1018_v22 = vand.u32 2147483648, %v1006_v15  ;;  %vm1012_vm1 = vweird.f32 %v1006_v15  ;;  %v1016_v23 = vand.u32 2147483647, %v1006_v15 }
0x1078   :  { %1908 = vpow2.f32 %v1750_v19 }
0x1079   :  { %v1019_v26 = vor.u32 1.1754944e-38, %v1018_v22  ;;  %vm1017_vm3 = vcmp.eq.f32.partialorder %v1016_v23, 8.507059e+37 }
0x107d   :  { %v1907_v16 = vpop.eup %1906 }
0x107e   :  { %v1008_v17 = vmul.f32 %v1907_v16, %v1006_v15  ;;  %vm1013_vm0 = vweird.f32 %v1907_v16  ;;  %v1909_v24 = vpop.eup %1908 }
0x107f   :  { %vm1014_vm2 = vmor %vm1012_vm1, %vm1013_vm0  ;;  %v1074_v0 = vadd.f32 1.0, %v1909_v24 }
0x1080   :  { %v1009_v18 = vsub.f32 1.0, %v1008_v17 }
0x1081   :  { %1910 = vrcp.f32 %v1074_v0  ;;  %v1086_v32 = vand.u32 2147483648, %v1074_v0  ;;  %vm1080_vm5 = vweird.f32 %v1074_v0  ;;  %v1084_v33 = vand.u32 2147483647, %v1074_v0 }
0x1082   :  { %v1010_v20 = vmul.f32 %v1907_v16, %v1009_v18 }
0x1083   :  { %v1087_v35 = vor.u32 1.1754944e-38, %v1086_v32  ;;  %vm1085_vm7 = vcmp.eq.f32.partialorder %v1084_v33, 8.507059e+37 }
0x1084   :  { %v1011_v21 = vadd.f32 %v1907_v16, %v1010_v20 }
0x1086   :  { %v1015_v25 = vsel %vm1014_vm2, %v1907_v16, %v1011_v21 }
0x1087   :  { %v1020_v2 = vsel %vm1017_vm3, %v1019_v26, %v1015_v25  ;;  %v1911_v29 = vpop.eup %1910 }
0x1088   :  { %v1076_v1 = vmul.f32 %v1911_v29, %v1074_v0  ;;  %vm1081_vm4 = vweird.f32 %v1911_v29  ;;  %v1023_v39 = vmul.f32 %v1020_v2, %v2325_v53  ;;  %v1752_v53 = vld [vmem:[%s2520_s0 + $0x10] sm:$0x3] }
0x1089   :  { %vm1082_vm6 = vmor %vm1080_vm5, %vm1081_vm4 }
0x108a   :  { %v1077_v3 = vsub.f32 1.0, %v1076_v1 }
0x108c   :  { %v1078_v30 = vmul.f32 %v1911_v29, %v1077_v3 }
0x108e   :  { %v1079_v31 = vadd.f32 %v1911_v29, %v1078_v30 }
0x1090   :  { %v1083_v34 = vsel %vm1082_vm6, %v1911_v29, %v1079_v31 }
0x1091   :  { %v1088_v37 = vsel %vm1085_vm7, %v1087_v35, %v1083_v34 }
0x1092   :  { %v1091_v42 = vmul.f32 %v1088_v37, %v2330_v57  ;;  %v1756_v57 = vld [vmem:[%s2521_s1 + $0x6] sm:$0x3] }
0x10c6   :  { %v1026_v27 = vpop.permute.xlu2 %1025 }
0x10c7   :  { %v1028_v28 = vmul.f32 %v1026_v27, %v1020_v2 }
0x10c9   :  { %1030 = vrot.lane.b32.xlu1 %v1028_v28, %s1986_s22 }
0x10e6   :  { %v1094_v36 = vpop.permute.xlu0 %1093 }
0x10e7   :  { %v1096_v38 = vmul.f32 %v1094_v36, %v1088_v37 }
0x10e9   :  { %1098 = vrot.lane.b32.xlu2 %v1096_v38, %s1986_s22 }
0x113b   :  { %v1031_v40 = vpop.permute.xlu1 %1030 }
0x113c   :  { %v2361_v41 = vadd.f32 %v1031_v40, %v1023_v39 }
0x113e   :  { %1912 = vtanh.f32 %v2361_v41 }
0x1143   :  { %v1099_v43 = vpop.permute.xlu2 %1098 }
0x1144   :  { %v1913_v44 = vpop.eup %1912  ;;  %v2365_v45 = vadd.f32 %v1099_v43, %v1091_v42 }
0x1145   :  { %1036 = vrot.lane.b32.xlu0 %v1913_v44, %s1987_s23  ;;  %v1764_v44 = vld [vmem:[%s2521_s1 + $0x4] sm:$0x3] }
0x1146   :  { %1914 = vtanh.f32 %v2365_v45 }
0x114c   :  { %v1915_v46 = vpop.eup %1914 }
0x114d   :  { %1104 = vrot.lane.b32.xlu1 %v1915_v46, %s1987_s23 }
0x11b7   :  { %v1037_v47 = vpop.permute.xlu0 %1036 }
0x11b8   :  { %v1039_v48 = vmul.f32 %v1037_v47, %v1020_v2 }
0x11ba   :  { %1041 = vrot.lane.b32.xlu2 %v1039_v48, %s1988_s24 }
0x11bf   :  { %v1105_v49 = vpop.permute.xlu1 %1104 }
0x11c0   :  { %v1107_v50 = vmul.f32 %v1105_v49, %v1088_v37 }
0x11c2   :  { %1109 = vrot.lane.b32.xlu0 %v1107_v50, %s1988_s24 }
0x1214   :  { %v1042_v51 = vpop.permute.xlu2 %1041 }
0x1215   :  { %1747 = vst.msk [vmem:[%s2522_s4 + $0xe] sm:$0x3] %vm94_vm8, %v1042_v51  ;;  %1753 = vmatmul.msk.f32.vlgmr.msra.gmra.mxu0 %vm28_vm9, %v1042_v51 }
0x1234   :  { %v1110_v52 = vpop.permute.xlu0 %1109 }
0x1235   :  { %1751 = vst.msk [vmem:[%s2523_s5 + $0x8] sm:$0x3] %vm94_vm8, %v1110_v52  ;;  %1757 = vmatmul.msk.f32.vlgmr.msra.gmra.mxu1 %vm28_vm9, %v1110_v52 }
0x1292   :  { %v1135_v54 = vpop.f32.mrf.mxu0 }
0x1293   :  { %v1138_v55 = vadd.f32 %v1752_v53, %v1135_v54 }
0x1295   :  { %1916 = vtanh.f32 %v1138_v55  ;;  %v1754_v61 = vmul.f32 -1.442695, %v1138_v55 }
0x129b   :  { %v1917_v56 = vpop.eup %1916 }
0x129c   :  { %1161 = vrot.lane.b32.xlu1 %v1917_v56, %s1985_s21 }
0x12b2   :  { %v1203_v58 = vpop.f32.mrf.mxu1 }
0x12b3   :  { %v1206_v59 = vadd.f32 %v1756_v57, %v1203_v58 }
0x12b5   :  { %1918 = vtanh.f32 %v1206_v59  ;;  %v1758_v62 = vmul.f32 -1.442695, %v1206_v59 }
0x12b6   :  { %1920 = vpow2.f32 %v1754_v61 }
0x12b7   :  { %1922 = vpow2.f32 %v1758_v62 }
0x12bb   :  { %v1919_v60 = vpop.eup %1918 }
0x12bc   :  { %1229 = vrot.lane.b32.xlu2 %v1919_v60, %s1985_s21  ;;  %v1921_v63 = vpop.eup %1920 }
0x12bd   :  { %v1142_v4 = vadd.f32 1.0, %v1921_v63  ;;  %v1923_v5 = vpop.eup %1922 }
0x12be   :  { %v1210_v6 = vadd.f32 1.0, %v1923_v5 }
0x12bf   :  { %1924 = vrcp.f32 %v1142_v4  ;;  %v1154_v15 = vand.u32 2147483648, %v1142_v4  ;;  %vm1148_vm11 = vweird.f32 %v1142_v4  ;;  %v1152_v16 = vand.u32 2147483647, %v1142_v4 }
0x12c0   :  { %1926 = vrcp.f32 %v1210_v6  ;;  %v1222_v24 = vand.u32 2147483648, %v1210_v6  ;;  %vm1216_vm15 = vweird.f32 %v1210_v6  ;;  %v1220_v25 = vand.u32 2147483647, %v1210_v6 }
0x12c1   :  { %v1155_v19 = vor.u32 1.1754944e-38, %v1154_v15  ;;  %vm1153_vm13 = vcmp.eq.f32.partialorder %v1152_v16, 8.507059e+37 }
0x12c2   :  { %v1223_v0 = vor.u32 1.1754944e-38, %v1222_v24  ;;  %vm1221_vm1 = vcmp.eq.f32.partialorder %v1220_v25, 8.507059e+37 }
0x12c5   :  { %v1925_v7 = vpop.eup %1924 }
0x12c6   :  { %v1144_v8 = vmul.f32 %v1925_v7, %v1142_v4  ;;  %v1927_v10 = vpop.eup %1926  ;;  %vm1149_vm10 = vweird.f32 %v1925_v7 }
0x12c7   :  { %v1212_v12 = vmul.f32 %v1927_v10, %v1210_v6  ;;  %vm1150_vm12 = vmor %vm1148_vm11, %vm1149_vm10  ;;  %vm1217_vm14 = vweird.f32 %v1927_v10 }
0x12c8   :  { %v1145_v9 = vsub.f32 1.0, %v1144_v8  ;;  %vm1218_vm0 = vmor %vm1216_vm15, %vm1217_vm14 }
0x12c9   :  { %v1213_v14 = vsub.f32 1.0, %v1212_v12 }
0x12ca   :  { %v1146_v11 = vmul.f32 %v1925_v7, %v1145_v9 }
0x12cb   :  { %v1214_v18 = vmul.f32 %v1927_v10, %v1213_v14 }
0x12cc   :  { %v1147_v13 = vadd.f32 %v1925_v7, %v1146_v11 }
0x12cd   :  { %v1215_v23 = vadd.f32 %v1927_v10, %v1214_v18 }
0x12ce   :  { %v1151_v17 = vsel %vm1150_vm12, %v1925_v7, %v1147_v13 }
0x12cf   :  { %v1156_v21 = vsel %vm1153_vm13, %v1155_v19, %v1151_v17  ;;  %v1219_v26 = vsel %vm1218_vm0, %v1927_v10, %v1215_v23 }
0x12d0   :  { %v1224_v2 = vsel %vm1221_vm1, %v1223_v0, %v1219_v26  ;;  %v1159_v29 = vmul.f32 %v1156_v21, %v2361_v41  ;;  %v1760_v41 = vld [vmem:[%s2520_s0 + $0x12] sm:$0x3] }
0x12d1   :  { %v1227_v30 = vmul.f32 %v1224_v2, %v2365_v45 }
0x130e   :  { %v1162_v20 = vpop.permute.xlu1 %1161 }
0x130f   :  { %v1164_v22 = vmul.f32 %v1162_v20, %v1156_v21 }
0x1311   :  { %1166 = vrot.lane.b32.xlu0 %v1164_v22, %s1986_s22 }
0x1316   :  { %v1230_v27 = vpop.permute.xlu2 %1229 }
0x1317   :  { %v1232_v28 = vmul.f32 %v1230_v27, %v1224_v2 }
0x1319   :  { %1234 = vrot.lane.b32.xlu1 %v1232_v28, %s1986_s22 }
0x1383   :  { %v1167_v1 = vpop.permute.xlu0 %1166 }
0x1384   :  { %v2393_v3 = vadd.f32 %v1167_v1, %v1159_v29 }
0x1386   :  { %1928 = vtanh.f32 %v2393_v3 }
0x138b   :  { %v1235_v31 = vpop.permute.xlu1 %1234 }
0x138c   :  { %v1929_v32 = vpop.eup %1928  ;;  %v2397_v33 = vadd.f32 %v1235_v31, %v1227_v30 }
0x138d   :  { %1172 = vrot.lane.b32.xlu2 %v1929_v32, %s1987_s23  ;;  %v1772_v32 = vld [vmem:[%s2521_s1 + $0x2] sm:$0x3] }
0x138e   :  { %1930 = vtanh.f32 %v2397_v33 }
0x1394   :  { %v1931_v34 = vpop.eup %1930 }
0x1395   :  { %1240 = vrot.lane.b32.xlu0 %v1931_v34, %s1987_s23 }
0x13e7   :  { %v1173_v35 = vpop.permute.xlu2 %1172 }
0x13e8   :  { %v1175_v36 = vmul.f32 %v1173_v35, %v1156_v21 }
0x13ea   :  { %1177 = vrot.lane.b32.xlu1 %v1175_v36, %s1988_s24 }
0x1407   :  { %v1241_v37 = vpop.permute.xlu0 %1240 }
0x1408   :  { %v1243_v38 = vmul.f32 %v1241_v37, %v1224_v2 }
0x140a   :  { %1245 = vrot.lane.b32.xlu2 %v1243_v38, %s1988_s24 }
0x145c   :  { %v1178_v39 = vpop.permute.xlu1 %1177 }
0x145d   :  { %1755 = vst.msk [vmem:[%s2522_s4 + $0x10] sm:$0x3] %vm94_vm8, %v1178_v39  ;;  %1761 = vmatmul.msk.f32.vlgmr.msra.gmra.mxu2 %vm28_vm9, %v1178_v39 }
0x1464   :  { %v1246_v40 = vpop.permute.xlu2 %1245 }
0x1465   :  { %1759 = vst.msk [vmem:[%s2523_s5 + $0x6] sm:$0x3] %vm94_vm8, %v1246_v40  ;;  %1765 = vmatmul.msk.f32.vlgmr.msra.gmra.mxu3 %vm28_vm9, %v1246_v40 }
0x14e0   :  { %v1271_v42 = vpop.f32.mrf.mxu2 }
0x14e1   :  { %v1274_v43 = vadd.f32 %v1760_v41, %v1271_v42 }
0x14e3   :  { %1932 = vtanh.f32 %v1274_v43  ;;  %v1762_v49 = vmul.f32 -1.442695, %v1274_v43 }
0x14e8   :  { %v1339_v45 = vpop.f32.mrf.mxu3 }
0x14e9   :  { %v1933_v46 = vpop.eup %1932  ;;  %v1342_v47 = vadd.f32 %v1764_v44, %v1339_v45 }
0x14ea   :  { %1297 = vrot.lane.b32.xlu0 %v1933_v46, %s1985_s21 }
0x14eb   :  { %1934 = vtanh.f32 %v1342_v47  ;;  %v1766_v50 = vmul.f32 -1.442695, %v1342_v47 }
0x14ec   :  { %1936 = vpow2.f32 %v1762_v49 }
0x14ed   :  { %1938 = vpow2.f32 %v1766_v50 }
0x14f1   :  { %v1935_v48 = vpop.eup %1934 }
0x14f2   :  { %1365 = vrot.lane.b32.xlu1 %v1935_v48, %s1985_s21  ;;  %v1937_v51 = vpop.eup %1936 }
0x14f3   :  { %v1278_v52 = vadd.f32 1.0, %v1937_v51  ;;  %v1939_v53 = vpop.eup %1938 }
0x14f4   :  { %v1346_v54 = vadd.f32 1.0, %v1939_v53 }
0x14f5   :  { %1940 = vrcp.f32 %v1278_v52  ;;  %v1290_v63 = vand.u32 2147483648, %v1278_v52  ;;  %vm1284_vm3 = vweird.f32 %v1278_v52  ;;  %v1288_v4 = vand.u32 2147483647, %v1278_v52 }
0x14f6   :  { %1942 = vrcp.f32 %v1346_v54  ;;  %v1358_v12 = vand.u32 2147483648, %v1346_v54  ;;  %vm1352_vm7 = vweird.f32 %v1346_v54  ;;  %v1356_v13 = vand.u32 2147483647, %v1346_v54 }
0x14f7   :  { %v1291_v7 = vor.u32 1.1754944e-38, %v1290_v63  ;;  %vm1289_vm5 = vcmp.eq.f32.partialorder %v1288_v4, 8.507059e+37 }
0x14f8   :  { %v1359_v15 = vor.u32 1.1754944e-38, %v1358_v12  ;;  %vm1357_vm11 = vcmp.eq.f32.partialorder %v1356_v13, 8.507059e+37 }
0x14fb   :  { %v1941_v55 = vpop.eup %1940 }
0x14fc   :  { %v1280_v56 = vmul.f32 %v1941_v55, %v1278_v52  ;;  %v1943_v58 = vpop.eup %1942  ;;  %vm1285_vm2 = vweird.f32 %v1941_v55 }
0x14fd   :  { %v1348_v60 = vmul.f32 %v1943_v58, %v1346_v54  ;;  %vm1286_vm4 = vmor %vm1284_vm3, %vm1285_vm2  ;;  %vm1353_vm6 = vweird.f32 %v1943_v58 }
0x14fe   :  { %v1281_v57 = vsub.f32 1.0, %v1280_v56  ;;  %vm1354_vm10 = vmor %vm1352_vm7, %vm1353_vm6 }
0x14ff   :  { %v1349_v62 = vsub.f32 1.0, %v1348_v60 }
0x1500   :  { %v1282_v59 = vmul.f32 %v1941_v55, %v1281_v57 }
0x1501   :  { %v1350_v6 = vmul.f32 %v1943_v58, %v1349_v62 }
0x1502   :  { %v1283_v61 = vadd.f32 %v1941_v55, %v1282_v59 }
0x1503   :  { %v1351_v11 = vadd.f32 %v1943_v58, %v1350_v6 }
0x1504   :  { %v1287_v5 = vsel %vm1286_vm4, %v1941_v55, %v1283_v61 }
0x1505   :  { %v1292_v9 = vsel %vm1289_vm5, %v1291_v7, %v1287_v5  ;;  %v1355_v14 = vsel %vm1354_vm10, %v1943_v58, %v1351_v11 }
0x1506   :  { %v1360_v17 = vsel %vm1357_vm11, %v1359_v15, %v1355_v14  ;;  %v1295_v19 = vmul.f32 %v1292_v9, %v2393_v3  ;;  %v1768_v3 = vld [vmem:[%s2520_s0 + $0x14] sm:$0x3] }
0x1507   :  { %v1363_v23 = vmul.f32 %v1360_v17, %v2397_v33 }
0x155c   :  { %v1298_v8 = vpop.permute.xlu0 %1297 }
0x155d   :  { %v1300_v10 = vmul.f32 %v1298_v8, %v1292_v9 }
0x155f   :  { %1302 = vrot.lane.b32.xlu2 %v1300_v10, %s1986_s22 }
0x1564   :  { %v1366_v16 = vpop.permute.xlu1 %1365 }
0x1565   :  { %v1368_v18 = vmul.f32 %v1366_v16, %v1360_v17 }
0x1567   :  { %1370 = vrot.lane.b32.xlu0 %v1368_v18, %s1986_s22 }
0x15b9   :  { %v1303_v20 = vpop.permute.xlu2 %1302 }
0x15ba   :  { %v2425_v21 = vadd.f32 %v1303_v20, %v1295_v19 }
0x15bc   :  { %1944 = vtanh.f32 %v2425_v21 }
0x15c2   :  { %v1945_v22 = vpop.eup %1944 }
0x15c3   :  { %1308 = vrot.lane.b32.xlu1 %v1945_v22, %s1987_s23 }
0x15d9   :  { %v1371_v24 = vpop.permute.xlu0 %1370 }
0x15da   :  { %v2430_v25 = vadd.f32 %v1371_v24, %v1363_v23 }
0x15dc   :  { %1946 = vtanh.f32 %v2430_v25 }
0x15e2   :  { %v1947_v26 = vpop.eup %1946 }
0x15e3   :  { %1376 = vrot.lane.b32.xlu2 %v1947_v26, %s1987_s23 }
0x1635   :  { %v1309_v0 = vpop.permute.xlu1 %1308 }
0x1636   :  { %v1311_v2 = vmul.f32 %v1309_v0, %v1292_v9 }
0x1638   :  { %1313 = vrot.lane.b32.xlu0 %v1311_v2, %s1988_s24 }
0x163d   :  { %v1377_v27 = vpop.permute.xlu2 %1376 }
0x163e   :  { %v1379_v28 = vmul.f32 %v1377_v27, %v1360_v17 }
0x1640   :  { %1381 = vrot.lane.b32.xlu1 %v1379_v28, %s1988_s24 }
0x16aa   :  { %v1314_v29 = vpop.permute.xlu0 %1313 }
0x16ab   :  { %1763 = vst.msk [vmem:[%s2522_s4 + $0x12] sm:$0x3] %vm94_vm8, %v1314_v29  ;;  %1769 = vmatmul.msk.f32.vlgmr.msrb.gmra.mxu0 %vm28_vm9, %v1314_v29 }
0x16b2   :  { %v1382_v1 = vpop.permute.xlu1 %1381 }
0x16b3   :  { %1767 = vst.msk [vmem:[%s2523_s5 + $0x4] sm:$0x3] %vm94_vm8, %v1382_v1  ;;  %1773 = vmatmul.msk.f32.vlgmr.msrb.gmra.mxu1 %vm28_vm9, %v1382_v1 }
0x1728   :  { %v1407_v30 = vpop.f32.mrf.mxu0 }
0x1729   :  { %v1410_v31 = vadd.f32 %v1768_v3, %v1407_v30 }
0x172b   :  { %1948 = vtanh.f32 %v1410_v31  ;;  %v1770_v37 = vmul.f32 -1.442695, %v1410_v31 }
0x1730   :  { %v1475_v33 = vpop.f32.mrf.mxu1 }
0x1731   :  { %v1949_v34 = vpop.eup %1948  ;;  %v1478_v35 = vadd.f32 %v1772_v32, %v1475_v33 }
0x1732   :  { %1433 = vrot.lane.b32.xlu2 %v1949_v34, %s1985_s21 }
0x1733   :  { %1950 = vtanh.f32 %v1478_v35  ;;  %v1774_v43 = vmul.f32 -1.442695, %v1478_v35 }
0x1734   :  { %1952 = vpow2.f32 %v1770_v37 }
0x1739   :  { %v1951_v36 = vpop.eup %1950 }
0x173a   :  { %1501 = vrot.lane.b32.xlu0 %v1951_v36, %s1985_s21  ;;  %v1953_v38 = vpop.eup %1952 }
0x173b   :  { %v1414_v39 = vadd.f32 1.0, %v1953_v38 }
0x173d   :  { %1954 = vrcp.f32 %v1414_v39  ;;  %v1426_v46 = vand.u32 2147483648, %v1414_v39  ;;  %vm1420_vm13 = vweird.f32 %v1414_v39  ;;  %v1424_v47 = vand.u32 2147483647, %v1414_v39 }
0x173e   :  { %1956 = vpow2.f32 %v1774_v43 }
0x173f   :  { %v1427_v50 = vor.u32 1.1754944e-38, %v1426_v46  ;;  %vm1425_vm15 = vcmp.eq.f32.partialorder %v1424_v47, 8.507059e+37 }
0x1743   :  { %v1955_v40 = vpop.eup %1954 }
0x1744   :  { %v1416_v41 = vmul.f32 %v1955_v40, %v1414_v39  ;;  %vm1421_vm12 = vweird.f32 %v1955_v40  ;;  %v1957_v48 = vpop.eup %1956 }
0x1745   :  { %vm1422_vm14 = vmor %vm1420_vm13, %vm1421_vm12  ;;  %v1482_v51 = vadd.f32 1.0, %v1957_v48 }
0x1746   :  { %v1417_v42 = vsub.f32 1.0, %v1416_v41 }
0x1747   :  { %1958 = vrcp.f32 %v1482_v51  ;;  %v1494_v60 = vand.u32 2147483648, %v1482_v51  ;;  %vm1488_vm1 = vweird.f32 %v1482_v51  ;;  %v1492_v61 = vand.u32 2147483647, %v1482_v51 }
0x1748   :  { %v1418_v44 = vmul.f32 %v1955_v40, %v1417_v42 }
0x1749   :  { %v1495_v63 = vor.u32 1.1754944e-38, %v1494_v60  ;;  %vm1493_vm3 = vcmp.eq.f32.partialorder %v1492_v61, 8.507059e+37 }
0x174a   :  { %v1419_v45 = vadd.f32 %v1955_v40, %v1418_v44 }
0x174c   :  { %v1423_v49 = vsel %vm1422_vm14, %v1955_v40, %v1419_v45 }
0x174d   :  { %v1428_v52 = vsel %vm1425_vm15, %v1427_v50, %v1423_v49  ;;  %v1959_v55 = vpop.eup %1958 }
0x174e   :  { %v1484_v56 = vmul.f32 %v1959_v55, %v1482_v51  ;;  %vm1489_vm0 = vweird.f32 %v1959_v55  ;;  %v1431_v7 = vmul.f32 %v1428_v52, %v2425_v21  ;;  %v1776_v21 = vld [vmem:[%s2520_s0 + $0x16] sm:$0x3]  ;;  %s1989_s0 = smov 112  }
0x174f   :  { %vm1490_vm2 = vmor %vm1488_vm1, %vm1489_vm0 }
0x1750   :  { %v1485_v57 = vsub.f32 1.0, %v1484_v56 }
0x1752   :  { %v1486_v58 = vmul.f32 %v1959_v55, %v1485_v57 }
0x1754   :  { %v1487_v59 = vadd.f32 %v1959_v55, %v1486_v58 }
0x1756   :  { %v1491_v62 = vsel %vm1490_vm2, %v1959_v55, %v1487_v59 }
0x1757   :  { %v1496_v5 = vsel %vm1493_vm3, %v1495_v63, %v1491_v62 }
0x1758   :  { %v1499_v10 = vmul.f32 %v1496_v5, %v2430_v25  ;;  %v1590_v25 = vld [vmem:[%s2521_s1] sm:$0x3] }
0x178c   :  { %v1434_v53 = vpop.permute.xlu2 %1433 }
0x178d   :  { %v1436_v54 = vmul.f32 %v1434_v53, %v1428_v52 }
0x178f   :  { %1438 = vrot.lane.b32.xlu1 %v1436_v54, %s1986_s22 }
0x17ac   :  { %v1502_v4 = vpop.permute.xlu0 %1501 }
0x17ad   :  { %v1504_v6 = vmul.f32 %v1502_v4, %v1496_v5 }
0x17af   :  { %1506 = vrot.lane.b32.xlu2 %v1504_v6, %s1986_s22 }
0x1801   :  { %v1439_v8 = vpop.permute.xlu1 %1438 }
0x1802   :  { %v2457_v9 = vadd.f32 %v1439_v8, %v1431_v7 }
0x1804   :  { %1960 = vtanh.f32 %v2457_v9 }
0x1809   :  { %v1507_v11 = vpop.permute.xlu2 %1506 }
0x180a   :  { %v1961_v12 = vpop.eup %1960  ;;  %v2461_v13 = vadd.f32 %v1507_v11, %v1499_v10 }
0x180b   :  { %1444 = vrot.lane.b32.xlu0 %v1961_v12, %s1987_s23 }
0x180c   :  { %1962 = vtanh.f32 %v2461_v13 }
0x1812   :  { %v1963_v14 = vpop.eup %1962 }
0x1813   :  { %1512 = vrot.lane.b32.xlu1 %v1963_v14, %s1987_s23 }
0x187d   :  { %v1445_v15 = vpop.permute.xlu0 %1444 }
0x187e   :  { %v1447_v16 = vmul.f32 %v1445_v15, %v1428_v52 }
0x1880   :  { %1449 = vrot.lane.b32.xlu2 %v1447_v16, %s1988_s24 }
0x1885   :  { %v1513_v17 = vpop.permute.xlu1 %1512 }
0x1886   :  { %v1515_v18 = vmul.f32 %v1513_v17, %v1496_v5 }
0x1888   :  { %1517 = vrot.lane.b32.xlu0 %v1515_v18, %s1988_s24 }
0x18da   :  { %v1450_v19 = vpop.permute.xlu2 %1449 }
0x18db   :  { %1771 = vst.msk [vmem:[%s2522_s4 + $0x14] sm:$0x3] %vm94_vm8, %v1450_v19  ;;  %1777 = vmatmul.msk.f32.vlgmr.msrb.gmra.mxu2 %vm28_vm9, %v1450_v19 }
0x18fa   :  { %v1518_v20 = vpop.permute.xlu0 %1517 }
0x18fb   :  { %1775 = vst.msk [vmem:[%s2523_s5 + $0x2] sm:$0x3] %vm94_vm8, %v1518_v20  ;;  %1780 = vmatmul.msk.f32.vlgmr.msrb.gmra.mxu3 %vm28_vm9, %v1518_v20 }
0x195e   :  { %v1543_v22 = vpop.f32.mrf.mxu2 }
0x195f   :  { %v1546_v23 = vadd.f32 %v1776_v21, %v1543_v22 }
0x1961   :  { %1964 = vtanh.f32 %v1546_v23  ;;  %v1778_v27 = vmul.f32 -1.442695, %v1546_v23 }
0x1967   :  { %v1965_v24 = vpop.eup %1964 }
0x1968   :  { %1569 = vrot.lane.b32.xlu1 %v1965_v24, %s1985_s21 }
0x197e   :  { %v1610_v26 = vpop.f32.mrf.mxu3 }
0x197f   :  { %v1613_v0 = vadd.f32 %v1610_v26, %v1590_v25 }
0x1981   :  { %1966 = vtanh.f32 %v1613_v0  ;;  %v1781_v28 = vmul.f32 -1.442695, %v1613_v0 }
0x1982   :  { %1968 = vpow2.f32 %v1778_v27 }
0x1983   :  { %1970 = vpow2.f32 %v1781_v28 }
0x1987   :  { %v1967_v2 = vpop.eup %1966 }
0x1988   :  { %1636 = vrot.lane.b32.xlu2 %v1967_v2, %s1985_s21  ;;  %v1969_v29 = vpop.eup %1968 }
0x1989   :  { %v1550_v1 = vadd.f32 1.0, %v1969_v29  ;;  %v1971_v3 = vpop.eup %1970 }
0x198a   :  { %v1617_v30 = vadd.f32 1.0, %v1971_v3 }
0x198b   :  { %1972 = vrcp.f32 %v1550_v1  ;;  %v1562_v39 = vand.u32 2147483648, %v1550_v1  ;;  %vm1556_vm4 = vweird.f32 %v1550_v1  ;;  %v1560_v40 = vand.u32 2147483647, %v1550_v1 }
0x198c   :  { %1974 = vrcp.f32 %v1617_v30  ;;  %v1629_v48 = vand.u32 2147483648, %v1617_v30  ;;  %vm1623_vm10 = vweird.f32 %v1617_v30  ;;  %v1627_v49 = vand.u32 2147483647, %v1617_v30 }
0x198d   :  { %v1563_v43 = vor.u32 1.1754944e-38, %v1562_v39  ;;  %vm1561_vm6 = vcmp.eq.f32.partialorder %v1560_v40, 8.507059e+37 }
0x198e   :  { %v1630_v51 = vor.u32 1.1754944e-38, %v1629_v48  ;;  %vm1628_vm12 = vcmp.eq.f32.partialorder %v1627_v49, 8.507059e+37 }
0x1991   :  { %v1973_v31 = vpop.eup %1972 }
0x1992   :  { %v1552_v32 = vmul.f32 %v1973_v31, %v1550_v1  ;;  %v1975_v34 = vpop.eup %1974  ;;  %vm1557_vm9 = vweird.f32 %v1973_v31 }
0x1993   :  { %v1619_v36 = vmul.f32 %v1975_v34, %v1617_v30  ;;  %vm1558_vm5 = vmor %vm1556_vm4, %vm1557_vm9  ;;  %vm1624_vm7 = vweird.f32 %v1975_v34 }
0x1994   :  { %v1553_v33 = vsub.f32 1.0, %v1552_v32  ;;  %vm1625_vm11 = vmor %vm1623_vm10, %vm1624_vm7 }
0x1995   :  { %v1620_v38 = vsub.f32 1.0, %v1619_v36 }
0x1996   :  { %v1554_v35 = vmul.f32 %v1973_v31, %v1553_v33 }
0x1997   :  { %v1621_v42 = vmul.f32 %v1975_v34, %v1620_v38 }
0x1998   :  { %v1555_v37 = vadd.f32 %v1973_v31, %v1554_v35 }
0x1999   :  { %v1622_v47 = vadd.f32 %v1975_v34, %v1621_v42 }
0x199a   :  { %v1559_v41 = vsel %vm1558_vm5, %v1973_v31, %v1555_v37 }
0x199b   :  { %v1564_v45 = vsel %vm1561_vm6, %v1563_v43, %v1559_v41  ;;  %v1626_v50 = vsel %vm1625_vm11, %v1975_v34, %v1622_v47 }
0x199c   :  { %v1631_v52 = vsel %vm1628_vm12, %v1630_v51, %v1626_v50  ;;  %v1567_v55 = vmul.f32 %v1564_v45, %v2457_v9 }
0x199d   :  { %v1634_v58 = vmul.f32 %v1631_v52, %v2461_v13 }
0x19da   :  { %v1570_v44 = vpop.permute.xlu1 %1569 }
0x19db   :  { %v1572_v46 = vmul.f32 %v1570_v44, %v1564_v45 }
0x19dd   :  { %1574 = vrot.lane.b32.xlu0 %v1572_v46, %s1986_s22 }
0x19e2   :  { %v1637_v53 = vpop.permute.xlu2 %1636 }
0x19e3   :  { %v1639_v54 = vmul.f32 %v1637_v53, %v1631_v52 }
0x19e5   :  { %1641 = vrot.lane.b32.xlu1 %v1639_v54, %s1986_s22 }
0x1a4f   :  { %v1575_v56 = vpop.permute.xlu0 %1574 }
0x1a50   :  { %v1577_v57 = vadd.f32 %v1575_v56, %v1567_v55 }
0x1a52   :  { %1976 = vtanh.f32 %v1577_v57 }
0x1a57   :  { %v1642_v59 = vpop.permute.xlu1 %1641 }
0x1a58   :  { %v1977_v60 = vpop.eup %1976  ;;  %v1644_v61 = vadd.f32 %v1642_v59, %v1634_v58 }
0x1a59   :  { %1580 = vrot.lane.b32.xlu2 %v1977_v60, %s1987_s23 }
0x1a5a   :  { %1978 = vtanh.f32 %v1644_v61 }
0x1a60   :  { %v1979_v62 = vpop.eup %1978 }
0x1a61   :  { %1647 = vrot.lane.b32.xlu0 %v1979_v62, %s1987_s23 }
0x1a69   :  { %1658 = vrot.lane.b32.xlu0 %v1577_v57, %s1989_s0 }
0x1ab3   :  { %v1581_v63 = vpop.permute.xlu2 %1580 }
0x1ab4   :  { %v1583_v4 = vmul.f32 %v1581_v63, %v1564_v45 }
0x1ab6   :  { %1585 = vrot.lane.b32.xlu1 %v1583_v4, %s1988_s24 }
0x1abe   :  { %1664 = vrot.lane.b32.xlu1 %v1644_v61, %s1989_s0 }
0x1ad3   :  { %v1648_v5 = vpop.permute.xlu0 %1647 }
0x1ad4   :  { %v1650_v6 = vmul.f32 %v1648_v5, %v1631_v52 }
0x1ad6   :  { %1652 = vrot.lane.b32.xlu2 %v1650_v6, %s1988_s24 }
0x1adb   :  { %v1659_v7 = vpop.permute.xlu0 %1658 }
0x1adc   :  { %1661 = vst.msk [vmem:[%s2524_s7] sm:$0x3] %vm94_vm8, %v1659_v7 }
0x1b28   :  { %v1586_v8 = vpop.permute.xlu1 %1585 }
0x1b29   :  { %1779 = vst.msk [vmem:[%s2522_s4 + $0x16] sm:$0x3] %vm94_vm8, %v1586_v8 }
0x1b2a   :  { %1656 = vst.msk [vmem:[%s2525_s6] sm:$0x3] %vm94_vm8, %v1586_v8 }
0x1b30   :  { %v1665_v9 = vpop.permute.xlu1 %1664  ;;  %v1653_v10 = vpop.permute.xlu2 %1652 }
0x1b31   :  { %1667 = vst.msk [vmem:[%s2526_s9] sm:$0x3] %vm94_vm8, %v1665_v9 }
0x1b32   :  { %1655 = vst.msk [vmem:[%s2523_s5] sm:$0x3] %vm94_vm8, %v1653_v10 }
0x1b33   :  { %1662 = vst.msk [vmem:[%s2527_s8] sm:$0x3] %vm94_vm8, %v1653_v10 }

// kernel: _lambda_.3
= control target key start
LH: loop header
LB: loop body
LE: loop exit
PB: predicated region body
PF: predicated region fallthrough
CT: control target
= control target key end

     0   :  { %vm97_vm0 = vcmask 1045504   ;;  %v1674_v4 = vmov 0.0   ;;  %vm121_vm1 = vcmask 261120   ;;  %vm146_vm2 = vcmask 91136   ;;  %s1687_s29 = smov 12   ;;  %s1689_s20 = smov 32   ;;  %s2354_s5 = inlined_call_operand.vmem [shape: f32[32,12], index: 5, kind: input, shape index: {}]   ;;  %s2355_s3 = inlined_call_operand.vmem [shape: f32[6,18], index: 3, kind: input, shape index: {}]   ;;  %s2356_s8 = inlined_call_operand.vmem [shape: f32[1,32,128], index: 8, kind: input, shape index: {}]   ;;  %s2357_s4 = inlined_call_operand.vmem [shape: f32[1,18], index: 4, kind: input, shape index: {}]   ;;  %s2358_s0 = inlined_call_operand.vmem [shape: f32[1,2,32], index: 0, kind: input, shape index: {}]   ;;  %s2359_s6 = inlined_call_operand.vmem [shape: f32[32,6], index: 6, kind: input, shape index: {}]   ;;  %s2360_s2 = inlined_call_operand.vmem [shape: f32[12,2,32], index: 2, kind: input, shape index: {}]   ;;  %s2361_s9 = inlined_call_operand.vmem [shape: f32[1,32,128], index: 9, kind: input, shape index: {}]   ;;  %s2362_s7 = inlined_call_operand.vmem [shape: f32[6,128], index: 7, kind: input, shape index: {}]   ;;  %s2363_s10 = inlined_call_operand.vmem [shape: f32[1,1,128], index: 10, kind: input, shape index: {}]   ;;  %s2364_s1 = inlined_call_operand.vmem [shape: f32[1,2,32], index: 1, kind: input, shape index: {}]   ;;  %s2365_s11 = inlined_call_operand.vmem [shape: f32[32,6], index: 11, kind: input, shape index: {}]   ;;  %s2366_s12 = inlined_call_operand.vmem [shape: f32[1,6], index: 12, kind: input, shape index: {}]   ;;  %s2367_s13 = inlined_call_operand.vmem [shape: f32[5,2,6], index: 13, kind: output, shape index: {}]  }
   0x1   :  { %v1764_v0 = vld [vmem:[%s2354_s5 + $0x18] sm:$0xff]  ;;  %v1769_v1 = vld [vmem:[%s2354_s5 + $0x10] sm:$0xff]  ;;  %v1774_v2 = vld [vmem:[%s2355_s3] sm:$0x3f]  ;;  %v1675_v18 = vmov 4   ;;  %v1676_v19 = vmov 2  }
   0x2   :  { %137 = vmatpush.msra.mxu1 %v1764_v0  ;;  %1466 = vmatpush.msk.msra.mxu0 %vm97_vm0, %v1774_v2  ;;  %v1782_v3 = vld [vmem:[%s2354_s5 + $0x8] sm:$0xff]  ;;  %v1788_v5 = vld [vmem:[%s2354_s5] sm:$0xff]  ;;  %v1677_v20 = vmov 0   ;;  %v1678_v24 = vmov 3   ;;  %v1679_v25 = vmov 1   ;;  %v1680_v26 = vmov 6  }
   0x3   :  { %117 = vmatmul.f32.vlgmr.msra.gmra.mxu0 %v1674_v4  ;;  %v1794_v6 = vld [vmem:[%s2358_s0] sm:$0x3]  ;;  %1535 = vset.pattern.permute.xlu0 %v1675_v18  ;;  %v2370_v27 = vmov 5   ;;  %v1682_v28 = vmov 8   ;;  %v2368_v29 = vmov 7   ;;  %v1684_v30 = vmov 10  }
   0x4   :  { %138 = vmatpush.msra.mxu1 %v1769_v1  ;;  %v1802_v7 = vld [vmem:[%s2357_s4] ss:$0 sm:$0xff]  ;;  %1533 = vset.pattern.permute.xlu2 %v1676_v19  ;;  %v1685_v31 = vmov 9   ;;  %v2372_v32 = vmov 11   ;;  %v1828_v35 = vld [vmem:[%s2360_s2 + $0x2] sm:$0x3] }
   0x5   :  { %1531 = vset.pattern.permute.xlu1 %v1677_v20  ;;  %v1833_v36 = vld [vmem:[%s2359_s6 + $0x18] sm:$0xff]  ;;  %v1838_v37 = vld [vmem:[%s2359_s6 + $0x10] sm:$0xff]  ;;  %v1844_v38 = vld [vmem:[%s2360_s2] sm:$0x3]  ;;  %vm93_vm3 = vcmask 48128   ;;  %vm381_vm8 = vcmask 41984  }
   0x6   :  { %139 = vmatpush.msra.mxu1 %v1782_v3  ;;  %246 = vmatpush.msra.mxu2 %v1833_v36  ;;  %v1852_v43 = vld [vmem:[%s2360_s2 + $0x4] sm:$0x3]  ;;  %v1857_v45 = vld [vmem:[%s2359_s6 + $0x8] sm:$0xff]  ;;  %v1869_v48 = vld [vmem:[%s2360_s2 + $0x6] sm:$0x3] }
   0x7   :  { %v1864_v47 = vld [vmem:[%s2359_s6] sm:$0xff]  ;;  %v1878_v53 = vld [vmem:[%s2360_s2 + $0x8] sm:$0x3]  ;;  %v1883_v56 = vld [vmem:[%s2360_s2 + $0xa] sm:$0x3] }
   0x8   :  { %140 = vmatpush.msra.mxu1 %v1788_v5  ;;  %247 = vmatpush.msra.mxu2 %v1838_v37  ;;  %v1890_v61 = vld [vmem:[%s2360_s2 + $0xc] sm:$0x3]  ;;  %v1895_v62 = vld [vmem:[%s2360_s2 + $0xe] sm:$0x3] }
   0x9   :  { %1467 = vmatmul.msk.f32.vlgmr.msra.gmra.mxu1 %vm121_vm1, %v1794_v6 }
   0xa   :  { %248 = vmatpush.msra.mxu2 %v1857_v45 }
   0xc   :  { %249 = vmatpush.msra.mxu2 %v1864_v47 }
   0xe   :  { %1474 = vmatpush.msk.msrb.mxu2 %vm97_vm0, %v1774_v2 }
  0x80   :  { %v118_v8 = vpop.f32.mrf.mxu0 }
  0x81   :  { %v1805_v9 = vadd.f32 %v1802_v7, %v118_v8 }
  0x86   :  { %v142_v10 = vpop.f32.mrf.mxu1 }
  0x87   :  { %v145_v11 = vadd.f32 %v142_v10, %v1805_v9 }
  0x89   :  { %v147_v12 = vsel %vm146_vm2, %v145_v11, -inf }
  0x8a   :  { %148 = vmax.xlane.f32.xlu0 %v147_v12  ;;  %v1902_v12 = vld [vmem:[%s2360_s2 + $0x10] sm:$0x3] }
  0xfd   :  { %v149_v13 = vpop.xlane.xlu0 %148 }
  0xfe   :  { %v150_v14 = vsub.f32 %v145_v11, %v149_v13  ;;  %v1907_v13 = vld [vmem:[%s2360_s2 + $0x12] sm:$0x3] }
 0x100   :  { %v151_v15 = vmul.f32 1.442695, %v150_v14 }
 0x102   :  { %1595 = vpow2.f32 %v151_v15 }
 0x108   :  { %v1596_v16 = vpop.eup %1595 }
 0x109   :  { %v153_v17 = vsel %vm146_vm2, %v1596_v16, 0.0 }
 0x10a   :  { %154 = vadd.xlane.f32.xlu0 %v153_v17 }
 0x17d   :  { %v155_v21 = vpop.xlane.xlu0 %154 }
 0x17e   :  { %1597 = vrcp.f32 %v155_v21 }
 0x184   :  { %v1598_v22 = vpop.eup %1597 }
 0x185   :  { %v157_v23 = vmul.f32 %v1598_v22, %v1596_v16  ;;  %v1914_v22 = vld [vmem:[%s2360_s2 + $0x14] sm:$0x3] }
 0x187   :  { %184 = vperm.xlu0 %1535, %v157_v23   ;;  %172 = vperm.xlu2 %1533, %v157_v23  }
 0x188   :  { %160 = vperm.xlu1 %1531, %v157_v23  }
 0x18f   :  { %1534 = vset.pattern.permute.xlu2 %v1678_v24  ;;  %1543 = vset.pattern.permute.xlu0 %v1677_v20 }
 0x190   :  { %1532 = vset.pattern.permute.xlu1 %v1679_v25  ;;  %178 = vperm.xlu2 %1534, %v157_v23  }
 0x191   :  { %166 = vperm.xlu1 %1532, %v157_v23  }
 0x198   :  { %1537 = vset.pattern.permute.xlu2 %v1680_v26 }
 0x199   :  { %1536 = vset.pattern.permute.xlu1 %v2370_v27  ;;  %196 = vperm.xlu2 %1537, %v157_v23  }
 0x19a   :  { %190 = vperm.xlu1 %1536, %v157_v23  }
 0x1a1   :  { %1539 = vset.pattern.permute.xlu2 %v1682_v28 }
 0x1a2   :  { %1538 = vset.pattern.permute.xlu1 %v2368_v29  ;;  %208 = vperm.xlu2 %1539, %v157_v23  }
 0x1a3   :  { %202 = vperm.xlu1 %1538, %v157_v23  }
 0x1aa   :  { %1541 = vset.pattern.permute.xlu2 %v1684_v30 }
 0x1ab   :  { %1540 = vset.pattern.permute.xlu1 %v1685_v31  ;;  %220 = vperm.xlu2 %1541, %v157_v23  }
 0x1ac   :  { %214 = vperm.xlu1 %1540, %v157_v23  }
 0x1b3   :  { %1546 = vset.pattern.permute.xlu2 %v1678_v24 }
 0x1b4   :  { %1542 = vset.pattern.permute.xlu1 %v2372_v32 }
 0x1b5   :  { %226 = vperm.xlu1 %1542, %v157_v23  }
 0x1bd   :  { %1547 = vset.pattern.permute.xlu1 %v1675_v18 }
 0x1e1   :  { %v173_v34 = vpop.permute.xlu2 %172 }
 0x1e2   :  { %v175_v46 = vmul.f32 %v1852_v43, %v173_v34  ;;  %v1919_v34 = vld [vmem:[%s2360_s2 + $0x16] sm:$0x3] }
 0x1ea   :  { %v179_v41 = vpop.permute.xlu2 %178 }
 0x1eb   :  { %v181_v51 = vmul.f32 %v1869_v48, %v179_v41 }
 0x1f3   :  { %v197_v52 = vpop.permute.xlu2 %196 }
 0x1f4   :  { %v199_v8 = vmul.f32 %v1890_v61, %v197_v52  ;;  %v1944_v52 = vld [vmem:[%s2361_s9 + $0x8] sm:$0xff] }
 0x1f9   :  { %v185_v54 = vpop.permute.xlu0 %184 }
 0x1fa   :  { %v161_v33 = vpop.permute.xlu1 %160  ;;  %v187_v57 = vmul.f32 %v1878_v53, %v185_v54  ;;  %v1955_v54 = vld [vmem:[%s2361_s9] sm:$0xff] }
 0x1fb   :  { %v163_v42 = vmul.f32 %v161_v33, %v1844_v38 }
 0x1fc   :  { %v209_v4 = vpop.permute.xlu2 %208 }
 0x1fd   :  { %v211_v16 = vmul.f32 %v1902_v12, %v209_v4 }
 0x203   :  { %v167_v39 = vpop.permute.xlu1 %166 }
 0x204   :  { %v169_v40 = vmul.f32 %v1828_v35, %v167_v39 }
 0x205   :  { %v221_v23 = vpop.permute.xlu2 %220 }
 0x206   :  { %v170_v44 = vadd.f32 %v169_v40, %v163_v42  ;;  %v223_v39 = vmul.f32 %v1914_v22, %v221_v23 }
 0x208   :  { %v176_v49 = vadd.f32 %v175_v46, %v170_v44 }
 0x20a   :  { %v182_v55 = vadd.f32 %v181_v51, %v176_v49  ;;  %v1928_v49 = vld [vmem:[%s2361_s9 + $0x18] sm:$0xff]  ;;  %v1939_v51 = vld [vmem:[%s2362_s7] sm:$0x3f]  ;;  %s1688_s7 = smov 116  }
 0x20b   :  { %272 = vmatpush.msra.mxu3 %v1928_v49  ;;  %1470 = vmatpush.msk.msrb.mxu0 %vm97_vm0, %v1939_v51 }
 0x20c   :  { %v191_v50 = vpop.permute.xlu1 %190  ;;  %v188_v58 = vadd.f32 %v187_v57, %v182_v55 }
 0x20d   :  { %v193_v59 = vmul.f32 %v1883_v56, %v191_v50  ;;  %v1933_v50 = vld [vmem:[%s2361_s9 + $0x10] sm:$0xff]  ;;  %526 = vmatpush.msra.mxu0 %v1833_v36 }
 0x20e   :  { %273 = vmatpush.msra.mxu3 %v1933_v50 }
 0x20f   :  { %v194_v63 = vadd.f32 %v193_v59, %v188_v58  ;;  %527 = vmatpush.msra.mxu0 %v1838_v37 }
 0x210   :  { %274 = vmatpush.msra.mxu3 %v1944_v52 }
 0x211   :  { %v200_v11 = vadd.f32 %v199_v8, %v194_v63  ;;  %528 = vmatpush.msra.mxu0 %v1857_v45 }
 0x212   :  { %275 = vmatpush.msra.mxu3 %v1955_v54 }
 0x213   :  { %1469 = vmatmul.msk.f32.vlgmr.msra.gmra.mxu3 %vm121_vm1, %v1794_v6  ;;  %529 = vmatpush.msra.mxu0 %v1864_v47  ;;  %v89_v6 = vld [vmem:[%s2364_s1] sm:$0x3]  ;;  %s1690_s1 = smov 64  }
 0x214   :  { %418 = vmatpush.msrb.mxu3 %v1764_v0  ;;  %333 = vrot.lane.b32.xlu0 %v89_v6, %s1689_s20 }
 0x215   :  { %v203_v60 = vpop.permute.xlu1 %202 }
 0x216   :  { %v205_v10 = vmul.f32 %v1895_v62, %v203_v60  ;;  %419 = vmatpush.msrb.mxu3 %v1769_v1 }
 0x218   :  { %v206_v14 = vadd.f32 %v205_v10, %v200_v11  ;;  %420 = vmatpush.msrb.mxu3 %v1782_v3 }
 0x21a   :  { %v212_v21 = vadd.f32 %v211_v16, %v206_v14  ;;  %421 = vmatpush.msrb.mxu3 %v1788_v5 }
 0x21e   :  { %v215_v15 = vpop.permute.xlu1 %214 }
 0x21f   :  { %v217_v17 = vmul.f32 %v1907_v13, %v215_v15 }
 0x221   :  { %v218_v33 = vadd.f32 %v217_v17, %v212_v21 }
 0x223   :  { %v224_v41 = vadd.f32 %v223_v39, %v218_v33 }
 0x227   :  { %v227_v40 = vpop.permute.xlu1 %226 }
 0x228   :  { %v229_v42 = vmul.f32 %v1919_v34, %v227_v40 }
 0x22a   :  { %v230_v44 = vadd.f32 %v229_v42, %v224_v41 }
 0x22c   :  { %1468 = vmatmul.msk.f32.vlgmr.msra.gmra.mxu2 %vm121_vm1, %v230_v44 }
 0x22d   :  { %1479 = vmatpush.msk.msra.mxu2 %vm97_vm0, %v1939_v51 }
 0x296   :  { %v277_v60 = vpop.f32.mrf.mxu3 }
 0x2af   :  { %v251_v46 = vpop.f32.mrf.mxu2 }
 0x2b0   :  { %255 = vrot.lane.b32.xlu2 %v251_v46, %s1687_s29 }
 0x30a   :  { %v256_v55 = vpop.permute.xlu2 %255 }
 0x30b   :  { %v258_v57 = vadd.f32 %v256_v55, %v1805_v9  ;;  %v1980_v9 = vld [vmem:[%s2363_s10] ss:$0 sm:$0xff] }
 0x30d   :  { %v259_v58 = vmax.f32 %v258_v57, 0.0  ;;  %v334_v57 = vpop.permute.xlu0 %333 }
 0x30f   :  { %281 = vrot.lane.b32.xlu1 %v259_v58, %s1688_s7 }
 0x381   :  { %v282_v59 = vpop.permute.xlu1 %281 }
 0x382   :  { %1471 = vmatmul.msk.f32.vlgmr.msrb.gmra.mxu0 %vm93_vm3, %v282_v59 }
 0x383   :  { %1484 = vmatpush.msk.msrb.mxu0 %vm97_vm0, %v1774_v2 }
 0x3ff   :  { %v305_v63 = vpop.f32.mrf.mxu0 }
 0x400   :  { %v306_v4 = vadd.f32 %v305_v63, %v277_v60  ;;  %v1992_v63 = vld [vmem:[%s2365_s11 + $0x18] sm:$0xff] }
 0x401   :  { %373 = vmatpush.msrb.mxu1 %v1992_v63  ;;  %640 = vmatpush.msra.mxu3 %v1992_v63 }
 0x402   :  { %v311_v8 = vadd.f32 %v1980_v9, %v306_v4  ;;  %v1997_v4 = vld [vmem:[%s2365_s11 + $0x10] sm:$0xff] }
 0x403   :  { %374 = vmatpush.msrb.mxu1 %v1997_v4  ;;  %641 = vmatpush.msra.mxu3 %v1997_v4 }
 0x404   :  { %1599 = vtanh.f32 %v311_v8  ;;  %v1472_v11 = vmul.f32 -1.442695, %v311_v8  ;;  %v2004_v8 = vld [vmem:[%s2365_s11 + $0x8] sm:$0xff] }
 0x405   :  { %375 = vmatpush.msrb.mxu1 %v2004_v8  ;;  %642 = vmatpush.msra.mxu3 %v2004_v8 }
 0x406   :  { %1601 = vpow2.f32 %v1472_v11 }
 0x40a   :  { %v1600_v10 = vpop.eup %1599 }
 0x40b   :  { %338 = vrot.lane.b32.xlu2 %v1600_v10, %s1690_s1  ;;  %v2011_v10 = vld [vmem:[%s2365_s11] sm:$0xff] }
 0x40c   :  { %v1602_v14 = vpop.eup %1601  ;;  %376 = vmatpush.msrb.mxu1 %v2011_v10  ;;  %643 = vmatpush.msra.mxu3 %v2011_v10 }
 0x40d   :  { %v315_v15 = vadd.f32 1.0, %v1602_v14 }
 0x40e   :  { %552 = vmatpush.msra.mxu1 %v1928_v49 }
 0x40f   :  { %1603 = vrcp.f32 %v315_v15  ;;  %v327_v39 = vand.u32 2147483648, %v315_v15  ;;  %vm321_vm5 = vweird.f32 %v315_v15  ;;  %v325_v40 = vand.u32 2147483647, %v315_v15 }
 0x410   :  { %553 = vmatpush.msra.mxu1 %v1933_v50 }
 0x411   :  { %v328_v42 = vor.u32 1.1754944e-38, %v327_v39  ;;  %vm326_vm7 = vcmp.eq.f32.partialorder %v325_v40, 8.507059e+37 }
 0x412   :  { %554 = vmatpush.msra.mxu1 %v1944_v52 }
 0x414   :  { %555 = vmatpush.msra.mxu1 %v1955_v54 }
 0x415   :  { %v1604_v16 = vpop.eup %1603 }
 0x416   :  { %v317_v17 = vmul.f32 %v1604_v16, %v315_v15  ;;  %vm322_vm4 = vweird.f32 %v1604_v16 }
 0x417   :  { %vm323_vm6 = vmor %vm321_vm5, %vm322_vm4 }
 0x418   :  { %v318_v21 = vsub.f32 1.0, %v317_v17 }
 0x41a   :  { %v319_v23 = vmul.f32 %v1604_v16, %v318_v21 }
 0x41c   :  { %v320_v33 = vadd.f32 %v1604_v16, %v319_v23 }
 0x41e   :  { %v324_v41 = vsel %vm323_vm6, %v1604_v16, %v320_v33  ;;  %v2040_v16 = vld [vmem:[%s2366_s12] ss:$0 sm:$0xff] }
 0x41f   :  { %v329_v44 = vsel %vm326_vm7, %v328_v42, %v324_v41 }
 0x420   :  { %v336_v58 = vmul.f32 %v334_v57, %v329_v44 }
 0x465   :  { %v339_v46 = vpop.permute.xlu2 %338 }
 0x466   :  { %v341_v55 = vmul.f32 %v339_v46, %v329_v44 }
 0x468   :  { %343 = vrot.lane.b32.xlu1 %v341_v55, %s1689_s20 }
 0x4da   :  { %v344_v6 = vpop.permute.xlu1 %343 }
 0x4db   :  { %v1985_v59 = vadd.f32 %v344_v6, %v336_v58 }
 0x4dd   :  { %1605 = vtanh.f32 %v1985_v59 }
 0x4e3   :  { %v1606_v60 = vpop.eup %1605 }
 0x4e4   :  { %349 = vrot.lane.b32.xlu2 %v1606_v60, %s1690_s1 }
 0x53e   :  { %v350_v11 = vpop.permute.xlu2 %349 }
 0x53f   :  { %v352_v14 = vmul.f32 %v350_v11, %v329_v44 }
 0x541   :  { %357 = vrot.lane.b32.xlu0 %v352_v14, %s1689_s20 }
 0x5b3   :  { %v358_v15 = vpop.permute.xlu0 %357 }
 0x5b4   :  { %1473 = vmatmul.msk.f32.vlgmr.msrb.gmra.mxu1 %vm121_vm1, %v358_v15  ;;  %1476 = vmatmul.msk.f32.vlgmr.msrb.gmra.mxu3 %vm121_vm1, %v358_v15 }
 0x5b5   :  { %685 = vmatpush.msrb.mxu1 %v1764_v0  ;;  %819 = vmatpush.msrb.mxu3 %v1928_v49 }
 0x5b7   :  { %686 = vmatpush.msrb.mxu1 %v1769_v1  ;;  %820 = vmatpush.msrb.mxu3 %v1933_v50 }
 0x5b9   :  { %687 = vmatpush.msrb.mxu1 %v1782_v3  ;;  %821 = vmatpush.msrb.mxu3 %v1944_v52 }
 0x5bb   :  { %688 = vmatpush.msrb.mxu1 %v1788_v5  ;;  %822 = vmatpush.msrb.mxu3 %v1955_v54 }
 0x5bc   :  { %1478 = vmatmul.msk.f32.vlgmr.msra.gmra.mxu1 %vm121_vm1, %v358_v15 }
 0x5bd   :  { %907 = vmatpush.msra.mxu1 %v1992_v63 }
 0x5bf   :  { %908 = vmatpush.msra.mxu1 %v1997_v4 }
 0x5c1   :  { %909 = vmatpush.msra.mxu1 %v2004_v8 }
 0x5c3   :  { %910 = vmatpush.msra.mxu1 %v2011_v10 }
 0x631   :  { %v378_v17 = vpop.f32.mrf.mxu1 }
 0x632   :  { %v379_v21 = vadd.f32 %v2040_v16, %v378_v17 }
 0x634   :  { %382 = vst.msk [vmem:[%s2367_s13] sm:$0x3] %vm381_vm8, %v379_v21  ;;  %1475 = vmatmul.msk.f32.vlgmr.msrb.gmra.mxu2 %vm93_vm3, %v379_v21 }
 0x635   :  { %793 = vmatpush.msrb.mxu2 %v1833_v36 }
 0x637   :  { %794 = vmatpush.msrb.mxu2 %v1838_v37  ;;  %v423_v39 = vpop.f32.mrf.mxu3 }
 0x639   :  { %795 = vmatpush.msrb.mxu2 %v1857_v45 }
 0x63b   :  { %796 = vmatpush.msrb.mxu2 %v1864_v47 }
 0x6b7   :  { %v403_v23 = vpop.f32.mrf.mxu2 }
 0x6b8   :  { %v2053_v33 = vadd.f32 %v1802_v7, %v403_v23 }
 0x6ba   :  { %v426_v40 = vadd.f32 %v423_v39, %v2053_v33 }
 0x6bc   :  { %v427_v41 = vsel %vm146_vm2, %v426_v40, -inf }
 0x6bd   :  { %428 = vmax.xlane.f32.xlu1 %v427_v41 }
 0x730   :  { %v429_v42 = vpop.xlane.xlu1 %428 }
 0x731   :  { %v430_v44 = vsub.f32 %v426_v40, %v429_v42 }
 0x733   :  { %v431_v46 = vmul.f32 1.442695, %v430_v44 }
 0x735   :  { %1607 = vpow2.f32 %v431_v46 }
 0x73b   :  { %v1608_v55 = vpop.eup %1607 }
 0x73c   :  { %v433_v57 = vsel %vm146_vm2, %v1608_v55, 0.0 }
 0x73d   :  { %434 = vadd.xlane.f32.xlu2 %v433_v57 }
 0x7b0   :  { %v435_v58 = vpop.xlane.xlu2 %434 }
 0x7b1   :  { %1609 = vrcp.f32 %v435_v58 }
 0x7b7   :  { %v1610_v6 = vpop.eup %1609 }
 0x7b8   :  { %v437_v60 = vmul.f32 %v1610_v6, %v1608_v55 }
 0x7ba   :  { %464 = vperm.xlu1 %1547, %v437_v60   ;;  %458 = vperm.xlu2 %1546, %v437_v60  }
 0x7bb   :  { %440 = vperm.xlu0 %1543, %v437_v60  }
 0x7c2   :  { %1550 = vset.pattern.permute.xlu1 %v2368_v29  ;;  %1549 = vset.pattern.permute.xlu2 %v1680_v26 }
 0x7c3   :  { %1544 = vset.pattern.permute.xlu0 %v1679_v25  ;;  %482 = vperm.xlu1 %1550, %v437_v60  }
 0x7c4   :  { %476 = vperm.xlu2 %1549, %v437_v60   ;;  %446 = vperm.xlu0 %1544, %v437_v60  }
 0x7cb   :  { %1553 = vset.pattern.permute.xlu1 %v1684_v30 }
 0x7cc   :  { %1552 = vset.pattern.permute.xlu2 %v1685_v31  ;;  %1545 = vset.pattern.permute.xlu0 %v1676_v19 }
 0x7cd   :  { %500 = vperm.xlu1 %1553, %v437_v60   ;;  %494 = vperm.xlu2 %1552, %v437_v60  }
 0x7ce   :  { %452 = vperm.xlu0 %1545, %v437_v60  }
 0x7d5   :  { %1554 = vset.pattern.permute.xlu2 %v2372_v32  ;;  %1560 = vset.pattern.permute.xlu1 %v2370_v27 }
 0x7d6   :  { %1548 = vset.pattern.permute.xlu0 %v2370_v27  ;;  %506 = vperm.xlu2 %1554, %v437_v60  }
 0x7d7   :  { %470 = vperm.xlu0 %1548, %v437_v60  }
 0x7de   :  { %1555 = vset.pattern.permute.xlu2 %v1677_v20 }
 0x7df   :  { %1551 = vset.pattern.permute.xlu0 %v1682_v28 }
 0x7e0   :  { %488 = vperm.xlu0 %1551, %v437_v60  }
 0x7e8   :  { %1562 = vset.pattern.permute.xlu0 %v2368_v29 }
 0x814   :  { %v459_v15 = vpop.permute.xlu2 %458 }
 0x815   :  { %v461_v46 = vmul.f32 %v1869_v48, %v459_v15 }
 0x81e   :  { %v477_v42 = vpop.permute.xlu2 %476 }
 0x82c   :  { %v465_v23 = vpop.permute.xlu1 %464 }
 0x82d   :  { %v441_v11 = vpop.permute.xlu0 %440  ;;  %v467_v57 = vmul.f32 %v1878_v53, %v465_v23 }
 0x82e   :  { %v443_v21 = vmul.f32 %v441_v11, %v1844_v38  ;;  %v479_v11 = vmul.f32 %v1890_v61, %v477_v42 }
 0x835   :  { %v483_v6 = vpop.permute.xlu1 %482 }
 0x836   :  { %v447_v14 = vpop.permute.xlu0 %446 }
 0x837   :  { %v449_v17 = vmul.f32 %v1828_v35, %v447_v14  ;;  %v495_v14 = vpop.permute.xlu2 %494 }
 0x839   :  { %v450_v40 = vadd.f32 %v449_v17, %v443_v21  ;;  %v485_v17 = vmul.f32 %v1895_v62, %v483_v6 }
 0x83f   :  { %v501_v15 = vpop.permute.xlu1 %500 }
 0x840   :  { %v453_v39 = vpop.permute.xlu0 %452 }
 0x841   :  { %v455_v41 = vmul.f32 %v1852_v43, %v453_v39 }
 0x843   :  { %v456_v44 = vadd.f32 %v455_v41, %v450_v40  ;;  %v497_v41 = vmul.f32 %v1907_v13, %v495_v14  ;;  %v557_v14 = vpop.f32.mrf.mxu1 }
 0x845   :  { %v462_v55 = vadd.f32 %v461_v46, %v456_v44  ;;  %v507_v44 = vpop.permute.xlu2 %506  ;;  %v503_v46 = vmul.f32 %v1914_v22, %v501_v15 }
 0x847   :  { %v468_v60 = vadd.f32 %v467_v57, %v462_v55  ;;  %v509_v57 = vmul.f32 %v1919_v34, %v507_v44 }
 0x849   :  { %v471_v58 = vpop.permute.xlu0 %470 }
 0x84a   :  { %v473_v29 = vmul.f32 %v1883_v56, %v471_v58 }
 0x84c   :  { %v474_v27 = vadd.f32 %v473_v29, %v468_v60 }
 0x84e   :  { %v480_v32 = vadd.f32 %v479_v11, %v474_v27 }
 0x850   :  { %v486_v39 = vadd.f32 %v485_v17, %v480_v32 }
 0x852   :  { %v489_v21 = vpop.permute.xlu0 %488 }
 0x853   :  { %v491_v40 = vmul.f32 %v1902_v12, %v489_v21 }
 0x855   :  { %v492_v23 = vadd.f32 %v491_v40, %v486_v39 }
 0x857   :  { %v498_v55 = vadd.f32 %v497_v41, %v492_v23 }
 0x859   :  { %v504_v29 = vadd.f32 %v503_v46, %v498_v55 }
 0x85b   :  { %v510_v58 = vadd.f32 %v509_v57, %v504_v29 }
 0x85d   :  { %1477 = vmatmul.msk.f32.vlgmr.msra.gmra.mxu0 %vm121_vm1, %v510_v58 }
 0x85e   :  { %1489 = vmatpush.msk.msra.mxu0 %vm97_vm0, %v1939_v51 }
 0x8da   :  { %v531_v27 = vpop.f32.mrf.mxu0 }
 0x8db   :  { %535 = vrot.lane.b32.xlu1 %v531_v27, %s1687_s29 }
 0x94d   :  { %v536_v32 = vpop.permute.xlu1 %535 }
 0x94e   :  { %v538_v42 = vadd.f32 %v536_v32, %v2053_v33 }
 0x950   :  { %v539_v6 = vmax.f32 %v538_v42, 0.0 }
 0x952   :  { %561 = vrot.lane.b32.xlu0 %v539_v6, %s1688_s7 }
 0x9c4   :  { %v562_v60 = vpop.permute.xlu0 %561 }
 0x9c5   :  { %1480 = vmatmul.msk.f32.vlgmr.msra.gmra.mxu2 %vm93_vm3, %v562_v60 }
 0x9c6   :  { %1494 = vmatpush.msk.msra.mxu2 %vm97_vm0, %v1774_v2 }
 0xa48   :  { %v582_v11 = vpop.f32.mrf.mxu2 }
 0xa49   :  { %v583_v17 = vadd.f32 %v582_v11, %v557_v14 }
 0xa4b   :  { %v585_v21 = vadd.f32 %v1980_v9, %v583_v17 }
 0xa4d   :  { %1611 = vtanh.f32 %v585_v21  ;;  %v1481_v40 = vmul.f32 -1.442695, %v585_v21 }
 0xa4f   :  { %1613 = vpow2.f32 %v1481_v40 }
 0xa53   :  { %v1612_v39 = vpop.eup %1611 }
 0xa54   :  { %608 = vrot.lane.b32.xlu2 %v1612_v39, %s1690_s1 }
 0xa55   :  { %v1614_v33 = vpop.eup %1613 }
 0xa56   :  { %v589_v15 = vadd.f32 1.0, %v1614_v33 }
 0xa58   :  { %1615 = vrcp.f32 %v589_v15  ;;  %v601_v57 = vand.u32 2147483648, %v589_v15  ;;  %vm595_vm10 = vweird.f32 %v589_v15  ;;  %v599_v29 = vand.u32 2147483647, %v589_v15 }
 0xa5a   :  { %v602_v27 = vor.u32 1.1754944e-38, %v601_v57  ;;  %vm600_vm12 = vcmp.eq.f32.partialorder %v599_v29, 8.507059e+37 }
 0xa5e   :  { %v1616_v41 = vpop.eup %1615 }
 0xa5f   :  { %v591_v23 = vmul.f32 %v1616_v41, %v589_v15  ;;  %vm596_vm9 = vweird.f32 %v1616_v41 }
 0xa60   :  { %vm597_vm11 = vmor %vm595_vm10, %vm596_vm9 }
 0xa61   :  { %v592_v44 = vsub.f32 1.0, %v591_v23 }
 0xa63   :  { %v593_v46 = vmul.f32 %v1616_v41, %v592_v44 }
 0xa65   :  { %v594_v55 = vadd.f32 %v1616_v41, %v593_v46 }
 0xa67   :  { %v598_v58 = vsel %vm597_vm11, %v1616_v41, %v594_v55 }
 0xa68   :  { %v603_v42 = vsel %vm600_vm12, %v602_v27, %v598_v58  ;;  %v2375_v27 = vmov 5  }
 0xa69   :  { %v606_v60 = vmul.f32 %v603_v42, %v1985_v59 }
 0xaae   :  { %v609_v32 = vpop.permute.xlu2 %608 }
 0xaaf   :  { %v611_v6 = vmul.f32 %v609_v32, %v603_v42 }
 0xab1   :  { %613 = vrot.lane.b32.xlu1 %v611_v6, %s1689_s20 }
 0xb23   :  { %v614_v14 = vpop.permute.xlu1 %613 }
 0xb24   :  { %v2095_v11 = vadd.f32 %v614_v14, %v606_v60 }
 0xb26   :  { %1617 = vtanh.f32 %v2095_v11 }
 0xb2c   :  { %v1618_v17 = vpop.eup %1617 }
 0xb2d   :  { %619 = vrot.lane.b32.xlu0 %v1618_v17, %s1690_s1 }
 0xb9f   :  { %v620_v21 = vpop.permute.xlu0 %619 }
 0xba0   :  { %v622_v39 = vmul.f32 %v620_v21, %v603_v42 }
 0xba2   :  { %624 = vrot.lane.b32.xlu2 %v622_v39, %s1689_s20 }
 0xbfc   :  { %v625_v40 = vpop.permute.xlu2 %624 }
 0xbfd   :  { %1482 = vmatmul.msk.f32.vlgmr.msra.gmra.mxu3 %vm121_vm1, %v625_v40  ;;  %1486 = vmatmul.msk.f32.vlgmr.msrb.gmra.mxu1 %vm121_vm1, %v625_v40 }
 0xbfe   :  { %952 = vmatpush.msra.mxu3 %v1764_v0  ;;  %1086 = vmatpush.msrb.mxu1 %v1928_v49 }
 0xc00   :  { %953 = vmatpush.msra.mxu3 %v1769_v1  ;;  %1087 = vmatpush.msrb.mxu1 %v1933_v50 }
 0xc02   :  { %954 = vmatpush.msra.mxu3 %v1782_v3  ;;  %1088 = vmatpush.msrb.mxu1 %v1944_v52 }
 0xc04   :  { %955 = vmatpush.msra.mxu3 %v1788_v5  ;;  %1089 = vmatpush.msrb.mxu1 %v1955_v54 }
 0xc05   :  { %1488 = vmatmul.msk.f32.vlgmr.msrb.gmra.mxu3 %vm121_vm1, %v625_v40 }
 0xc06   :  { %1174 = vmatpush.msrb.mxu3 %v1992_v63 }
 0xc08   :  { %1175 = vmatpush.msrb.mxu3 %v1997_v4 }
 0xc0a   :  { %1176 = vmatpush.msrb.mxu3 %v2004_v8 }
 0xc0c   :  { %1177 = vmatpush.msrb.mxu3 %v2011_v10 }
 0xc7a   :  { %v690_v59 = vpop.f32.mrf.mxu1 }
 0xc80   :  { %v645_v0 = vpop.f32.mrf.mxu3 }
 0xc81   :  { %v646_v1 = vadd.f32 %v2040_v16, %v645_v0 }
 0xc83   :  { %1483 = vst.msk [vmem:[%s2367_s13 + $0x2] sm:$0x3] %vm381_vm8, %v646_v1  ;;  %1485 = vmatmul.msk.f32.vlgmr.msrb.gmra.mxu0 %vm93_vm3, %v646_v1 }
 0xc84   :  { %1060 = vmatpush.msrb.mxu0 %v1833_v36 }
 0xc86   :  { %1061 = vmatpush.msrb.mxu0 %v1838_v37 }
 0xc88   :  { %1062 = vmatpush.msrb.mxu0 %v1857_v45 }
 0xc8a   :  { %1063 = vmatpush.msrb.mxu0 %v1864_v47 }
 0xd00   :  { %v670_v3 = vpop.f32.mrf.mxu0 }
 0xd01   :  { %v2126_v5 = vadd.f32 %v1802_v7, %v670_v3  ;;  %v2374_v7 = vmov 11  }
 0xd03   :  { %v693_v33 = vadd.f32 %v690_v59, %v2126_v5 }
 0xd05   :  { %v694_v15 = vsel %vm146_vm2, %v693_v33, -inf }
 0xd06   :  { %695 = vmax.xlane.f32.xlu1 %v694_v15 }
 0xd79   :  { %v696_v41 = vpop.xlane.xlu1 %695 }
 0xd7a   :  { %v697_v23 = vsub.f32 %v693_v33, %v696_v41 }
 0xd7c   :  { %v698_v44 = vmul.f32 1.442695, %v697_v23 }
 0xd7e   :  { %1619 = vpow2.f32 %v698_v44 }
 0xd84   :  { %v1620_v46 = vpop.eup %1619 }
 0xd85   :  { %v700_v55 = vsel %vm146_vm2, %v1620_v46, 0.0 }
 0xd86   :  { %701 = vadd.xlane.f32.xlu0 %v700_v55 }
 0xdf9   :  { %v702_v57 = vpop.xlane.xlu0 %701 }
 0xdfa   :  { %1621 = vrcp.f32 %v702_v57 }
 0xe00   :  { %v1622_v29 = vpop.eup %1621 }
 0xe01   :  { %v704_v58 = vmul.f32 %v1622_v29, %v1620_v46 }
 0xe03   :  { %749 = vperm.xlu0 %1562, %v704_v58   ;;  %737 = vperm.xlu1 %1560, %v704_v58  }
 0xe04   :  { %707 = vperm.xlu2 %1555, %v704_v58  }
 0xe0b   :  { %1565 = vset.pattern.permute.xlu1 %v1684_v30  ;;  %1573 = vset.pattern.permute.xlu0 %v1680_v26 }
 0xe0c   :  { %1556 = vset.pattern.permute.xlu2 %v1679_v25  ;;  %767 = vperm.xlu1 %1565, %v704_v58  }
 0xe0d   :  { %713 = vperm.xlu2 %1556, %v704_v58  }
 0xe14   :  { %1567 = vset.pattern.permute.xlu1 %v1677_v20 }
 0xe15   :  { %1557 = vset.pattern.permute.xlu2 %v1676_v19 }
 0xe16   :  { %719 = vperm.xlu2 %1557, %v704_v58  }
 0xe1e   :  { %1558 = vset.pattern.permute.xlu2 %v1678_v24 }
 0xe1f   :  { %725 = vperm.xlu2 %1558, %v704_v58  }
 0xe27   :  { %1559 = vset.pattern.permute.xlu2 %v1675_v18 }
 0xe28   :  { %731 = vperm.xlu2 %1559, %v704_v58  }
 0xe30   :  { %1561 = vset.pattern.permute.xlu2 %v1680_v26 }
 0xe31   :  { %743 = vperm.xlu2 %1561, %v704_v58  }
 0xe39   :  { %1563 = vset.pattern.permute.xlu2 %v1682_v28 }
 0xe3a   :  { %755 = vperm.xlu2 %1563, %v704_v58  }
 0xe42   :  { %1564 = vset.pattern.permute.xlu2 %v1685_v31 }
 0xe43   :  { %761 = vperm.xlu2 %1564, %v704_v58  }
 0xe4b   :  { %1566 = vset.pattern.permute.xlu2 %v2374_v7 }
 0xe4c   :  { %773 = vperm.xlu2 %1566, %v704_v58  }
 0xe54   :  { %1572 = vset.pattern.permute.xlu2 %v2375_v27 }
 0xe5e   :  { %v708_v32 = vpop.permute.xlu2 %707 }
 0xe5f   :  { %v710_v39 = vmul.f32 %v708_v32, %v1844_v38 }
 0xe67   :  { %v714_v42 = vpop.permute.xlu2 %713 }
 0xe68   :  { %v716_v17 = vmul.f32 %v1828_v35, %v714_v42 }
 0xe6a   :  { %v717_v0 = vadd.f32 %v716_v17, %v710_v39 }
 0xe70   :  { %v720_v6 = vpop.permute.xlu2 %719 }
 0xe71   :  { %v722_v40 = vmul.f32 %v1852_v43, %v720_v6 }
 0xe73   :  { %v723_v3 = vadd.f32 %v722_v40, %v717_v0 }
 0xe75   :  { %v738_v15 = vpop.permute.xlu1 %737  ;;  %v750_v55 = vpop.permute.xlu0 %749 }
 0xe76   :  { %v740_v44 = vmul.f32 %v1883_v56, %v738_v15  ;;  %v752_v38 = vmul.f32 %v1895_v62, %v750_v55 }
 0xe79   :  { %v726_v60 = vpop.permute.xlu2 %725 }
 0xe7a   :  { %v728_v1 = vmul.f32 %v1869_v48, %v726_v60 }
 0xe7c   :  { %v729_v33 = vadd.f32 %v728_v1, %v723_v3 }
 0xe7e   :  { %v768_v42 = vpop.permute.xlu1 %767 }
 0xe7f   :  { %v770_v60 = vmul.f32 %v1914_v22, %v768_v42 }
 0xe82   :  { %v732_v14 = vpop.permute.xlu2 %731 }
 0xe83   :  { %v734_v59 = vmul.f32 %v1878_v53, %v732_v14 }
 0xe85   :  { %v735_v23 = vadd.f32 %v734_v59, %v729_v33  ;;  %v824_v59 = vpop.f32.mrf.mxu3 }
 0xe87   :  { %v741_v35 = vadd.f32 %v740_v44, %v735_v23 }
 0xe8b   :  { %v744_v21 = vpop.permute.xlu2 %743 }
 0xe8c   :  { %v746_v46 = vmul.f32 %v1890_v61, %v744_v21 }
 0xe8e   :  { %v747_v57 = vadd.f32 %v746_v46, %v741_v35 }
 0xe90   :  { %v753_v48 = vadd.f32 %v752_v38, %v747_v57 }
 0xe94   :  { %v756_v41 = vpop.permute.xlu2 %755 }
 0xe95   :  { %v758_v43 = vmul.f32 %v1902_v12, %v756_v41 }
 0xe97   :  { %v759_v32 = vadd.f32 %v758_v43, %v753_v48 }
 0xe9d   :  { %v762_v29 = vpop.permute.xlu2 %761 }
 0xe9e   :  { %v764_v58 = vmul.f32 %v1907_v13, %v762_v29 }
 0xea0   :  { %v765_v6 = vadd.f32 %v764_v58, %v759_v32 }
 0xea2   :  { %v771_v56 = vadd.f32 %v770_v60, %v765_v6 }
 0xea6   :  { %v774_v14 = vpop.permute.xlu2 %773 }
 0xea7   :  { %v776_v17 = vmul.f32 %v1919_v34, %v774_v14 }
 0xea9   :  { %v777_v21 = vadd.f32 %v776_v17, %v771_v56 }
 0xeab   :  { %1487 = vmatmul.msk.f32.vlgmr.msrb.gmra.mxu2 %vm121_vm1, %v777_v21 }
 0xeac   :  { %1499 = vmatpush.msk.msrb.mxu2 %vm97_vm0, %v1939_v51 }
 0xf2e   :  { %v798_v39 = vpop.f32.mrf.mxu2 }
 0xf2f   :  { %802 = vrot.lane.b32.xlu1 %v798_v39, %s1687_s29 }
 0xfa1   :  { %v803_v40 = vpop.permute.xlu1 %802 }
 0xfa2   :  { %v805_v0 = vadd.f32 %v803_v40, %v2126_v5 }
 0xfa4   :  { %v806_v1 = vmax.f32 %v805_v0, 0.0  ;;  %v1656_v0 = vld [vmem:[%s2354_s5 + $0x10] sm:$0xff] }
 0xfa6   :  { %828 = vrot.lane.b32.xlu2 %v806_v1, %s1688_s7  ;;  %v1657_v1 = vld [vmem:[%s2354_s5 + $0x8] sm:$0xff] }
0x1000   :  { %v829_v3 = vpop.permute.xlu2 %828 }
0x1001   :  { %1490 = vmatmul.msk.f32.vlgmr.msra.gmra.mxu0 %vm93_vm3, %v829_v3  ;;  %v1658_v3 = vld [vmem:[%s2354_s5] sm:$0xff] }
0x1002   :  { %1504 = vmatpush.msk.msra.mxu0 %vm97_vm0, %v1774_v2 }
0x107e   :  { %v849_v33 = vpop.f32.mrf.mxu0 }
0x107f   :  { %v850_v15 = vadd.f32 %v849_v33, %v824_v59 }
0x1081   :  { %v852_v41 = vadd.f32 %v1980_v9, %v850_v15 }
0x1083   :  { %1623 = vtanh.f32 %v852_v41  ;;  %v1491_v44 = vmul.f32 -1.442695, %v852_v41 }
0x1085   :  { %1625 = vpow2.f32 %v1491_v44 }
0x1089   :  { %v1624_v23 = vpop.eup %1623 }
0x108a   :  { %875 = vrot.lane.b32.xlu1 %v1624_v23, %s1690_s1  ;;  %v2376_v23 = vmov 7  }
0x108b   :  { %v1626_v5 = vpop.eup %1625 }
0x108c   :  { %v856_v46 = vadd.f32 1.0, %v1626_v5 }
0x108e   :  { %1627 = vrcp.f32 %v856_v46  ;;  %v868_v2 = vand.u32 2147483648, %v856_v46  ;;  %vm862_vm14 = vweird.f32 %v856_v46  ;;  %v866_v29 = vand.u32 2147483647, %v856_v46 }
0x1090   :  { %v869_v58 = vor.u32 1.1754944e-38, %v868_v2  ;;  %vm867_vm4 = vcmp.eq.f32.partialorder %v866_v29, 8.507059e+37 }
0x1094   :  { %v1628_v35 = vpop.eup %1627 }
0x1095   :  { %v858_v55 = vmul.f32 %v1628_v35, %v856_v46  ;;  %vm863_vm13 = vweird.f32 %v1628_v35 }
0x1096   :  { %vm864_vm15 = vmor %vm862_vm14, %vm863_vm13 }
0x1097   :  { %v859_v57 = vsub.f32 1.0, %v858_v55 }
0x1099   :  { %v860_v38 = vmul.f32 %v1628_v35, %v859_v57 }
0x109b   :  { %v861_v43 = vadd.f32 %v1628_v35, %v860_v38  ;;  %v2238_v38 = vld [vmem:[%s2360_s2] sm:$0x3] }
0x109d   :  { %v865_v48 = vsel %vm864_vm15, %v1628_v35, %v861_v43  ;;  %v2232_v35 = vld [vmem:[%s2360_s2 + $0x2] sm:$0x3]  ;;  %v2244_v43 = vld [vmem:[%s2360_s2 + $0x4] sm:$0x3] }
0x109e   :  { %v870_v42 = vsel %vm867_vm4, %v869_v58, %v865_v48  ;;  %v2250_v48 = vld [vmem:[%s2360_s2 + $0x6] sm:$0x3] }
0x109f   :  { %v873_v60 = vmul.f32 %v870_v42, %v2095_v11  ;;  %v1655_v11 = vld [vmem:[%s2354_s5 + $0x18] sm:$0xff] }
0x10fc   :  { %v876_v32 = vpop.permute.xlu1 %875 }
0x10fd   :  { %v878_v6 = vmul.f32 %v876_v32, %v870_v42 }
0x10ff   :  { %880 = vrot.lane.b32.xlu2 %v878_v6, %s1689_s20 }
0x1159   :  { %v881_v14 = vpop.permute.xlu2 %880 }
0x115a   :  { %v2168_v56 = vadd.f32 %v881_v14, %v873_v60 }
0x115c   :  { %1629 = vtanh.f32 %v2168_v56 }
0x1162   :  { %v1630_v17 = vpop.eup %1629 }
0x1163   :  { %886 = vrot.lane.b32.xlu0 %v1630_v17, %s1690_s1 }
0x11d5   :  { %v887_v21 = vpop.permute.xlu0 %886 }
0x11d6   :  { %v889_v39 = vmul.f32 %v887_v21, %v870_v42  ;;  %v2257_v21 = vld [vmem:[%s2360_s2 + $0xa] sm:$0x3] }
0x11d8   :  { %891 = vrot.lane.b32.xlu1 %v889_v39, %s1689_s20 }
0x124a   :  { %v892_v40 = vpop.permute.xlu1 %891 }
0x124b   :  { %1492 = vmatmul.msk.f32.vlgmr.msra.gmra.mxu1 %vm121_vm1, %v892_v40  ;;  %1496 = vmatmul.msk.f32.vlgmr.msra.gmra.mxu3 %vm121_vm1, %v892_v40 }
0x124c   :  { %1219 = vmatpush.msra.mxu1 %v1655_v11  ;;  %1353 = vmatpush.msra.mxu3 %v1928_v49 }
0x124e   :  { %1220 = vmatpush.msra.mxu1 %v1656_v0  ;;  %1354 = vmatpush.msra.mxu3 %v1933_v50 }
0x1250   :  { %1221 = vmatpush.msra.mxu1 %v1657_v1  ;;  %1355 = vmatpush.msra.mxu3 %v1944_v52 }
0x1252   :  { %1222 = vmatpush.msra.mxu1 %v1658_v3  ;;  %1356 = vmatpush.msra.mxu3 %v1955_v54  ;;  %v2209_v54 = vld [vmem:[%s2357_s4] ss:$0 sm:$0xff] }
0x1253   :  { %1498 = vmatmul.msk.f32.vlgmr.msrb.gmra.mxu1 %vm121_vm1, %v892_v40 }
0x1254   :  { %1441 = vmatpush.msrb.mxu1 %v1992_v63 }
0x1256   :  { %1442 = vmatpush.msrb.mxu1 %v1997_v4 }
0x1258   :  { %1443 = vmatpush.msrb.mxu1 %v2004_v8 }
0x125a   :  { %1444 = vmatpush.msrb.mxu1 %v2011_v10 }
0x12c8   :  { %v912_v49 = vpop.f32.mrf.mxu1 }
0x12c9   :  { %v913_v50 = vadd.f32 %v2040_v16, %v912_v49 }
0x12cb   :  { %1493 = vst.msk [vmem:[%s2367_s13 + $0x4] sm:$0x3] %vm381_vm8, %v913_v50  ;;  %1495 = vmatmul.msk.f32.vlgmr.msra.gmra.mxu2 %vm93_vm3, %v913_v50 }
0x12cc   :  { %1327 = vmatpush.msra.mxu2 %v1833_v36 }
0x12ce   :  { %1328 = vmatpush.msra.mxu2 %v1838_v37  ;;  %v957_v4 = vpop.f32.mrf.mxu3 }
0x12d0   :  { %1329 = vmatpush.msra.mxu2 %v1857_v45 }
0x12d2   :  { %1330 = vmatpush.msra.mxu2 %v1864_v47 }
0x134e   :  { %v937_v52 = vpop.f32.mrf.mxu2 }
0x134f   :  { %v2212_v63 = vadd.f32 %v2209_v54, %v937_v52 }
0x1351   :  { %v960_v8 = vadd.f32 %v957_v4, %v2212_v63 }
0x1353   :  { %v961_v36 = vsel %vm146_vm2, %v960_v8, -inf }
0x1354   :  { %962 = vmax.xlane.f32.xlu2 %v961_v36 }
0x13c7   :  { %v963_v37 = vpop.xlane.xlu2 %962 }
0x13c8   :  { %v964_v10 = vsub.f32 %v960_v8, %v963_v37 }
0x13ca   :  { %v965_v45 = vmul.f32 1.442695, %v964_v10 }
0x13cc   :  { %1631 = vpow2.f32 %v965_v45 }
0x13d2   :  { %v1632_v47 = vpop.eup %1631 }
0x13d3   :  { %v967_v59 = vsel %vm146_vm2, %v1632_v47, 0.0 }
0x13d4   :  { %968 = vadd.xlane.f32.xlu0 %v967_v59 }
0x1447   :  { %v969_v33 = vpop.xlane.xlu0 %968 }
0x1448   :  { %1633 = vrcp.f32 %v969_v33  ;;  %v1091_v33 = vpop.f32.mrf.mxu1 }
0x144e   :  { %v1634_v15 = vpop.eup %1633 }
0x144f   :  { %v971_v41 = vmul.f32 %v1634_v15, %v1632_v47 }
0x1451   :  { %1010 = vperm.xlu0 %1573, %v971_v41   ;;  %1004 = vperm.xlu2 %1572, %v971_v41  }
0x1452   :  { %974 = vperm.xlu1 %1567, %v971_v41  }
0x1459   :  { %1577 = vset.pattern.permute.xlu2 %v1684_v30  ;;  %1584 = vset.pattern.permute.xlu0 %v2375_v27 }
0x145a   :  { %1568 = vset.pattern.permute.xlu1 %v1679_v25  ;;  %1034 = vperm.xlu2 %1577, %v971_v41  }
0x145b   :  { %980 = vperm.xlu1 %1568, %v971_v41  }
0x1462   :  { %1579 = vset.pattern.permute.xlu2 %v1677_v20 }
0x1463   :  { %1569 = vset.pattern.permute.xlu1 %v1676_v19 }
0x1464   :  { %986 = vperm.xlu1 %1569, %v971_v41  }
0x146c   :  { %1570 = vset.pattern.permute.xlu1 %v1678_v24 }
0x146d   :  { %992 = vperm.xlu1 %1570, %v971_v41  }
0x1475   :  { %1571 = vset.pattern.permute.xlu1 %v1675_v18 }
0x1476   :  { %998 = vperm.xlu1 %1571, %v971_v41  }
0x147e   :  { %1574 = vset.pattern.permute.xlu1 %v2376_v23 }
0x147f   :  { %1016 = vperm.xlu1 %1574, %v971_v41  }
0x1487   :  { %1575 = vset.pattern.permute.xlu1 %v1682_v28 }
0x1488   :  { %1022 = vperm.xlu1 %1575, %v971_v41  }
0x1490   :  { %1576 = vset.pattern.permute.xlu1 %v1685_v31 }
0x1491   :  { %1028 = vperm.xlu1 %1576, %v971_v41  }
0x1499   :  { %1578 = vset.pattern.permute.xlu1 %v2374_v7 }
0x149a   :  { %1040 = vperm.xlu1 %1578, %v971_v41  }
0x14a2   :  { %1585 = vset.pattern.permute.xlu1 %v1680_v26 }
0x14ab   :  { %v1005_v60 = vpop.permute.xlu2 %1004 }
0x14ac   :  { %v1007_v39 = vmul.f32 %v2257_v21, %v1005_v60 }
0x14b4   :  { %v1035_v8 = vpop.permute.xlu2 %1034 }
0x14b5   :  { %v1037_v37 = vmul.f32 %v1914_v22, %v1035_v8 }
0x14c3   :  { %v1011_v40 = vpop.permute.xlu0 %1010 }
0x14c4   :  { %v975_v20 = vpop.permute.xlu1 %974  ;;  %v1013_v0 = vmul.f32 %v1890_v61, %v1011_v40 }
0x14c5   :  { %v977_v26 = vmul.f32 %v2238_v38, %v975_v20 }
0x14cd   :  { %v981_v27 = vpop.permute.xlu1 %980 }
0x14ce   :  { %v983_v55 = vmul.f32 %v2232_v35, %v981_v27 }
0x14d0   :  { %v984_v29 = vadd.f32 %v983_v55, %v977_v26 }
0x14d6   :  { %v987_v44 = vpop.permute.xlu1 %986 }
0x14d7   :  { %v989_v2 = vmul.f32 %v2244_v43, %v987_v44 }
0x14d9   :  { %v990_v32 = vadd.f32 %v989_v2, %v984_v29 }
0x14df   :  { %v993_v5 = vpop.permute.xlu1 %992 }
0x14e0   :  { %v995_v58 = vmul.f32 %v2250_v48, %v993_v5 }
0x14e2   :  { %v996_v6 = vadd.f32 %v995_v58, %v990_v32 }
0x14e8   :  { %v999_v46 = vpop.permute.xlu1 %998 }
0x14e9   :  { %v1001_v42 = vmul.f32 %v1878_v53, %v999_v46 }
0x14eb   :  { %v1002_v17 = vadd.f32 %v1001_v42, %v996_v6 }
0x14ed   :  { %v1008_v11 = vadd.f32 %v1007_v39, %v1002_v17 }
0x14ef   :  { %v1014_v3 = vadd.f32 %v1013_v0, %v1008_v11 }
0x14f1   :  { %v1017_v57 = vpop.permute.xlu1 %1016 }
0x14f2   :  { %v1019_v1 = vmul.f32 %v1895_v62, %v1017_v57 }
0x14f4   :  { %v1020_v50 = vadd.f32 %v1019_v1, %v1014_v3 }
0x14fa   :  { %v1023_v14 = vpop.permute.xlu1 %1022 }
0x14fb   :  { %v1025_v53 = vmul.f32 %v1902_v12, %v1023_v14 }
0x14fd   :  { %v1026_v4 = vadd.f32 %v1025_v53, %v1020_v50 }
0x1503   :  { %v1029_v49 = vpop.permute.xlu1 %1028 }
0x1504   :  { %v1031_v52 = vmul.f32 %v1907_v13, %v1029_v49 }
0x1506   :  { %v1032_v36 = vadd.f32 %v1031_v52, %v1026_v4 }
0x1508   :  { %v1038_v45 = vadd.f32 %v1037_v37, %v1032_v36 }
0x150c   :  { %v1041_v10 = vpop.permute.xlu1 %1040 }
0x150d   :  { %v1043_v47 = vmul.f32 %v1919_v34, %v1041_v10 }
0x150f   :  { %v1044_v59 = vadd.f32 %v1043_v47, %v1038_v45 }
0x1511   :  { %1497 = vmatmul.msk.f32.vlgmr.msrb.gmra.mxu0 %vm121_vm1, %v1044_v59 }
0x1512   :  { %1509 = vmatpush.msk.msrb.mxu0 %vm97_vm0, %v1939_v51 }
0x158e   :  { %v1065_v61 = vpop.f32.mrf.mxu0 }
0x158f   :  { %1069 = vrot.lane.b32.xlu2 %v1065_v61, %s1687_s29 }
0x15e9   :  { %v1070_v62 = vpop.permute.xlu2 %1069 }
0x15ea   :  { %v1072_v12 = vadd.f32 %v1070_v62, %v2212_v63 }
0x15ec   :  { %v1073_v13 = vmax.f32 %v1072_v12, 0.0 }
0x15ee   :  { %1095 = vrot.lane.b32.xlu1 %v1073_v13, %s1688_s7 }
0x1660   :  { %v1096_v22 = vpop.permute.xlu1 %1095 }
0x1661   :  { %1500 = vmatmul.msk.f32.vlgmr.msrb.gmra.mxu2 %vm93_vm3, %v1096_v22 }
0x16e4   :  { %v1116_v34 = vpop.f32.mrf.mxu2 }
0x16e5   :  { %v1117_v15 = vadd.f32 %v1116_v34, %v1091_v33 }
0x16e7   :  { %v1119_v41 = vadd.f32 %v1980_v9, %v1117_v15 }
0x16e9   :  { %1635 = vtanh.f32 %v1119_v41  ;;  %v1501_v51 = vmul.f32 -1.442695, %v1119_v41 }
0x16eb   :  { %1637 = vpow2.f32 %v1501_v51  ;;  %v1668_v51 = vld [vmem:[%s2360_s2 + $0x10] sm:$0x3] }
0x16ef   :  { %v1636_v20 = vpop.eup %1635 }
0x16f0   :  { %1142 = vrot.lane.b32.xlu2 %v1636_v20, %s1690_s1 }
0x16f1   :  { %v1638_v27 = vpop.eup %1637 }
0x16f2   :  { %v1123_v44 = vadd.f32 1.0, %v1638_v27 }
0x16f4   :  { %1639 = vrcp.f32 %v1123_v44  ;;  %v1135_v26 = vand.u32 2147483648, %v1123_v44  ;;  %vm1129_vm5 = vweird.f32 %v1123_v44  ;;  %v1133_v2 = vand.u32 2147483647, %v1123_v44 }
0x16f6   :  { %v1136_v29 = vor.u32 1.1754944e-38, %v1135_v26  ;;  %vm1134_vm7 = vcmp.eq.f32.partialorder %v1133_v2, 8.507059e+37  ;;  %v1670_v26 = vld [vmem:[%s2360_s2 + $0x14] sm:$0x3] }
0x16fa   :  { %v1640_v63 = vpop.eup %1639 }
0x16fb   :  { %v1125_v5 = vmul.f32 %v1640_v63, %v1123_v44  ;;  %vm1130_vm0 = vweird.f32 %v1640_v63 }
0x16fc   :  { %vm1131_vm6 = vmor %vm1129_vm5, %vm1130_vm0 }
0x16fd   :  { %v1126_v46 = vsub.f32 1.0, %v1125_v5 }
0x16ff   :  { %v1127_v55 = vmul.f32 %v1640_v63, %v1126_v46 }
0x1701   :  { %v1128_v57 = vadd.f32 %v1640_v63, %v1127_v55 }
0x1703   :  { %v1132_v9 = vsel %vm1131_vm6, %v1640_v63, %v1128_v57  ;;  %v1669_v63 = vld [vmem:[%s2360_s2 + $0x12] sm:$0x3] }
0x1704   :  { %v1137_v32 = vsel %vm1134_vm7, %v1136_v29, %v1132_v9 }
0x1705   :  { %v1140_v6 = vmul.f32 %v1137_v32, %v2168_v56 }
0x174a   :  { %v1143_v58 = vpop.permute.xlu2 %1142 }
0x174b   :  { %v1145_v42 = vmul.f32 %v1143_v58, %v1137_v32  ;;  %v1671_v58 = vld [vmem:[%s2360_s2 + $0x16] sm:$0x3] }
0x174d   :  { %1147 = vrot.lane.b32.xlu0 %v1145_v42, %s1689_s20 }
0x17bf   :  { %v1148_v60 = vpop.permute.xlu0 %1147 }
0x17c0   :  { %v2277_v14 = vadd.f32 %v1148_v60, %v1140_v6 }
0x17c2   :  { %1641 = vtanh.f32 %v2277_v14 }
0x17c8   :  { %v1642_v17 = vpop.eup %1641 }
0x17c9   :  { %1153 = vrot.lane.b32.xlu1 %v1642_v17, %s1690_s1 }
0x183b   :  { %v1154_v39 = vpop.permute.xlu1 %1153 }
0x183c   :  { %v1156_v40 = vmul.f32 %v1154_v39, %v1137_v32 }
0x183e   :  { %1158 = vrot.lane.b32.xlu2 %v1156_v40, %s1689_s20 }
0x1898   :  { %v1159_v11 = vpop.permute.xlu2 %1158 }
0x1899   :  { %1502 = vmatmul.msk.f32.vlgmr.msrb.gmra.mxu3 %vm121_vm1, %v1159_v11  ;;  %1506 = vmatmul.msk.f32.vlgmr.msra.gmra.mxu1 %vm121_vm1, %v1159_v11 }
0x18a1   :  { %1508 = vmatmul.msk.f32.vlgmr.msra.gmra.mxu3 %vm121_vm1, %v1159_v11 }
0x1916   :  { %v1224_v53 = vpop.f32.mrf.mxu1 }
0x191c   :  { %v1179_v56 = vpop.f32.mrf.mxu3 }
0x191d   :  { %v1180_v0 = vadd.f32 %v2040_v16, %v1179_v56 }
0x191f   :  { %1503 = vst.msk [vmem:[%s2367_s13 + $0x6] sm:$0x3] %vm381_vm8, %v1180_v0  ;;  %1505 = vmatmul.msk.f32.vlgmr.msra.gmra.mxu0 %vm93_vm3, %v1180_v0 }
0x1924   :  { %v1358_v11 = vpop.f32.mrf.mxu3 }
0x199c   :  { %v1204_v1 = vpop.f32.mrf.mxu0 }
0x199d   :  { %v2292_v3 = vadd.f32 %v2209_v54, %v1204_v1  ;;  %v1672_v1 = vld [vmem:[%s2363_s10] ss:$0 sm:$0xff] }
0x199f   :  { %v1227_v49 = vadd.f32 %v1224_v53, %v2292_v3 }
0x19a1   :  { %v1228_v50 = vsel %vm146_vm2, %v1227_v49, -inf }
0x19a2   :  { %1229 = vmax.xlane.f32.xlu0 %v1228_v50 }
0x1a15   :  { %v1230_v52 = vpop.xlane.xlu0 %1229 }
0x1a16   :  { %v1231_v4 = vsub.f32 %v1227_v49, %v1230_v52 }
0x1a18   :  { %v1232_v16 = vmul.f32 1.442695, %v1231_v4 }
0x1a1a   :  { %1643 = vpow2.f32 %v1232_v16 }
0x1a20   :  { %v1644_v8 = vpop.eup %1643 }
0x1a21   :  { %v1234_v36 = vsel %vm146_vm2, %v1644_v8, 0.0 }
0x1a22   :  { %1235 = vadd.xlane.f32.xlu1 %v1234_v36 }
0x1a95   :  { %v1236_v37 = vpop.xlane.xlu1 %1235 }
0x1a96   :  { %1645 = vrcp.f32 %v1236_v37 }
0x1a9c   :  { %v1646_v10 = vpop.eup %1645 }
0x1a9d   :  { %v1238_v45 = vmul.f32 %v1646_v10, %v1644_v8 }
0x1a9f   :  { %1277 = vperm.xlu1 %1585, %v1238_v45   ;;  %1271 = vperm.xlu0 %1584, %v1238_v45  }
0x1aa0   :  { %1241 = vperm.xlu2 %1579, %v1238_v45  }
0x1aa7   :  { %1589 = vset.pattern.permute.xlu1 %v1684_v30  ;;  %1591 = vset.pattern.permute.xlu0 %v2374_v7 }
0x1aa8   :  { %1580 = vset.pattern.permute.xlu2 %v1679_v25  ;;  %1301 = vperm.xlu1 %1589, %v1238_v45  }
0x1aa9   :  { %1247 = vperm.xlu2 %1580, %v1238_v45  }
0x1ab1   :  { %1581 = vset.pattern.permute.xlu2 %v1676_v19 }
0x1ab2   :  { %1253 = vperm.xlu2 %1581, %v1238_v45  }
0x1aba   :  { %1582 = vset.pattern.permute.xlu2 %v1678_v24 }
0x1abb   :  { %1259 = vperm.xlu2 %1582, %v1238_v45  }
0x1ac3   :  { %1583 = vset.pattern.permute.xlu2 %v1675_v18 }
0x1ac4   :  { %1265 = vperm.xlu2 %1583, %v1238_v45  }
0x1acc   :  { %1586 = vset.pattern.permute.xlu2 %v2376_v23 }
0x1acd   :  { %1283 = vperm.xlu2 %1586, %v1238_v45  }
0x1ad5   :  { %1587 = vset.pattern.permute.xlu2 %v1682_v28 }
0x1ad6   :  { %1289 = vperm.xlu2 %1587, %v1238_v45  }
0x1ade   :  { %1588 = vset.pattern.permute.xlu2 %v1685_v31 }
0x1adf   :  { %1295 = vperm.xlu2 %1588, %v1238_v45  }
0x1ae7   :  { %1590 = vset.pattern.permute.xlu2 %v2374_v7  ;;  %v1665_v7 = vld [vmem:[%s2360_s2 + $0x8] sm:$0x3] }
0x1ae8   :  { %1307 = vperm.xlu2 %1590, %v1238_v45  }
0x1afa   :  { %v1242_v19 = vpop.permute.xlu2 %1241 }
0x1afb   :  { %v1244_v23 = vmul.f32 %v2238_v38, %v1242_v19  ;;  %v1666_v38 = vld [vmem:[%s2360_s2 + $0xc] sm:$0x3] }
0x1b03   :  { %v1248_v25 = vpop.permute.xlu2 %1247 }
0x1b04   :  { %v1250_v18 = vmul.f32 %v2232_v35, %v1248_v25 }
0x1b06   :  { %v1251_v28 = vadd.f32 %v1250_v18, %v1244_v23 }
0x1b0c   :  { %v1254_v30 = vpop.permute.xlu2 %1253 }
0x1b0d   :  { %v1256_v59 = vmul.f32 %v2244_v43, %v1254_v30 }
0x1b0f   :  { %v1257_v31 = vadd.f32 %v1256_v59, %v1251_v28 }
0x1b11   :  { %v1272_v13 = vpop.permute.xlu0 %1271  ;;  %v1278_v34 = vpop.permute.xlu1 %1277 }
0x1b12   :  { %v1274_v35 = vmul.f32 %v2257_v21, %v1272_v13  ;;  %v1280_v43 = vmul.f32 %v1666_v38, %v1278_v34 }
0x1b15   :  { %v1260_v24 = vpop.permute.xlu2 %1259 }
0x1b16   :  { %v1262_v61 = vmul.f32 %v2250_v48, %v1260_v24  ;;  %v1667_v48 = vld [vmem:[%s2360_s2 + $0xe] sm:$0x3] }
0x1b18   :  { %v1263_v12 = vadd.f32 %v1262_v61, %v1257_v31 }
0x1b1a   :  { %v1302_v55 = vpop.permute.xlu1 %1301 }
0x1b1b   :  { %v1304_v2 = vmul.f32 %v1670_v26, %v1302_v55 }
0x1b1e   :  { %v1266_v54 = vpop.permute.xlu2 %1265 }
0x1b1f   :  { %v1268_v62 = vmul.f32 %v1665_v7, %v1266_v54 }
0x1b21   :  { %v1269_v33 = vadd.f32 %v1268_v62, %v1263_v12  ;;  %v1673_v62 = vld [vmem:[%s2366_s12] ss:$0 sm:$0xff] }
0x1b23   :  { %v1275_v15 = vadd.f32 %v1274_v35, %v1269_v33 }
0x1b25   :  { %v1281_v20 = vadd.f32 %v1280_v43, %v1275_v15 }
0x1b27   :  { %v1284_v47 = vpop.permute.xlu2 %1283 }
0x1b28   :  { %v1286_v41 = vmul.f32 %v1667_v48, %v1284_v47 }
0x1b2a   :  { %v1287_v21 = vadd.f32 %v1286_v41, %v1281_v20 }
0x1b30   :  { %v1290_v22 = vpop.permute.xlu2 %1289 }
0x1b31   :  { %v1292_v27 = vmul.f32 %v1668_v51, %v1290_v22 }
0x1b33   :  { %v1293_v46 = vadd.f32 %v1292_v27, %v1287_v21 }
0x1b39   :  { %v1296_v44 = vpop.permute.xlu2 %1295 }
0x1b3a   :  { %v1298_v5 = vmul.f32 %v1669_v63, %v1296_v44 }
0x1b3c   :  { %v1299_v57 = vadd.f32 %v1298_v5, %v1293_v46 }
0x1b3e   :  { %v1305_v29 = vadd.f32 %v1304_v2, %v1299_v57 }
0x1b42   :  { %v1308_v9 = vpop.permute.xlu2 %1307 }
0x1b43   :  { %v1310_v32 = vmul.f32 %v1671_v58, %v1308_v9 }
0x1b45   :  { %v1311_v42 = vadd.f32 %v1310_v32, %v1305_v29 }
0x1b47   :  { %1507 = vmatmul.msk.f32.vlgmr.msra.gmra.mxu2 %vm121_vm1, %v1311_v42 }
0x1bca   :  { %v1332_v6 = vpop.f32.mrf.mxu2 }
0x1bcb   :  { %1336 = vrot.lane.b32.xlu1 %v1332_v6, %s1687_s29 }
0x1c3d   :  { %v1337_v60 = vpop.permute.xlu1 %1336 }
0x1c3e   :  { %v1339_v17 = vadd.f32 %v1337_v60, %v2292_v3 }
0x1c40   :  { %v1340_v39 = vmax.f32 %v1339_v17, 0.0 }
0x1c42   :  { %1362 = vrot.lane.b32.xlu2 %v1340_v39, %s1688_s7 }
0x1c9c   :  { %v1363_v40 = vpop.permute.xlu2 %1362 }
0x1c9d   :  { %1510 = vmatmul.msk.f32.vlgmr.msrb.gmra.mxu0 %vm93_vm3, %v1363_v40 }
0x1d1a   :  { %v1383_v56 = vpop.f32.mrf.mxu0 }
0x1d1b   :  { %v1384_v0 = vadd.f32 %v1383_v56, %v1358_v11 }
0x1d1d   :  { %v1386_v53 = vadd.f32 %v1672_v1, %v1384_v0 }
0x1d1f   :  { %1647 = vtanh.f32 %v1386_v53  ;;  %v1511_v50 = vmul.f32 -1.442695, %v1386_v53 }
0x1d21   :  { %1649 = vpow2.f32 %v1511_v50 }
0x1d25   :  { %v1648_v49 = vpop.eup %1647 }
0x1d26   :  { %1409 = vrot.lane.b32.xlu0 %v1648_v49, %s1690_s1 }
0x1d27   :  { %v1650_v3 = vpop.eup %1649 }
0x1d28   :  { %v1390_v52 = vadd.f32 1.0, %v1650_v3 }
0x1d2a   :  { %1651 = vrcp.f32 %v1390_v52  ;;  %v1402_v10 = vand.u32 2147483648, %v1390_v52  ;;  %vm1396_vm3 = vweird.f32 %v1390_v52  ;;  %v1400_v45 = vand.u32 2147483647, %v1390_v52 }
0x1d2c   :  { %v1403_v25 = vor.u32 1.1754944e-38, %v1402_v10  ;;  %vm1401_vm10 = vcmp.eq.f32.partialorder %v1400_v45, 8.507059e+37 }
0x1d30   :  { %v1652_v4 = vpop.eup %1651 }
0x1d31   :  { %v1392_v16 = vmul.f32 %v1652_v4, %v1390_v52  ;;  %vm1397_vm2 = vweird.f32 %v1652_v4 }
0x1d32   :  { %vm1398_vm9 = vmor %vm1396_vm3, %vm1397_vm2 }
0x1d33   :  { %v1393_v8 = vsub.f32 1.0, %v1392_v16 }
0x1d35   :  { %v1394_v36 = vmul.f32 %v1652_v4, %v1393_v8 }
0x1d37   :  { %v1395_v37 = vadd.f32 %v1652_v4, %v1394_v36 }
0x1d39   :  { %v1399_v19 = vsel %vm1398_vm9, %v1652_v4, %v1395_v37 }
0x1d3a   :  { %v1404_v24 = vsel %vm1401_vm10, %v1403_v25, %v1399_v19 }
0x1d3b   :  { %v1407_v18 = vmul.f32 %v1404_v24, %v2277_v14 }
0x1d98   :  { %v1410_v30 = vpop.permute.xlu0 %1409 }
0x1d99   :  { %v1412_v54 = vmul.f32 %v1410_v30, %v1404_v24 }
0x1d9b   :  { %1414 = vrot.lane.b32.xlu1 %v1412_v54, %s1689_s20 }
0x1e0d   :  { %v1415_v47 = vpop.permute.xlu1 %1414 }
0x1e0e   :  { %v1417_v23 = vadd.f32 %v1415_v47, %v1407_v18 }
0x1e10   :  { %1653 = vtanh.f32 %v1417_v23 }
0x1e16   :  { %v1654_v59 = vpop.eup %1653 }
0x1e17   :  { %1420 = vrot.lane.b32.xlu2 %v1654_v59, %s1690_s1 }
0x1e71   :  { %v1421_v28 = vpop.permute.xlu2 %1420 }
0x1e72   :  { %v1423_v61 = vmul.f32 %v1421_v28, %v1404_v24 }
0x1e74   :  { %1425 = vrot.lane.b32.xlu0 %v1423_v61, %s1689_s20 }
0x1ee6   :  { %v1426_v31 = vpop.permute.xlu0 %1425 }
0x1ee7   :  { %1512 = vmatmul.msk.f32.vlgmr.msrb.gmra.mxu1 %vm121_vm1, %v1426_v31 }
0x1f64   :  { %v1446_v7 = vpop.f32.mrf.mxu1 }
0x1f65   :  { %v1447_v12 = vadd.f32 %v1673_v62, %v1446_v7 }
0x1f67   :  { %1513 = vst.msk [vmem:[%s2367_s13 + $0x8] sm:$0x3] %vm381_vm8, %v1447_v12 }

</bundles_post_ra>
